<compile_context>
chip_gen: v7x
topology: tpu7x:2x2x1
jax: 0.10.0
libtpu: 0.0.40
codegen_flags: <defaults>
</compile_context>

<pallas_src>
import jax
import jax.numpy as jnp
import numpy as np
from jax.experimental import pallas as pl
from jax.experimental.pallas import tpu as pltpu


# ---------------------------------------------------------------------------
# Pallas kernel: full time recurrence of one embed_DGCN layer for ONE batch
# row.  grid = (B,) "parallel"; the T loop is unrolled in-kernel (T is small
# and static here; for long sequences move T back onto the grid).
# ---------------------------------------------------------------------------
def _ddgcn_layer_kernel(xg_ref, xu_ref, h0_ref, s_ref, e_ref, wg_ref, wu_ref,
                        out_ref):
    # xg_ref : (T, N, 2H)      precomputed x-path + bias of the gate DGCN
    # xu_ref : (T, N, H)       precomputed x-path + bias of the update DGCN
    # h0_ref : (N, H)          initial state for this batch row
    # s_ref  : (T, K-1, N, N)  Chebyshev supports (identity dropped)
    # e_ref  : (T, N, D*K*H)   node-embedding fan-out (col d*K*H+j -> E[n,d])
    # wg_ref : (D*K*H, 2H)     state-side gate weights, (d,k,i) row order
    # wu_ref : (D*K*H, H)      state-side update weights
    # out_ref: (T, N, H)       h_t for this batch row
    T_ = xg_ref.shape[0]
    H = h0_ref.shape[1]
    Km1 = s_ref.shape[1]
    DKH = e_ref.shape[2]
    D = DKH // ((Km1 + 1) * H)
    f32 = jnp.float32

    wg = wg_ref[...]                      # resident in VMEM for the whole call
    wu = wu_ref[...]
    h = h0_ref[...]                       # (N, H) loop carry

    for t in range(T_):                   # static unroll (T is small)
        s_t = s_ref[t]                    # (K-1, N, N)
        e_t = e_ref[t]                    # (N, D*K*H)

        def mixed(v):
            # v: (N, H) -> f: (N, D*K*H) with f[n, d*K*H + k*H + i]
            #   = E_t[n, d] * (S_t^k v)[n, i]     (k = 0 is the identity).
            parts = [v] + [jnp.dot(s_t[k], v, preferred_element_type=f32)
                           for k in range(Km1)]
            return e_t * jnp.concatenate(parts * D, axis=1)

        # gate (z and r fused): one lane-dense dot, x path already folded in.
        zr = jax.nn.sigmoid(
            xg_ref[t] + jnp.dot(mixed(h), wg, preferred_element_type=f32))
        z = zr[:, :H]
        r = zr[:, H:]

        # candidate: propagate z*h, x path already folded into xu_ref.
        hc = jnp.tanh(
            xu_ref[t] + jnp.dot(mixed(z * h), wu, preferred_element_type=f32))

        h = r * h + (1.0 - r) * hc        # matches PyTorch (r, not z)
        out_ref[t] = h


def ddgcn_layer(xg_pre, xu_pre, h0, scheb, e_exp, wgh, wuh):
    # xg_pre: (B, T, N, 2H), xu_pre: (B, T, N, H), h0: (B, N, H)
    # scheb : (T, K-1, N, N), e_exp: (T, N, D*K*H)
    # wgh   : (D*K*H, 2H),    wuh  : (D*K*H, H)
    B, T_, N, twoH = xg_pre.shape
    H = h0.shape[-1]
    Km1 = scheb.shape[1]
    DKH = e_exp.shape[-1]

    grid_spec = pltpu.PrefetchScalarGridSpec(
        num_scalar_prefetch=0,
        grid=(B,),
        in_specs=[
            pl.BlockSpec((None, T_, N, twoH), lambda b: (b, 0, 0, 0)),
            pl.BlockSpec((None, T_, N, H), lambda b: (b, 0, 0, 0)),
            pl.BlockSpec((None, N, H), lambda b: (b, 0, 0)),
            pl.BlockSpec((T_, Km1, N, N), lambda b: (0, 0, 0, 0)),
            pl.BlockSpec((T_, N, DKH), lambda b: (0, 0, 0)),
            pl.BlockSpec((DKH, twoH), lambda b: (0, 0)),
            pl.BlockSpec((DKH, H), lambda b: (0, 0)),
        ],
        out_specs=pl.BlockSpec((None, T_, N, H), lambda b: (b, 0, 0, 0)),
    )
    return pl.pallas_call(
        _ddgcn_layer_kernel,
        out_shape=jax.ShapeDtypeStruct((B, T_, N, H), jnp.float32),
        grid_spec=grid_spec,
        compiler_params=pltpu.CompilerParams(
            dimension_semantics=("parallel",)),   # batch rows -> v7x 2 TCs
    )(xg_pre, xu_pre, h0, scheb, e_exp, wgh, wuh)


# ---------------------------------------------------------------------------
# Host-side (plain XLA) precomputation: supports, the whole x path for all T,
# the flattened state-side weight slabs and the embedding fan-out.
# ---------------------------------------------------------------------------
def _cheb_supports(node_embeddings, cheb_k):
    # node_embeddings: (T, N, D) -> (T, K, N, N), identity at k = 0.
    E = node_embeddings
    N = E.shape[1]
    logits = jnp.maximum(jnp.einsum('tnd,tmd->tnm', E, E), 0.0)
    S = jax.nn.softmax(logits, axis=-1)
    supp = [jnp.broadcast_to(jnp.eye(N, dtype=S.dtype), S.shape), S]
    for _ in range(2, cheb_k):
        supp.append(2.0 * jnp.einsum('tnm,tmo->tno', S, supp[-1]) - supp[-2])
    return jnp.stack(supp, axis=1)


def _layer_precompute(x_cur, node_embeddings, supports_all, prm):
    # x_cur: (B, T, N, Cin)
    B, T_, N, Cin = x_cur.shape
    Wg, bg, Wu, bu = prm["Wg"], prm["bg"], prm["Wu"], prm["bu"]
    D, K = Wg.shape[0], Wg.shape[1]
    H = Wu.shape[-1]
    E = node_embeddings

    # x-side propagation for all t, k at once (fully parallel, off the
    # serial critical path), then contract with the x slice of the pools
    # and fold the bias in.
    x_prop = jnp.einsum('tknm,btmc->btknc', supports_all, x_cur)
    xg_pre = (jnp.einsum('btknc,tnd,dkco->btno', x_prop, E, Wg[:, :, :Cin, :])
              + jnp.einsum('tnd,do->tno', E, bg)[None])           # (B,T,N,2H)
    xu_pre = (jnp.einsum('btknc,tnd,dkco->btno', x_prop, E, Wu[:, :, :Cin, :])
              + jnp.einsum('tnd,do->tno', E, bu)[None])           # (B,T,N,H)

    # state-side weights flattened to (D*K*H, O) with (d, k, i) row order
    wgh = Wg[:, :, Cin:, :].reshape(D * K * H, 2 * H)
    wuh = Wu[:, :, Cin:, :].reshape(D * K * H, H)

    # node-embedding fan-out: column d*K*H + j carries E[t, n, d]
    e_exp = jnp.repeat(E, K * H, axis=-1)                         # (T,N,D*K*H)
    return xg_pre, xu_pre, wgh, wuh, e_exp


def ddgcn_e_forward(x, init_state, layer_res, node_embeddings, params_list):
    # x: (B, T, N, dim_in); node_embeddings: (T, N, D)
    cheb_k = params_list[0]["Wg"].shape[1]
    supports_all = _cheb_supports(node_embeddings, cheb_k)        # (T, K, N, N)
    scheb = supports_all[:, 1:]                                   # (T, K-1, N, N)

    current = x
    hiddens = []
    for i, prm in enumerate(params_list):
        xg_pre, xu_pre, wgh, wuh, e_exp = _layer_precompute(
            current, node_embeddings, supports_all, prm)
        h_seq = ddgcn_layer(xg_pre, xu_pre, init_state[i], scheb, e_exp,
                            wgh, wuh)                             # (B, T, N, H)
        hiddens.append(h_seq[:, -1])
        current = h_seq + layer_res[i + 1]
    return current, jnp.stack(hiddens, axis=0)


# ---------------------------------------------------------------------------
# Pure-JAX reference (mirrors the PyTorch code line by line) for verification
# ---------------------------------------------------------------------------
def _dgcn_ref(x, E, W, b):
    N = E.shape[0]
    cheb_k = W.shape[1]
    S = jax.nn.softmax(jax.nn.relu(E @ E.T), axis=1)
    supp = [jnp.eye(N, dtype=jnp.float32), S]
    for _ in range(2, cheb_k):
        supp.append(2.0 * S @ supp[-1] - supp[-2])
    supports = jnp.stack(supp, 0)
    weights = jnp.einsum("nd,dkio->nkio", E, W)
    bias = E @ b
    x_g = jnp.einsum("knm,bmc->bknc", supports, x)
    x_g = jnp.transpose(x_g, (0, 2, 1, 3))
    return jnp.einsum("bnki,nkio->bno", x_g, weights) + bias


def _cell_ref(x, h, E, Wg, bg, Wu, bu):
    H = h.shape[-1]
    inp = jnp.concatenate([x, h], axis=-1)
    zr = jax.nn.sigmoid(_dgcn_ref(inp, E, Wg, bg))
    z, r = zr[..., :H], zr[..., H:]
    cand = jnp.concatenate([x, z * h], axis=-1)
    hc = jnp.tanh(_dgcn_ref(cand, E, Wu, bu))
    return r * h + (1.0 - r) * hc


def ddgcn_e_ref(x, init_state, layer_res, node_embeddings, params_list):
    current = x
    hiddens = []
    T = x.shape[1]
    for i, prm in enumerate(params_list):
        h = init_state[i]
        states = []
        for t in range(T):
            h = _cell_ref(current[:, t], h, node_embeddings[t],
                          prm["Wg"], prm["bg"], prm["Wu"], prm["bu"])
            states.append(h)
        hiddens.append(h)
        current = jnp.stack(states, axis=1) + layer_res[i + 1]
    return current, jnp.stack(hiddens, axis=0)


# ---------------------------------------------------------------------------
if __name__ == "__main__":
    # small shapes consistent with the module
    B, T, N = 2, 8, 16          # batch, seq_length, node_num
    dim_in, dim_out = 2, 32     # input channels, hidden size
    cheb_k, embed_dim = 3, 4
    num_layers = 1

    key = jax.random.PRNGKey(0)
    ks = jax.random.split(key, 16)

    # deterministic parameter init (synthetic; the torch params are uninitialized)
    params_list = []
    for i in range(num_layers):
        cin = dim_in if i == 0 else dim_out
        in_width = cin + dim_out
        params_list.append({
            "Wg": 0.1 * jax.random.normal(ks[4 * i + 0],
                                          (embed_dim, cheb_k, in_width, 2 * dim_out),
                                          jnp.float32),
            "bg": 0.1 * jax.random.normal(ks[4 * i + 1],
                                          (embed_dim, 2 * dim_out), jnp.float32),
            "Wu": 0.1 * jax.random.normal(ks[4 * i + 2],
                                          (embed_dim, cheb_k, in_width, dim_out),
                                          jnp.float32),
            "bu": 0.1 * jax.random.normal(ks[4 * i + 3],
                                          (embed_dim, dim_out), jnp.float32),
        })
    # TODO(synk): self.linear_p (nn.Linear) is defined in __init__ but never
    # used in DDGCN_e.forward, so it is intentionally omitted.

    x = jax.random.normal(ks[8], (B, T, N, dim_in), jnp.float32)
    init_state = 0.5 * jax.random.normal(ks[9],
                                         (num_layers, B, N, dim_out), jnp.float32)
    layer_res = jax.random.normal(ks[10],
                                  (num_layers + 1, B, T, N, dim_out), jnp.float32)
    node_embeddings = jax.random.normal(ks[11], (T, N, embed_dim), jnp.float32)

    fwd = jax.jit(ddgcn_e_forward)
    out, hidden = fwd(x, init_state, layer_res, node_embeddings, params_list)
    jax.block_until_ready((out, hidden))

    ref_out, ref_hidden = ddgcn_e_ref(x, init_state, layer_res,
                                      node_embeddings, params_list)
    err_out = float(jnp.max(jnp.abs(out - ref_out)))
    err_hid = float(jnp.max(jnp.abs(hidden - ref_hidden)))
    assert out.shape == (B, T, N, dim_out)
    assert hidden.shape == (num_layers, B, N, dim_out)
    np.testing.assert_array_less(err_out, 1e-3)
    np.testing.assert_array_less(err_hid, 1e-3)

    print("KERNEL_OK")
</pallas_src>

<mosaic_0001>
module attributes {stable_mosaic.version = 11 : i64} {
  func.func @_ddgcn_layer_kernel(%arg0: i32, %arg1: memref<1x8x16x64xf32, #tpu.memory_space<vmem>>, %arg2: memref<1x8x16x32xf32, #tpu.memory_space<vmem>>, %arg3: memref<1x16x32xf32, #tpu.memory_space<vmem>>, %arg4: memref<8x2x16x16xf32, #tpu.memory_space<vmem>>, %arg5: memref<8x16x384xf32, #tpu.memory_space<vmem>>, %arg6: memref<384x64xf32, #tpu.memory_space<vmem>>, %arg7: memref<384x32xf32, #tpu.memory_space<vmem>>, %arg8: memref<1x8x16x32xf32, #tpu.memory_space<vmem>>) attributes {dimension_semantics = [#tpu.dimension_semantics<parallel>], iteration_bounds = array<i64: 2>, scalar_prefetch = 0 : i64, scratch_operands = 0 : i64, tpu.core_type = #tpu.core_type<tc>, window_params = [{transform_indices = @transform_0, window_bounds = array<i64: 1, 8, 16, 64>}, {transform_indices = @transform_1, window_bounds = array<i64: 1, 8, 16, 32>}, {transform_indices = @transform_2, window_bounds = array<i64: 1, 16, 32>}, {pipeline_mode = #tpu.pipeline_mode<synchronous>, transform_indices = @transform_3, window_bounds = array<i64: 8, 2, 16, 16>}, {pipeline_mode = #tpu.pipeline_mode<synchronous>, transform_indices = @transform_4, window_bounds = array<i64: 8, 16, 384>}, {pipeline_mode = #tpu.pipeline_mode<synchronous>, transform_indices = @transform_5, window_bounds = array<i64: 384, 64>}, {pipeline_mode = #tpu.pipeline_mode<synchronous>, transform_indices = @transform_6, window_bounds = array<i64: 384, 32>}, {transform_indices = @transform_7, window_bounds = array<i64: 1, 8, 16, 32>}]} {
    %c0 = arith.constant 0 : index
    %c0_0 = arith.constant 0 : index
    %0 = vector.load %arg6[%c0, %c0_0] : memref<384x64xf32, #tpu.memory_space<vmem>>, vector<384x64xf32>
    %c0_1 = arith.constant 0 : index
    %c0_2 = arith.constant 0 : index
    %1 = vector.load %arg7[%c0_1, %c0_2] : memref<384x32xf32, #tpu.memory_space<vmem>>, vector<384x32xf32>
    %c0_3 = arith.constant 0 : index
    %c0_4 = arith.constant 0 : index
    %c0_5 = arith.constant 0 : index
    %2 = vector.load %arg3[%c0_3, %c0_4, %c0_5] : memref<1x16x32xf32, #tpu.memory_space<vmem>>, vector<1x16x32xf32>
    %3 = vector.shape_cast %2 : vector<1x16x32xf32> to vector<16x32xf32>
    %c0_6 = arith.constant 0 : index
    %c0_7 = arith.constant 0 : index
    %c0_8 = arith.constant 0 : index
    %c0_9 = arith.constant 0 : index
    %4 = vector.load %arg4[%c0_6, %c0_7, %c0_8, %c0_9] : memref<8x2x16x16xf32, #tpu.memory_space<vmem>>, vector<1x2x16x16xf32>
    %5 = vector.shape_cast %4 : vector<1x2x16x16xf32> to vector<2x16x16xf32>
    %c0_10 = arith.constant 0 : index
    %c0_11 = arith.constant 0 : index
    %c0_12 = arith.constant 0 : index
    %6 = vector.load %arg5[%c0_10, %c0_11, %c0_12] : memref<8x16x384xf32, #tpu.memory_space<vmem>>, vector<1x16x384xf32>
    %7 = vector.shape_cast %6 : vector<1x16x384xf32> to vector<16x384xf32>
    %c0_13 = arith.constant 0 : index
    %c0_14 = arith.constant 0 : index
    %c0_15 = arith.constant 0 : index
    %c0_16 = arith.constant 0 : index
    %8 = vector.load %arg1[%c0_13, %c0_14, %c0_15, %c0_16] : memref<1x8x16x64xf32, #tpu.memory_space<vmem>>, vector<1x1x16x64xf32>
    %9 = vector.shape_cast %8 : vector<1x1x16x64xf32> to vector<16x64xf32>
    %10 = vector.extract_strided_slice %5 {offsets = [0, 0, 0], sizes = [1, 16, 16], strides = [1, 1, 1]} : vector<2x16x16xf32> to vector<1x16x16xf32>
    %11 = vector.shape_cast %10 : vector<1x16x16xf32> to vector<16x16xf32>
    %cst = arith.constant dense<0.000000e+00> : vector<16x32xf32>
    %12 = tpu.matmul %11, %3, %cst {dimension_numbers = #tpu.dot_dimension_numbers<[1], [0], [0], [1], [0, 0, 1, 1], [], []>} : vector<16x16xf32>, vector<16x32xf32>, vector<16x32xf32> -> vector<16x32xf32>
    %13 = vector.extract_strided_slice %5 {offsets = [1, 0, 0], sizes = [1, 16, 16], strides = [1, 1, 1]} : vector<2x16x16xf32> to vector<1x16x16xf32>
    %14 = vector.shape_cast %13 : vector<1x16x16xf32> to vector<16x16xf32>
    %cst_17 = arith.constant dense<0.000000e+00> : vector<16x32xf32>
    %15 = tpu.matmul %14, %3, %cst_17 {dimension_numbers = #tpu.dot_dimension_numbers<[1], [0], [0], [1], [0, 0, 1, 1], [], []>} : vector<16x16xf32>, vector<16x32xf32>, vector<16x32xf32> -> vector<16x32xf32>
    %16 = tpu.concatenate %3, %12, %15, %3, %12, %15, %3, %12, %15, %3, %12, %15 in 1 : vector<16x32xf32>, vector<16x32xf32>, vector<16x32xf32>, vector<16x32xf32>, vector<16x32xf32>, vector<16x32xf32>, vector<16x32xf32>, vector<16x32xf32>, vector<16x32xf32>, vector<16x32xf32>, vector<16x32xf32>, vector<16x32xf32> -> vector<16x384xf32>
    %17 = arith.mulf %7, %16 : vector<16x384xf32>
    %cst_18 = arith.constant dense<0.000000e+00> : vector<16x64xf32>
    %18 = tpu.matmul %17, %0, %cst_18 {dimension_numbers = #tpu.dot_dimension_numbers<[1], [0], [0], [1], [0, 0, 1, 1], [], []>} : vector<16x384xf32>, vector<384x64xf32>, vector<16x64xf32> -> vector<16x64xf32>
    %19 = arith.addf %9, %18 : vector<16x64xf32>
    %20 = arith.negf %19 : vector<16x64xf32>
    %21 = math.exp %20 : vector<16x64xf32>
    %cst_19 = arith.constant 1.000000e+00 : f32
    %22 = vector.broadcast %cst_19 : f32 to vector<16x64xf32>
    %23 = arith.addf %22, %21 : vector<16x64xf32>
    %24 = arith.divf %22, %23 : vector<16x64xf32>
    %25 = vector.extract_strided_slice %24 {offsets = [0, 0], sizes = [16, 32], strides = [1, 1]} : vector<16x64xf32> to vector<16x32xf32>
    %26 = vector.extract_strided_slice %24 {offsets = [0, 32], sizes = [16, 32], strides = [1, 1]} : vector<16x64xf32> to vector<16x32xf32>
    %c0_20 = arith.constant 0 : index
    %c0_21 = arith.constant 0 : index
    %c0_22 = arith.constant 0 : index
    %c0_23 = arith.constant 0 : index
    %27 = vector.load %arg2[%c0_20, %c0_21, %c0_22, %c0_23] : memref<1x8x16x32xf32, #tpu.memory_space<vmem>>, vector<1x1x16x32xf32>
    %28 = vector.shape_cast %27 : vector<1x1x16x32xf32> to vector<16x32xf32>
    %29 = arith.mulf %25, %3 : vector<16x32xf32>
    %30 = vector.extract_strided_slice %5 {offsets = [0, 0, 0], sizes = [1, 16, 16], strides = [1, 1, 1]} : vector<2x16x16xf32> to vector<1x16x16xf32>
    %31 = vector.shape_cast %30 : vector<1x16x16xf32> to vector<16x16xf32>
    %cst_24 = arith.constant dense<0.000000e+00> : vector<16x32xf32>
    %32 = tpu.matmul %31, %29, %cst_24 {dimension_numbers = #tpu.dot_dimension_numbers<[1], [0], [0], [1], [0, 0, 1, 1], [], []>} : vector<16x16xf32>, vector<16x32xf32>, vector<16x32xf32> -> vector<16x32xf32>
    %33 = vector.extract_strided_slice %5 {offsets = [1, 0, 0], sizes = [1, 16, 16], strides = [1, 1, 1]} : vector<2x16x16xf32> to vector<1x16x16xf32>
    %34 = vector.shape_cast %33 : vector<1x16x16xf32> to vector<16x16xf32>
    %cst_25 = arith.constant dense<0.000000e+00> : vector<16x32xf32>
    %35 = tpu.matmul %34, %29, %cst_25 {dimension_numbers = #tpu.dot_dimension_numbers<[1], [0], [0], [1], [0, 0, 1, 1], [], []>} : vector<16x16xf32>, vector<16x32xf32>, vector<16x32xf32> -> vector<16x32xf32>
    %36 = tpu.concatenate %29, %32, %35, %29, %32, %35, %29, %32, %35, %29, %32, %35 in 1 : vector<16x32xf32>, vector<16x32xf32>, vector<16x32xf32>, vector<16x32xf32>, vector<16x32xf32>, vector<16x32xf32>, vector<16x32xf32>, vector<16x32xf32>, vector<16x32xf32>, vector<16x32xf32>, vector<16x32xf32>, vector<16x32xf32> -> vector<16x384xf32>
    %37 = arith.mulf %7, %36 : vector<16x384xf32>
    %cst_26 = arith.constant dense<0.000000e+00> : vector<16x32xf32>
    %38 = tpu.matmul %37, %1, %cst_26 {dimension_numbers = #tpu.dot_dimension_numbers<[1], [0], [0], [1], [0, 0, 1, 1], [], []>} : vector<16x384xf32>, vector<384x32xf32>, vector<16x32xf32> -> vector<16x32xf32>
    %39 = arith.addf %28, %38 : vector<16x32xf32>
    %40 = math.tanh %39 : vector<16x32xf32>
    %41 = arith.mulf %26, %3 : vector<16x32xf32>
    %cst_27 = arith.constant 1.000000e+00 : f32
    %42 = vector.broadcast %cst_27 : f32 to vector<16x32xf32>
    %43 = arith.subf %42, %26 : vector<16x32xf32>
    %44 = arith.mulf %43, %40 : vector<16x32xf32>
    %45 = arith.addf %41, %44 : vector<16x32xf32>
    %c0_28 = arith.constant 0 : index
    %c0_29 = arith.constant 0 : index
    %c0_30 = arith.constant 0 : index
    %c0_31 = arith.constant 0 : index
    %46 = vector.load %arg8[%c0_28, %c0_29, %c0_30, %c0_31] : memref<1x8x16x32xf32, #tpu.memory_space<vmem>>, vector<1x1x16x32xf32>
    %47 = vector.shape_cast %46 : vector<1x1x16x32xf32> to vector<16x32xf32>
    %48 = vector.shape_cast %45 : vector<16x32xf32> to vector<1x1x16x32xf32>
    tpu.vector_store %arg8[%c0_28, %c0_29, %c0_30, %c0_31], %48 {strides = array<i32>} : memref<1x8x16x32xf32, #tpu.memory_space<vmem>>, vector<1x1x16x32xf32>,
    %c1 = arith.constant 1 : index
    %c0_32 = arith.constant 0 : index
    %c0_33 = arith.constant 0 : index
    %c0_34 = arith.constant 0 : index
    %49 = vector.load %arg4[%c1, %c0_32, %c0_33, %c0_34] : memref<8x2x16x16xf32, #tpu.memory_space<vmem>>, vector<1x2x16x16xf32>
    %50 = vector.shape_cast %49 : vector<1x2x16x16xf32> to vector<2x16x16xf32>
    %c1_35 = arith.constant 1 : index
    %c0_36 = arith.constant 0 : index
    %c0_37 = arith.constant 0 : index
    %51 = vector.load %arg5[%c1_35, %c0_36, %c0_37] : memref<8x16x384xf32, #tpu.memory_space<vmem>>, vector<1x16x384xf32>
    %52 = vector.shape_cast %51 : vector<1x16x384xf32> to vector<16x384xf32>
    %c0_38 = arith.constant 0 : index
    %c1_39 = arith.constant 1 : index
    %c0_40 = arith.constant 0 : index
    %c0_41 = arith.constant 0 : index
    %53 = vector.load %arg1[%c0_38, %c1_39, %c0_40, %c0_41] : memref<1x8x16x64xf32, #tpu.memory_space<vmem>>, vector<1x1x16x64xf32>
    %54 = vector.shape_cast %53 : vector<1x1x16x64xf32> to vector<16x64xf32>
    %55 = vector.extract_strided_slice %50 {offsets = [0, 0, 0], sizes = [1, 16, 16], strides = [1, 1, 1]} : vector<2x16x16xf32> to vector<1x16x16xf32>
    %56 = vector.shape_cast %55 : vector<1x16x16xf32> to vector<16x16xf32>
    %cst_42 = arith.constant dense<0.000000e+00> : vector<16x32xf32>
    %57 = tpu.matmul %56, %45, %cst_42 {dimension_numbers = #tpu.dot_dimension_numbers<[1], [0], [0], [1], [0, 0, 1, 1], [], []>} : vector<16x16xf32>, vector<16x32xf32>, vector<16x32xf32> -> vector<16x32xf32>
    %58 = vector.extract_strided_slice %50 {offsets = [1, 0, 0], sizes = [1, 16, 16], strides = [1, 1, 1]} : vector<2x16x16xf32> to vector<1x16x16xf32>
    %59 = vector.shape_cast %58 : vector<1x16x16xf32> to vector<16x16xf32>
    %cst_43 = arith.constant dense<0.000000e+00> : vector<16x32xf32>
    %60 = tpu.matmul %59, %45, %cst_43 {dimension_numbers = #tpu.dot_dimension_numbers<[1], [0], [0], [1], [0, 0, 1, 1], [], []>} : vector<16x16xf32>, vector<16x32xf32>, vector<16x32xf32> -> vector<16x32xf32>
    %61 = tpu.concatenate %45, %57, %60, %45, %57, %60, %45, %57, %60, %45, %57, %60 in 1 : vector<16x32xf32>, vector<16x32xf32>, vector<16x32xf32>, vector<16x32xf32>, vector<16x32xf32>, vector<16x32xf32>, vector<16x32xf32>, vector<16x32xf32>, vector<16x32xf32>, vector<16x32xf32>, vector<16x32xf32>, vector<16x32xf32> -> vector<16x384xf32>
    %62 = arith.mulf %52, %61 : vector<16x384xf32>
    %cst_44 = arith.constant dense<0.000000e+00> : vector<16x64xf32>
    %63 = tpu.matmul %62, %0, %cst_44 {dimension_numbers = #tpu.dot_dimension_numbers<[1], [0], [0], [1], [0, 0, 1, 1], [], []>} : vector<16x384xf32>, vector<384x64xf32>, vector<16x64xf32> -> vector<16x64xf32>
    %64 = arith.addf %54, %63 : vector<16x64xf32>
    %65 = arith.negf %64 : vector<16x64xf32>
    %66 = math.exp %65 : vector<16x64xf32>
    %cst_45 = arith.constant 1.000000e+00 : f32
    %67 = vector.broadcast %cst_45 : f32 to vector<16x64xf32>
    %68 = arith.addf %67, %66 : vector<16x64xf32>
    %69 = arith.divf %67, %68 : vector<16x64xf32>
    %70 = vector.extract_strided_slice %69 {offsets = [0, 0], sizes = [16, 32], strides = [1, 1]} : vector<16x64xf32> to vector<16x32xf32>
    %71 = vector.extract_strided_slice %69 {offsets = [0, 32], sizes = [16, 32], strides = [1, 1]} : vector<16x64xf32> to vector<16x32xf32>
    %c0_46 = arith.constant 0 : index
    %c1_47 = arith.constant 1 : index
    %c0_48 = arith.constant 0 : index
    %c0_49 = arith.constant 0 : index
    %72 = vector.load %arg2[%c0_46, %c1_47, %c0_48, %c0_49] : memref<1x8x16x32xf32, #tpu.memory_space<vmem>>, vector<1x1x16x32xf32>
    %73 = vector.shape_cast %72 : vector<1x1x16x32xf32> to vector<16x32xf32>
    %74 = arith.mulf %70, %45 : vector<16x32xf32>
    %75 = vector.extract_strided_slice %50 {offsets = [0, 0, 0], sizes = [1, 16, 16], strides = [1, 1, 1]} : vector<2x16x16xf32> to vector<1x16x16xf32>
    %76 = vector.shape_cast %75 : vector<1x16x16xf32> to vector<16x16xf32>
    %cst_50 = arith.constant dense<0.000000e+00> : vector<16x32xf32>
    %77 = tpu.matmul %76, %74, %cst_50 {dimension_numbers = #tpu.dot_dimension_numbers<[1], [0], [0], [1], [0, 0, 1, 1], [], []>} : vector<16x16xf32>, vector<16x32xf32>, vector<16x32xf32> -> vector<16x32xf32>
    %78 = vector.extract_strided_slice %50 {offsets = [1, 0, 0], sizes = [1, 16, 16], strides = [1, 1, 1]} : vector<2x16x16xf32> to vector<1x16x16xf32>
    %79 = vector.shape_cast %78 : vector<1x16x16xf32> to vector<16x16xf32>
    %cst_51 = arith.constant dense<0.000000e+00> : vector<16x32xf32>
    %80 = tpu.matmul %79, %74, %cst_51 {dimension_numbers = #tpu.dot_dimension_numbers<[1], [0], [0], [1], [0, 0, 1, 1], [], []>} : vector<16x16xf32>, vector<16x32xf32>, vector<16x32xf32> -> vector<16x32xf32>
    %81 = tpu.concatenate %74, %77, %80, %74, %77, %80, %74, %77, %80, %74, %77, %80 in 1 : vector<16x32xf32>, vector<16x32xf32>, vector<16x32xf32>, vector<16x32xf32>, vector<16x32xf32>, vector<16x32xf32>, vector<16x32xf32>, vector<16x32xf32>, vector<16x32xf32>, vector<16x32xf32>, vector<16x32xf32>, vector<16x32xf32> -> vector<16x384xf32>
    %82 = arith.mulf %52, %81 : vector<16x384xf32>
    %cst_52 = arith.constant dense<0.000000e+00> : vector<16x32xf32>
    %83 = tpu.matmul %82, %1, %cst_52 {dimension_numbers = #tpu.dot_dimension_numbers<[1], [0], [0], [1], [0, 0, 1, 1], [], []>} : vector<16x384xf32>, vector<384x32xf32>, vector<16x32xf32> -> vector<16x32xf32>
    %84 = arith.addf %73, %83 : vector<16x32xf32>
    %85 = math.tanh %84 : vector<16x32xf32>
    %86 = arith.mulf %71, %45 : vector<16x32xf32>
    %cst_53 = arith.constant 1.000000e+00 : f32
    %87 = vector.broadcast %cst_53 : f32 to vector<16x32xf32>
    %88 = arith.subf %87, %71 : vector<16x32xf32>
    %89 = arith.mulf %88, %85 : vector<16x32xf32>
    %90 = arith.addf %86, %89 : vector<16x32xf32>
    %c0_54 = arith.constant 0 : index
    %c1_55 = arith.constant 1 : index
    %c0_56 = arith.constant 0 : index
    %c0_57 = arith.constant 0 : index
    %91 = vector.load %arg8[%c0_54, %c1_55, %c0_56, %c0_57] : memref<1x8x16x32xf32, #tpu.memory_space<vmem>>, vector<1x1x16x32xf32>
    %92 = vector.shape_cast %91 : vector<1x1x16x32xf32> to vector<16x32xf32>
    %93 = vector.shape_cast %90 : vector<16x32xf32> to vector<1x1x16x32xf32>
    tpu.vector_store %arg8[%c0_54, %c1_55, %c0_56, %c0_57], %93 {strides = array<i32>} : memref<1x8x16x32xf32, #tpu.memory_space<vmem>>, vector<1x1x16x32xf32>,
    %c2 = arith.constant 2 : index
    %c0_58 = arith.constant 0 : index
    %c0_59 = arith.constant 0 : index
    %c0_60 = arith.constant 0 : index
    %94 = vector.load %arg4[%c2, %c0_58, %c0_59, %c0_60] : memref<8x2x16x16xf32, #tpu.memory_space<vmem>>, vector<1x2x16x16xf32>
    %95 = vector.shape_cast %94 : vector<1x2x16x16xf32> to vector<2x16x16xf32>
    %c2_61 = arith.constant 2 : index
    %c0_62 = arith.constant 0 : index
    %c0_63 = arith.constant 0 : index
    %96 = vector.load %arg5[%c2_61, %c0_62, %c0_63] : memref<8x16x384xf32, #tpu.memory_space<vmem>>, vector<1x16x384xf32>
    %97 = vector.shape_cast %96 : vector<1x16x384xf32> to vector<16x384xf32>
    %c0_64 = arith.constant 0 : index
    %c2_65 = arith.constant 2 : index
    %c0_66 = arith.constant 0 : index
    %c0_67 = arith.constant 0 : index
    %98 = vector.load %arg1[%c0_64, %c2_65, %c0_66, %c0_67] : memref<1x8x16x64xf32, #tpu.memory_space<vmem>>, vector<1x1x16x64xf32>
    %99 = vector.shape_cast %98 : vector<1x1x16x64xf32> to vector<16x64xf32>
    %100 = vector.extract_strided_slice %95 {offsets = [0, 0, 0], sizes = [1, 16, 16], strides = [1, 1, 1]} : vector<2x16x16xf32> to vector<1x16x16xf32>
    %101 = vector.shape_cast %100 : vector<1x16x16xf32> to vector<16x16xf32>
    %cst_68 = arith.constant dense<0.000000e+00> : vector<16x32xf32>
    %102 = tpu.matmul %101, %90, %cst_68 {dimension_numbers = #tpu.dot_dimension_numbers<[1], [0], [0], [1], [0, 0, 1, 1], [], []>} : vector<16x16xf32>, vector<16x32xf32>, vector<16x32xf32> -> vector<16x32xf32>
    %103 = vector.extract_strided_slice %95 {offsets = [1, 0, 0], sizes = [1, 16, 16], strides = [1, 1, 1]} : vector<2x16x16xf32> to vector<1x16x16xf32>
    %104 = vector.shape_cast %103 : vector<1x16x16xf32> to vector<16x16xf32>
    %cst_69 = arith.constant dense<0.000000e+00> : vector<16x32xf32>
    %105 = tpu.matmul %104, %90, %cst_69 {dimension_numbers = #tpu.dot_dimension_numbers<[1], [0], [0], [1], [0, 0, 1, 1], [], []>} : vector<16x16xf32>, vector<16x32xf32>, vector<16x32xf32> -> vector<16x32xf32>
    %106 = tpu.concatenate %90, %102, %105, %90, %102, %105, %90, %102, %105, %90, %102, %105 in 1 : vector<16x32xf32>, vector<16x32xf32>, vector<16x32xf32>, vector<16x32xf32>, vector<16x32xf32>, vector<16x32xf32>, vector<16x32xf32>, vector<16x32xf32>, vector<16x32xf32>, vector<16x32xf32>, vector<16x32xf32>, vector<16x32xf32> -> vector<16x384xf32>
    %107 = arith.mulf %97, %106 : vector<16x384xf32>
    %cst_70 = arith.constant dense<0.000000e+00> : vector<16x64xf32>
    %108 = tpu.matmul %107, %0, %cst_70 {dimension_numbers = #tpu.dot_dimension_numbers<[1], [0], [0], [1], [0, 0, 1, 1], [], []>} : vector<16x384xf32>, vector<384x64xf32>, vector<16x64xf32> -> vector<16x64xf32>
    %109 = arith.addf %99, %108 : vector<16x64xf32>
    %110 = arith.negf %109 : vector<16x64xf32>
    %111 = math.exp %110 : vector<16x64xf32>
    %cst_71 = arith.constant 1.000000e+00 : f32
    %112 = vector.broadcast %cst_71 : f32 to vector<16x64xf32>
    %113 = arith.addf %112, %111 : vector<16x64xf32>
    %114 = arith.divf %112, %113 : vector<16x64xf32>
    %115 = vector.extract_strided_slice %114 {offsets = [0, 0], sizes = [16, 32], strides = [1, 1]} : vector<16x64xf32> to vector<16x32xf32>
    %116 = vector.extract_strided_slice %114 {offsets = [0, 32], sizes = [16, 32], strides = [1, 1]} : vector<16x64xf32> to vector<16x32xf32>
    %c0_72 = arith.constant 0 : index
    %c2_73 = arith.constant 2 : index
    %c0_74 = arith.constant 0 : index
    %c0_75 = arith.constant 0 : index
    %117 = vector.load %arg2[%c0_72, %c2_73, %c0_74, %c0_75] : memref<1x8x16x32xf32, #tpu.memory_space<vmem>>, vector<1x1x16x32xf32>
    %118 = vector.shape_cast %117 : vector<1x1x16x32xf32> to vector<16x32xf32>
    %119 = arith.mulf %115, %90 : vector<16x32xf32>
    %120 = vector.extract_strided_slice %95 {offsets = [0, 0, 0], sizes = [1, 16, 16], strides = [1, 1, 1]} : vector<2x16x16xf32> to vector<1x16x16xf32>
    %121 = vector.shape_cast %120 : vector<1x16x16xf32> to vector<16x16xf32>
    %cst_76 = arith.constant dense<0.000000e+00> : vector<16x32xf32>
    %122 = tpu.matmul %121, %119, %cst_76 {dimension_numbers = #tpu.dot_dimension_numbers<[1], [0], [0], [1], [0, 0, 1, 1], [], []>} : vector<16x16xf32>, vector<16x32xf32>, vector<16x32xf32> -> vector<16x32xf32>
    %123 = vector.extract_strided_slice %95 {offsets = [1, 0, 0], sizes = [1, 16, 16], strides = [1, 1, 1]} : vector<2x16x16xf32> to vector<1x16x16xf32>
    %124 = vector.shape_cast %123 : vector<1x16x16xf32> to vector<16x16xf32>
    %cst_77 = arith.constant dense<0.000000e+00> : vector<16x32xf32>
    %125 = tpu.matmul %124, %119, %cst_77 {dimension_numbers = #tpu.dot_dimension_numbers<[1], [0], [0], [1], [0, 0, 1, 1], [], []>} : vector<16x16xf32>, vector<16x32xf32>, vector<16x32xf32> -> vector<16x32xf32>
    %126 = tpu.concatenate %119, %122, %125, %119, %122, %125, %119, %122, %125, %119, %122, %125 in 1 : vector<16x32xf32>, vector<16x32xf32>, vector<16x32xf32>, vector<16x32xf32>, vector<16x32xf32>, vector<16x32xf32>, vector<16x32xf32>, vector<16x32xf32>, vector<16x32xf32>, vector<16x32xf32>, vector<16x32xf32>, vector<16x32xf32> -> vector<16x384xf32>
    %127 = arith.mulf %97, %126 : vector<16x384xf32>
    %cst_78 = arith.constant dense<0.000000e+00> : vector<16x32xf32>
    %128 = tpu.matmul %127, %1, %cst_78 {dimension_numbers = #tpu.dot_dimension_numbers<[1], [0], [0], [1], [0, 0, 1, 1], [], []>} : vector<16x384xf32>, vector<384x32xf32>, vector<16x32xf32> -> vector<16x32xf32>
    %129 = arith.addf %118, %128 : vector<16x32xf32>
    %130 = math.tanh %129 : vector<16x32xf32>
    %131 = arith.mulf %116, %90 : vector<16x32xf32>
    %cst_79 = arith.constant 1.000000e+00 : f32
    %132 = vector.broadcast %cst_79 : f32 to vector<16x32xf32>
    %133 = arith.subf %132, %116 : vector<16x32xf32>
    %134 = arith.mulf %133, %130 : vector<16x32xf32>
    %135 = arith.addf %131, %134 : vector<16x32xf32>
    %c0_80 = arith.constant 0 : index
    %c2_81 = arith.constant 2 : index
    %c0_82 = arith.constant 0 : index
    %c0_83 = arith.constant 0 : index
    %136 = vector.load %arg8[%c0_80, %c2_81, %c0_82, %c0_83] : memref<1x8x16x32xf32, #tpu.memory_space<vmem>>, vector<1x1x16x32xf32>
    %137 = vector.shape_cast %136 : vector<1x1x16x32xf32> to vector<16x32xf32>
    %138 = vector.shape_cast %135 : vector<16x32xf32> to vector<1x1x16x32xf32>
    tpu.vector_store %arg8[%c0_80, %c2_81, %c0_82, %c0_83], %138 {strides = array<i32>} : memref<1x8x16x32xf32, #tpu.memory_space<vmem>>, vector<1x1x16x32xf32>,
    %c3 = arith.constant 3 : index
    %c0_84 = arith.constant 0 : index
    %c0_85 = arith.constant 0 : index
    %c0_86 = arith.constant 0 : index
    %139 = vector.load %arg4[%c3, %c0_84, %c0_85, %c0_86] : memref<8x2x16x16xf32, #tpu.memory_space<vmem>>, vector<1x2x16x16xf32>
    %140 = vector.shape_cast %139 : vector<1x2x16x16xf32> to vector<2x16x16xf32>
    %c3_87 = arith.constant 3 : index
    %c0_88 = arith.constant 0 : index
    %c0_89 = arith.constant 0 : index
    %141 = vector.load %arg5[%c3_87, %c0_88, %c0_89] : memref<8x16x384xf32, #tpu.memory_space<vmem>>, vector<1x16x384xf32>
    %142 = vector.shape_cast %141 : vector<1x16x384xf32> to vector<16x384xf32>
    %c0_90 = arith.constant 0 : index
    %c3_91 = arith.constant 3 : index
    %c0_92 = arith.constant 0 : index
    %c0_93 = arith.constant 0 : index
    %143 = vector.load %arg1[%c0_90, %c3_91, %c0_92, %c0_93] : memref<1x8x16x64xf32, #tpu.memory_space<vmem>>, vector<1x1x16x64xf32>
    %144 = vector.shape_cast %143 : vector<1x1x16x64xf32> to vector<16x64xf32>
    %145 = vector.extract_strided_slice %140 {offsets = [0, 0, 0], sizes = [1, 16, 16], strides = [1, 1, 1]} : vector<2x16x16xf32> to vector<1x16x16xf32>
    %146 = vector.shape_cast %145 : vector<1x16x16xf32> to vector<16x16xf32>
    %cst_94 = arith.constant dense<0.000000e+00> : vector<16x32xf32>
    %147 = tpu.matmul %146, %135, %cst_94 {dimension_numbers = #tpu.dot_dimension_numbers<[1], [0], [0], [1], [0, 0, 1, 1], [], []>} : vector<16x16xf32>, vector<16x32xf32>, vector<16x32xf32> -> vector<16x32xf32>
    %148 = vector.extract_strided_slice %140 {offsets = [1, 0, 0], sizes = [1, 16, 16], strides = [1, 1, 1]} : vector<2x16x16xf32> to vector<1x16x16xf32>
    %149 = vector.shape_cast %148 : vector<1x16x16xf32> to vector<16x16xf32>
    %cst_95 = arith.constant dense<0.000000e+00> : vector<16x32xf32>
    %150 = tpu.matmul %149, %135, %cst_95 {dimension_numbers = #tpu.dot_dimension_numbers<[1], [0], [0], [1], [0, 0, 1, 1], [], []>} : vector<16x16xf32>, vector<16x32xf32>, vector<16x32xf32> -> vector<16x32xf32>
    %151 = tpu.concatenate %135, %147, %150, %135, %147, %150, %135, %147, %150, %135, %147, %150 in 1 : vector<16x32xf32>, vector<16x32xf32>, vector<16x32xf32>, vector<16x32xf32>, vector<16x32xf32>, vector<16x32xf32>, vector<16x32xf32>, vector<16x32xf32>, vector<16x32xf32>, vector<16x32xf32>, vector<16x32xf32>, vector<16x32xf32> -> vector<16x384xf32>
    %152 = arith.mulf %142, %151 : vector<16x384xf32>
    %cst_96 = arith.constant dense<0.000000e+00> : vector<16x64xf32>
    %153 = tpu.matmul %152, %0, %cst_96 {dimension_numbers = #tpu.dot_dimension_numbers<[1], [0], [0], [1], [0, 0, 1, 1], [], []>} : vector<16x384xf32>, vector<384x64xf32>, vector<16x64xf32> -> vector<16x64xf32>
    %154 = arith.addf %144, %153 : vector<16x64xf32>
    %155 = arith.negf %154 : vector<16x64xf32>
    %156 = math.exp %155 : vector<16x64xf32>
    %cst_97 = arith.constant 1.000000e+00 : f32
    %157 = vector.broadcast %cst_97 : f32 to vector<16x64xf32>
    %158 = arith.addf %157, %156 : vector<16x64xf32>
    %159 = arith.divf %157, %158 : vector<16x64xf32>
    %160 = vector.extract_strided_slice %159 {offsets = [0, 0], sizes = [16, 32], strides = [1, 1]} : vector<16x64xf32> to vector<16x32xf32>
    %161 = vector.extract_strided_slice %159 {offsets = [0, 32], sizes = [16, 32], strides = [1, 1]} : vector<16x64xf32> to vector<16x32xf32>
    %c0_98 = arith.constant 0 : index
    %c3_99 = arith.constant 3 : index
    %c0_100 = arith.constant 0 : index
    %c0_101 = arith.constant 0 : index
    %162 = vector.load %arg2[%c0_98, %c3_99, %c0_100, %c0_101] : memref<1x8x16x32xf32, #tpu.memory_space<vmem>>, vector<1x1x16x32xf32>
    %163 = vector.shape_cast %162 : vector<1x1x16x32xf32> to vector<16x32xf32>
    %164 = arith.mulf %160, %135 : vector<16x32xf32>
    %165 = vector.extract_strided_slice %140 {offsets = [0, 0, 0], sizes = [1, 16, 16], strides = [1, 1, 1]} : vector<2x16x16xf32> to vector<1x16x16xf32>
    %166 = vector.shape_cast %165 : vector<1x16x16xf32> to vector<16x16xf32>
    %cst_102 = arith.constant dense<0.000000e+00> : vector<16x32xf32>
    %167 = tpu.matmul %166, %164, %cst_102 {dimension_numbers = #tpu.dot_dimension_numbers<[1], [0], [0], [1], [0, 0, 1, 1], [], []>} : vector<16x16xf32>, vector<16x32xf32>, vector<16x32xf32> -> vector<16x32xf32>
    %168 = vector.extract_strided_slice %140 {offsets = [1, 0, 0], sizes = [1, 16, 16], strides = [1, 1, 1]} : vector<2x16x16xf32> to vector<1x16x16xf32>
    %169 = vector.shape_cast %168 : vector<1x16x16xf32> to vector<16x16xf32>
    %cst_103 = arith.constant dense<0.000000e+00> : vector<16x32xf32>
    %170 = tpu.matmul %169, %164, %cst_103 {dimension_numbers = #tpu.dot_dimension_numbers<[1], [0], [0], [1], [0, 0, 1, 1], [], []>} : vector<16x16xf32>, vector<16x32xf32>, vector<16x32xf32> -> vector<16x32xf32>
    %171 = tpu.concatenate %164, %167, %170, %164, %167, %170, %164, %167, %170, %164, %167, %170 in 1 : vector<16x32xf32>, vector<16x32xf32>, vector<16x32xf32>, vector<16x32xf32>, vector<16x32xf32>, vector<16x32xf32>, vector<16x32xf32>, vector<16x32xf32>, vector<16x32xf32>, vector<16x32xf32>, vector<16x32xf32>, vector<16x32xf32> -> vector<16x384xf32>
    %172 = arith.mulf %142, %171 : vector<16x384xf32>
    %cst_104 = arith.constant dense<0.000000e+00> : vector<16x32xf32>
    %173 = tpu.matmul %172, %1, %cst_104 {dimension_numbers = #tpu.dot_dimension_numbers<[1], [0], [0], [1], [0, 0, 1, 1], [], []>} : vector<16x384xf32>, vector<384x32xf32>, vector<16x32xf32> -> vector<16x32xf32>
    %174 = arith.addf %163, %173 : vector<16x32xf32>
    %175 = math.tanh %174 : vector<16x32xf32>
    %176 = arith.mulf %161, %135 : vector<16x32xf32>
    %cst_105 = arith.constant 1.000000e+00 : f32
    %177 = vector.broadcast %cst_105 : f32 to vector<16x32xf32>
    %178 = arith.subf %177, %161 : vector<16x32xf32>
    %179 = arith.mulf %178, %175 : vector<16x32xf32>
    %180 = arith.addf %176, %179 : vector<16x32xf32>
    %c0_106 = arith.constant 0 : index
    %c3_107 = arith.constant 3 : index
    %c0_108 = arith.constant 0 : index
    %c0_109 = arith.constant 0 : index
    %181 = vector.load %arg8[%c0_106, %c3_107, %c0_108, %c0_109] : memref<1x8x16x32xf32, #tpu.memory_space<vmem>>, vector<1x1x16x32xf32>
    %182 = vector.shape_cast %181 : vector<1x1x16x32xf32> to vector<16x32xf32>
    %183 = vector.shape_cast %180 : vector<16x32xf32> to vector<1x1x16x32xf32>
    tpu.vector_store %arg8[%c0_106, %c3_107, %c0_108, %c0_109], %183 {strides = array<i32>} : memref<1x8x16x32xf32, #tpu.memory_space<vmem>>, vector<1x1x16x32xf32>,
    %c4 = arith.constant 4 : index
    %c0_110 = arith.constant 0 : index
    %c0_111 = arith.constant 0 : index
    %c0_112 = arith.constant 0 : index
    %184 = vector.load %arg4[%c4, %c0_110, %c0_111, %c0_112] : memref<8x2x16x16xf32, #tpu.memory_space<vmem>>, vector<1x2x16x16xf32>
    %185 = vector.shape_cast %184 : vector<1x2x16x16xf32> to vector<2x16x16xf32>
    %c4_113 = arith.constant 4 : index
    %c0_114 = arith.constant 0 : index
    %c0_115 = arith.constant 0 : index
    %186 = vector.load %arg5[%c4_113, %c0_114, %c0_115] : memref<8x16x384xf32, #tpu.memory_space<vmem>>, vector<1x16x384xf32>
    %187 = vector.shape_cast %186 : vector<1x16x384xf32> to vector<16x384xf32>
    %c0_116 = arith.constant 0 : index
    %c4_117 = arith.constant 4 : index
    %c0_118 = arith.constant 0 : index
    %c0_119 = arith.constant 0 : index
    %188 = vector.load %arg1[%c0_116, %c4_117, %c0_118, %c0_119] : memref<1x8x16x64xf32, #tpu.memory_space<vmem>>, vector<1x1x16x64xf32>
    %189 = vector.shape_cast %188 : vector<1x1x16x64xf32> to vector<16x64xf32>
    %190 = vector.extract_strided_slice %185 {offsets = [0, 0, 0], sizes = [1, 16, 16], strides = [1, 1, 1]} : vector<2x16x16xf32> to vector<1x16x16xf32>
    %191 = vector.shape_cast %190 : vector<1x16x16xf32> to vector<16x16xf32>
    %cst_120 = arith.constant dense<0.000000e+00> : vector<16x32xf32>
    %192 = tpu.matmul %191, %180, %cst_120 {dimension_numbers = #tpu.dot_dimension_numbers<[1], [0], [0], [1], [0, 0, 1, 1], [], []>} : vector<16x16xf32>, vector<16x32xf32>, vector<16x32xf32> -> vector<16x32xf32>
    %193 = vector.extract_strided_slice %185 {offsets = [1, 0, 0], sizes = [1, 16, 16], strides = [1, 1, 1]} : vector<2x16x16xf32> to vector<1x16x16xf32>
    %194 = vector.shape_cast %193 : vector<1x16x16xf32> to vector<16x16xf32>
    %cst_121 = arith.constant dense<0.000000e+00> : vector<16x32xf32>
    %195 = tpu.matmul %194, %180, %cst_121 {dimension_numbers = #tpu.dot_dimension_numbers<[1], [0], [0], [1], [0, 0, 1, 1], [], []>} : vector<16x16xf32>, vector<16x32xf32>, vector<16x32xf32> -> vector<16x32xf32>
    %196 = tpu.concatenate %180, %192, %195, %180, %192, %195, %180, %192, %195, %180, %192, %195 in 1 : vector<16x32xf32>, vector<16x32xf32>, vector<16x32xf32>, vector<16x32xf32>, vector<16x32xf32>, vector<16x32xf32>, vector<16x32xf32>, vector<16x32xf32>, vector<16x32xf32>, vector<16x32xf32>, vector<16x32xf32>, vector<16x32xf32> -> vector<16x384xf32>
    %197 = arith.mulf %187, %196 : vector<16x384xf32>
    %cst_122 = arith.constant dense<0.000000e+00> : vector<16x64xf32>
    %198 = tpu.matmul %197, %0, %cst_122 {dimension_numbers = #tpu.dot_dimension_numbers<[1], [0], [0], [1], [0, 0, 1, 1], [], []>} : vector<16x384xf32>, vector<384x64xf32>, vector<16x64xf32> -> vector<16x64xf32>
    %199 = arith.addf %189, %198 : vector<16x64xf32>
    %200 = arith.negf %199 : vector<16x64xf32>
    %201 = math.exp %200 : vector<16x64xf32>
    %cst_123 = arith.constant 1.000000e+00 : f32
    %202 = vector.broadcast %cst_123 : f32 to vector<16x64xf32>
    %203 = arith.addf %202, %201 : vector<16x64xf32>
    %204 = arith.divf %202, %203 : vector<16x64xf32>
    %205 = vector.extract_strided_slice %204 {offsets = [0, 0], sizes = [16, 32], strides = [1, 1]} : vector<16x64xf32> to vector<16x32xf32>
    %206 = vector.extract_strided_slice %204 {offsets = [0, 32], sizes = [16, 32], strides = [1, 1]} : vector<16x64xf32> to vector<16x32xf32>
    %c0_124 = arith.constant 0 : index
    %c4_125 = arith.constant 4 : index
    %c0_126 = arith.constant 0 : index
    %c0_127 = arith.constant 0 : index
    %207 = vector.load %arg2[%c0_124, %c4_125, %c0_126, %c0_127] : memref<1x8x16x32xf32, #tpu.memory_space<vmem>>, vector<1x1x16x32xf32>
    %208 = vector.shape_cast %207 : vector<1x1x16x32xf32> to vector<16x32xf32>
    %209 = arith.mulf %205, %180 : vector<16x32xf32>
    %210 = vector.extract_strided_slice %185 {offsets = [0, 0, 0], sizes = [1, 16, 16], strides = [1, 1, 1]} : vector<2x16x16xf32> to vector<1x16x16xf32>
    %211 = vector.shape_cast %210 : vector<1x16x16xf32> to vector<16x16xf32>
    %cst_128 = arith.constant dense<0.000000e+00> : vector<16x32xf32>
    %212 = tpu.matmul %211, %209, %cst_128 {dimension_numbers = #tpu.dot_dimension_numbers<[1], [0], [0], [1], [0, 0, 1, 1], [], []>} : vector<16x16xf32>, vector<16x32xf32>, vector<16x32xf32> -> vector<16x32xf32>
    %213 = vector.extract_strided_slice %185 {offsets = [1, 0, 0], sizes = [1, 16, 16], strides = [1, 1, 1]} : vector<2x16x16xf32> to vector<1x16x16xf32>
    %214 = vector.shape_cast %213 : vector<1x16x16xf32> to vector<16x16xf32>
    %cst_129 = arith.constant dense<0.000000e+00> : vector<16x32xf32>
    %215 = tpu.matmul %214, %209, %cst_129 {dimension_numbers = #tpu.dot_dimension_numbers<[1], [0], [0], [1], [0, 0, 1, 1], [], []>} : vector<16x16xf32>, vector<16x32xf32>, vector<16x32xf32> -> vector<16x32xf32>
    %216 = tpu.concatenate %209, %212, %215, %209, %212, %215, %209, %212, %215, %209, %212, %215 in 1 : vector<16x32xf32>, vector<16x32xf32>, vector<16x32xf32>, vector<16x32xf32>, vector<16x32xf32>, vector<16x32xf32>, vector<16x32xf32>, vector<16x32xf32>, vector<16x32xf32>, vector<16x32xf32>, vector<16x32xf32>, vector<16x32xf32> -> vector<16x384xf32>
    %217 = arith.mulf %187, %216 : vector<16x384xf32>
    %cst_130 = arith.constant dense<0.000000e+00> : vector<16x32xf32>
    %218 = tpu.matmul %217, %1, %cst_130 {dimension_numbers = #tpu.dot_dimension_numbers<[1], [0], [0], [1], [0, 0, 1, 1], [], []>} : vector<16x384xf32>, vector<384x32xf32>, vector<16x32xf32> -> vector<16x32xf32>
    %219 = arith.addf %208, %218 : vector<16x32xf32>
    %220 = math.tanh %219 : vector<16x32xf32>
    %221 = arith.mulf %206, %180 : vector<16x32xf32>
    %cst_131 = arith.constant 1.000000e+00 : f32
    %222 = vector.broadcast %cst_131 : f32 to vector<16x32xf32>
    %223 = arith.subf %222, %206 : vector<16x32xf32>
    %224 = arith.mulf %223, %220 : vector<16x32xf32>
    %225 = arith.addf %221, %224 : vector<16x32xf32>
    %c0_132 = arith.constant 0 : index
    %c4_133 = arith.constant 4 : index
    %c0_134 = arith.constant 0 : index
    %c0_135 = arith.constant 0 : index
    %226 = vector.load %arg8[%c0_132, %c4_133, %c0_134, %c0_135] : memref<1x8x16x32xf32, #tpu.memory_space<vmem>>, vector<1x1x16x32xf32>
    %227 = vector.shape_cast %226 : vector<1x1x16x32xf32> to vector<16x32xf32>
    %228 = vector.shape_cast %225 : vector<16x32xf32> to vector<1x1x16x32xf32>
    tpu.vector_store %arg8[%c0_132, %c4_133, %c0_134, %c0_135], %228 {strides = array<i32>} : memref<1x8x16x32xf32, #tpu.memory_space<vmem>>, vector<1x1x16x32xf32>,
    %c5 = arith.constant 5 : index
    %c0_136 = arith.constant 0 : index
    %c0_137 = arith.constant 0 : index
    %c0_138 = arith.constant 0 : index
    %229 = vector.load %arg4[%c5, %c0_136, %c0_137, %c0_138] : memref<8x2x16x16xf32, #tpu.memory_space<vmem>>, vector<1x2x16x16xf32>
    %230 = vector.shape_cast %229 : vector<1x2x16x16xf32> to vector<2x16x16xf32>
    %c5_139 = arith.constant 5 : index
    %c0_140 = arith.constant 0 : index
    %c0_141 = arith.constant 0 : index
    %231 = vector.load %arg5[%c5_139, %c0_140, %c0_141] : memref<8x16x384xf32, #tpu.memory_space<vmem>>, vector<1x16x384xf32>
    %232 = vector.shape_cast %231 : vector<1x16x384xf32> to vector<16x384xf32>
    %c0_142 = arith.constant 0 : index
    %c5_143 = arith.constant 5 : index
    %c0_144 = arith.constant 0 : index
    %c0_145 = arith.constant 0 : index
    %233 = vector.load %arg1[%c0_142, %c5_143, %c0_144, %c0_145] : memref<1x8x16x64xf32, #tpu.memory_space<vmem>>, vector<1x1x16x64xf32>
    %234 = vector.shape_cast %233 : vector<1x1x16x64xf32> to vector<16x64xf32>
    %235 = vector.extract_strided_slice %230 {offsets = [0, 0, 0], sizes = [1, 16, 16], strides = [1, 1, 1]} : vector<2x16x16xf32> to vector<1x16x16xf32>
    %236 = vector.shape_cast %235 : vector<1x16x16xf32> to vector<16x16xf32>
    %cst_146 = arith.constant dense<0.000000e+00> : vector<16x32xf32>
    %237 = tpu.matmul %236, %225, %cst_146 {dimension_numbers = #tpu.dot_dimension_numbers<[1], [0], [0], [1], [0, 0, 1, 1], [], []>} : vector<16x16xf32>, vector<16x32xf32>, vector<16x32xf32> -> vector<16x32xf32>
    %238 = vector.extract_strided_slice %230 {offsets = [1, 0, 0], sizes = [1, 16, 16], strides = [1, 1, 1]} : vector<2x16x16xf32> to vector<1x16x16xf32>
    %239 = vector.shape_cast %238 : vector<1x16x16xf32> to vector<16x16xf32>
    %cst_147 = arith.constant dense<0.000000e+00> : vector<16x32xf32>
    %240 = tpu.matmul %239, %225, %cst_147 {dimension_numbers = #tpu.dot_dimension_numbers<[1], [0], [0], [1], [0, 0, 1, 1], [], []>} : vector<16x16xf32>, vector<16x32xf32>, vector<16x32xf32> -> vector<16x32xf32>
    %241 = tpu.concatenate %225, %237, %240, %225, %237, %240, %225, %237, %240, %225, %237, %240 in 1 : vector<16x32xf32>, vector<16x32xf32>, vector<16x32xf32>, vector<16x32xf32>, vector<16x32xf32>, vector<16x32xf32>, vector<16x32xf32>, vector<16x32xf32>, vector<16x32xf32>, vector<16x32xf32>, vector<16x32xf32>, vector<16x32xf32> -> vector<16x384xf32>
    %242 = arith.mulf %232, %241 : vector<16x384xf32>
    %cst_148 = arith.constant dense<0.000000e+00> : vector<16x64xf32>
    %243 = tpu.matmul %242, %0, %cst_148 {dimension_numbers = #tpu.dot_dimension_numbers<[1], [0], [0], [1], [0, 0, 1, 1], [], []>} : vector<16x384xf32>, vector<384x64xf32>, vector<16x64xf32> -> vector<16x64xf32>
    %244 = arith.addf %234, %243 : vector<16x64xf32>
    %245 = arith.negf %244 : vector<16x64xf32>
    %246 = math.exp %245 : vector<16x64xf32>
    %cst_149 = arith.constant 1.000000e+00 : f32
    %247 = vector.broadcast %cst_149 : f32 to vector<16x64xf32>
    %248 = arith.addf %247, %246 : vector<16x64xf32>
    %249 = arith.divf %247, %248 : vector<16x64xf32>
    %250 = vector.extract_strided_slice %249 {offsets = [0, 0], sizes = [16, 32], strides = [1, 1]} : vector<16x64xf32> to vector<16x32xf32>
    %251 = vector.extract_strided_slice %249 {offsets = [0, 32], sizes = [16, 32], strides = [1, 1]} : vector<16x64xf32> to vector<16x32xf32>
    %c0_150 = arith.constant 0 : index
    %c5_151 = arith.constant 5 : index
    %c0_152 = arith.constant 0 : index
    %c0_153 = arith.constant 0 : index
    %252 = vector.load %arg2[%c0_150, %c5_151, %c0_152, %c0_153] : memref<1x8x16x32xf32, #tpu.memory_space<vmem>>, vector<1x1x16x32xf32>
    %253 = vector.shape_cast %252 : vector<1x1x16x32xf32> to vector<16x32xf32>
    %254 = arith.mulf %250, %225 : vector<16x32xf32>
    %255 = vector.extract_strided_slice %230 {offsets = [0, 0, 0], sizes = [1, 16, 16], strides = [1, 1, 1]} : vector<2x16x16xf32> to vector<1x16x16xf32>
    %256 = vector.shape_cast %255 : vector<1x16x16xf32> to vector<16x16xf32>
    %cst_154 = arith.constant dense<0.000000e+00> : vector<16x32xf32>
    %257 = tpu.matmul %256, %254, %cst_154 {dimension_numbers = #tpu.dot_dimension_numbers<[1], [0], [0], [1], [0, 0, 1, 1], [], []>} : vector<16x16xf32>, vector<16x32xf32>, vector<16x32xf32> -> vector<16x32xf32>
    %258 = vector.extract_strided_slice %230 {offsets = [1, 0, 0], sizes = [1, 16, 16], strides = [1, 1, 1]} : vector<2x16x16xf32> to vector<1x16x16xf32>
    %259 = vector.shape_cast %258 : vector<1x16x16xf32> to vector<16x16xf32>
    %cst_155 = arith.constant dense<0.000000e+00> : vector<16x32xf32>
    %260 = tpu.matmul %259, %254, %cst_155 {dimension_numbers = #tpu.dot_dimension_numbers<[1], [0], [0], [1], [0, 0, 1, 1], [], []>} : vector<16x16xf32>, vector<16x32xf32>, vector<16x32xf32> -> vector<16x32xf32>
    %261 = tpu.concatenate %254, %257, %260, %254, %257, %260, %254, %257, %260, %254, %257, %260 in 1 : vector<16x32xf32>, vector<16x32xf32>, vector<16x32xf32>, vector<16x32xf32>, vector<16x32xf32>, vector<16x32xf32>, vector<16x32xf32>, vector<16x32xf32>, vector<16x32xf32>, vector<16x32xf32>, vector<16x32xf32>, vector<16x32xf32> -> vector<16x384xf32>
    %262 = arith.mulf %232, %261 : vector<16x384xf32>
    %cst_156 = arith.constant dense<0.000000e+00> : vector<16x32xf32>
    %263 = tpu.matmul %262, %1, %cst_156 {dimension_numbers = #tpu.dot_dimension_numbers<[1], [0], [0], [1], [0, 0, 1, 1], [], []>} : vector<16x384xf32>, vector<384x32xf32>, vector<16x32xf32> -> vector<16x32xf32>
    %264 = arith.addf %253, %263 : vector<16x32xf32>
    %265 = math.tanh %264 : vector<16x32xf32>
    %266 = arith.mulf %251, %225 : vector<16x32xf32>
    %cst_157 = arith.constant 1.000000e+00 : f32
    %267 = vector.broadcast %cst_157 : f32 to vector<16x32xf32>
    %268 = arith.subf %267, %251 : vector<16x32xf32>
    %269 = arith.mulf %268, %265 : vector<16x32xf32>
    %270 = arith.addf %266, %269 : vector<16x32xf32>
    %c0_158 = arith.constant 0 : index
    %c5_159 = arith.constant 5 : index
    %c0_160 = arith.constant 0 : index
    %c0_161 = arith.constant 0 : index
    %271 = vector.load %arg8[%c0_158, %c5_159, %c0_160, %c0_161] : memref<1x8x16x32xf32, #tpu.memory_space<vmem>>, vector<1x1x16x32xf32>
    %272 = vector.shape_cast %271 : vector<1x1x16x32xf32> to vector<16x32xf32>
    %273 = vector.shape_cast %270 : vector<16x32xf32> to vector<1x1x16x32xf32>
    tpu.vector_store %arg8[%c0_158, %c5_159, %c0_160, %c0_161], %273 {strides = array<i32>} : memref<1x8x16x32xf32, #tpu.memory_space<vmem>>, vector<1x1x16x32xf32>,
    %c6 = arith.constant 6 : index
    %c0_162 = arith.constant 0 : index
    %c0_163 = arith.constant 0 : index
    %c0_164 = arith.constant 0 : index
    %274 = vector.load %arg4[%c6, %c0_162, %c0_163, %c0_164] : memref<8x2x16x16xf32, #tpu.memory_space<vmem>>, vector<1x2x16x16xf32>
    %275 = vector.shape_cast %274 : vector<1x2x16x16xf32> to vector<2x16x16xf32>
    %c6_165 = arith.constant 6 : index
    %c0_166 = arith.constant 0 : index
    %c0_167 = arith.constant 0 : index
    %276 = vector.load %arg5[%c6_165, %c0_166, %c0_167] : memref<8x16x384xf32, #tpu.memory_space<vmem>>, vector<1x16x384xf32>
    %277 = vector.shape_cast %276 : vector<1x16x384xf32> to vector<16x384xf32>
    %c0_168 = arith.constant 0 : index
    %c6_169 = arith.constant 6 : index
    %c0_170 = arith.constant 0 : index
    %c0_171 = arith.constant 0 : index
    %278 = vector.load %arg1[%c0_168, %c6_169, %c0_170, %c0_171] : memref<1x8x16x64xf32, #tpu.memory_space<vmem>>, vector<1x1x16x64xf32>
    %279 = vector.shape_cast %278 : vector<1x1x16x64xf32> to vector<16x64xf32>
    %280 = vector.extract_strided_slice %275 {offsets = [0, 0, 0], sizes = [1, 16, 16], strides = [1, 1, 1]} : vector<2x16x16xf32> to vector<1x16x16xf32>
    %281 = vector.shape_cast %280 : vector<1x16x16xf32> to vector<16x16xf32>
    %cst_172 = arith.constant dense<0.000000e+00> : vector<16x32xf32>
    %282 = tpu.matmul %281, %270, %cst_172 {dimension_numbers = #tpu.dot_dimension_numbers<[1], [0], [0], [1], [0, 0, 1, 1], [], []>} : vector<16x16xf32>, vector<16x32xf32>, vector<16x32xf32> -> vector<16x32xf32>
    %283 = vector.extract_strided_slice %275 {offsets = [1, 0, 0], sizes = [1, 16, 16], strides = [1, 1, 1]} : vector<2x16x16xf32> to vector<1x16x16xf32>
    %284 = vector.shape_cast %283 : vector<1x16x16xf32> to vector<16x16xf32>
    %cst_173 = arith.constant dense<0.000000e+00> : vector<16x32xf32>
    %285 = tpu.matmul %284, %270, %cst_173 {dimension_numbers = #tpu.dot_dimension_numbers<[1], [0], [0], [1], [0, 0, 1, 1], [], []>} : vector<16x16xf32>, vector<16x32xf32>, vector<16x32xf32> -> vector<16x32xf32>
    %286 = tpu.concatenate %270, %282, %285, %270, %282, %285, %270, %282, %285, %270, %282, %285 in 1 : vector<16x32xf32>, vector<16x32xf32>, vector<16x32xf32>, vector<16x32xf32>, vector<16x32xf32>, vector<16x32xf32>, vector<16x32xf32>, vector<16x32xf32>, vector<16x32xf32>, vector<16x32xf32>, vector<16x32xf32>, vector<16x32xf32> -> vector<16x384xf32>
    %287 = arith.mulf %277, %286 : vector<16x384xf32>
    %cst_174 = arith.constant dense<0.000000e+00> : vector<16x64xf32>
    %288 = tpu.matmul %287, %0, %cst_174 {dimension_numbers = #tpu.dot_dimension_numbers<[1], [0], [0], [1], [0, 0, 1, 1], [], []>} : vector<16x384xf32>, vector<384x64xf32>, vector<16x64xf32> -> vector<16x64xf32>
    %289 = arith.addf %279, %288 : vector<16x64xf32>
    %290 = arith.negf %289 : vector<16x64xf32>
    %291 = math.exp %290 : vector<16x64xf32>
    %cst_175 = arith.constant 1.000000e+00 : f32
    %292 = vector.broadcast %cst_175 : f32 to vector<16x64xf32>
    %293 = arith.addf %292, %291 : vector<16x64xf32>
    %294 = arith.divf %292, %293 : vector<16x64xf32>
    %295 = vector.extract_strided_slice %294 {offsets = [0, 0], sizes = [16, 32], strides = [1, 1]} : vector<16x64xf32> to vector<16x32xf32>
    %296 = vector.extract_strided_slice %294 {offsets = [0, 32], sizes = [16, 32], strides = [1, 1]} : vector<16x64xf32> to vector<16x32xf32>
    %c0_176 = arith.constant 0 : index
    %c6_177 = arith.constant 6 : index
    %c0_178 = arith.constant 0 : index
    %c0_179 = arith.constant 0 : index
    %297 = vector.load %arg2[%c0_176, %c6_177, %c0_178, %c0_179] : memref<1x8x16x32xf32, #tpu.memory_space<vmem>>, vector<1x1x16x32xf32>
    %298 = vector.shape_cast %297 : vector<1x1x16x32xf32> to vector<16x32xf32>
    %299 = arith.mulf %295, %270 : vector<16x32xf32>
    %300 = vector.extract_strided_slice %275 {offsets = [0, 0, 0], sizes = [1, 16, 16], strides = [1, 1, 1]} : vector<2x16x16xf32> to vector<1x16x16xf32>
    %301 = vector.shape_cast %300 : vector<1x16x16xf32> to vector<16x16xf32>
    %cst_180 = arith.constant dense<0.000000e+00> : vector<16x32xf32>
    %302 = tpu.matmul %301, %299, %cst_180 {dimension_numbers = #tpu.dot_dimension_numbers<[1], [0], [0], [1], [0, 0, 1, 1], [], []>} : vector<16x16xf32>, vector<16x32xf32>, vector<16x32xf32> -> vector<16x32xf32>
    %303 = vector.extract_strided_slice %275 {offsets = [1, 0, 0], sizes = [1, 16, 16], strides = [1, 1, 1]} : vector<2x16x16xf32> to vector<1x16x16xf32>
    %304 = vector.shape_cast %303 : vector<1x16x16xf32> to vector<16x16xf32>
    %cst_181 = arith.constant dense<0.000000e+00> : vector<16x32xf32>
    %305 = tpu.matmul %304, %299, %cst_181 {dimension_numbers = #tpu.dot_dimension_numbers<[1], [0], [0], [1], [0, 0, 1, 1], [], []>} : vector<16x16xf32>, vector<16x32xf32>, vector<16x32xf32> -> vector<16x32xf32>
    %306 = tpu.concatenate %299, %302, %305, %299, %302, %305, %299, %302, %305, %299, %302, %305 in 1 : vector<16x32xf32>, vector<16x32xf32>, vector<16x32xf32>, vector<16x32xf32>, vector<16x32xf32>, vector<16x32xf32>, vector<16x32xf32>, vector<16x32xf32>, vector<16x32xf32>, vector<16x32xf32>, vector<16x32xf32>, vector<16x32xf32> -> vector<16x384xf32>
    %307 = arith.mulf %277, %306 : vector<16x384xf32>
    %cst_182 = arith.constant dense<0.000000e+00> : vector<16x32xf32>
    %308 = tpu.matmul %307, %1, %cst_182 {dimension_numbers = #tpu.dot_dimension_numbers<[1], [0], [0], [1], [0, 0, 1, 1], [], []>} : vector<16x384xf32>, vector<384x32xf32>, vector<16x32xf32> -> vector<16x32xf32>
    %309 = arith.addf %298, %308 : vector<16x32xf32>
    %310 = math.tanh %309 : vector<16x32xf32>
    %311 = arith.mulf %296, %270 : vector<16x32xf32>
    %cst_183 = arith.constant 1.000000e+00 : f32
    %312 = vector.broadcast %cst_183 : f32 to vector<16x32xf32>
    %313 = arith.subf %312, %296 : vector<16x32xf32>
    %314 = arith.mulf %313, %310 : vector<16x32xf32>
    %315 = arith.addf %311, %314 : vector<16x32xf32>
    %c0_184 = arith.constant 0 : index
    %c6_185 = arith.constant 6 : index
    %c0_186 = arith.constant 0 : index
    %c0_187 = arith.constant 0 : index
    %316 = vector.load %arg8[%c0_184, %c6_185, %c0_186, %c0_187] : memref<1x8x16x32xf32, #tpu.memory_space<vmem>>, vector<1x1x16x32xf32>
    %317 = vector.shape_cast %316 : vector<1x1x16x32xf32> to vector<16x32xf32>
    %318 = vector.shape_cast %315 : vector<16x32xf32> to vector<1x1x16x32xf32>
    tpu.vector_store %arg8[%c0_184, %c6_185, %c0_186, %c0_187], %318 {strides = array<i32>} : memref<1x8x16x32xf32, #tpu.memory_space<vmem>>, vector<1x1x16x32xf32>,
    %c7 = arith.constant 7 : index
    %c0_188 = arith.constant 0 : index
    %c0_189 = arith.constant 0 : index
    %c0_190 = arith.constant 0 : index
    %319 = vector.load %arg4[%c7, %c0_188, %c0_189, %c0_190] : memref<8x2x16x16xf32, #tpu.memory_space<vmem>>, vector<1x2x16x16xf32>
    %320 = vector.shape_cast %319 : vector<1x2x16x16xf32> to vector<2x16x16xf32>
    %c7_191 = arith.constant 7 : index
    %c0_192 = arith.constant 0 : index
    %c0_193 = arith.constant 0 : index
    %321 = vector.load %arg5[%c7_191, %c0_192, %c0_193] : memref<8x16x384xf32, #tpu.memory_space<vmem>>, vector<1x16x384xf32>
    %322 = vector.shape_cast %321 : vector<1x16x384xf32> to vector<16x384xf32>
    %c0_194 = arith.constant 0 : index
    %c7_195 = arith.constant 7 : index
    %c0_196 = arith.constant 0 : index
    %c0_197 = arith.constant 0 : index
    %323 = vector.load %arg1[%c0_194, %c7_195, %c0_196, %c0_197] : memref<1x8x16x64xf32, #tpu.memory_space<vmem>>, vector<1x1x16x64xf32>
    %324 = vector.shape_cast %323 : vector<1x1x16x64xf32> to vector<16x64xf32>
    %325 = vector.extract_strided_slice %320 {offsets = [0, 0, 0], sizes = [1, 16, 16], strides = [1, 1, 1]} : vector<2x16x16xf32> to vector<1x16x16xf32>
    %326 = vector.shape_cast %325 : vector<1x16x16xf32> to vector<16x16xf32>
    %cst_198 = arith.constant dense<0.000000e+00> : vector<16x32xf32>
    %327 = tpu.matmul %326, %315, %cst_198 {dimension_numbers = #tpu.dot_dimension_numbers<[1], [0], [0], [1], [0, 0, 1, 1], [], []>} : vector<16x16xf32>, vector<16x32xf32>, vector<16x32xf32> -> vector<16x32xf32>
    %328 = vector.extract_strided_slice %320 {offsets = [1, 0, 0], sizes = [1, 16, 16], strides = [1, 1, 1]} : vector<2x16x16xf32> to vector<1x16x16xf32>
    %329 = vector.shape_cast %328 : vector<1x16x16xf32> to vector<16x16xf32>
    %cst_199 = arith.constant dense<0.000000e+00> : vector<16x32xf32>
    %330 = tpu.matmul %329, %315, %cst_199 {dimension_numbers = #tpu.dot_dimension_numbers<[1], [0], [0], [1], [0, 0, 1, 1], [], []>} : vector<16x16xf32>, vector<16x32xf32>, vector<16x32xf32> -> vector<16x32xf32>
    %331 = tpu.concatenate %315, %327, %330, %315, %327, %330, %315, %327, %330, %315, %327, %330 in 1 : vector<16x32xf32>, vector<16x32xf32>, vector<16x32xf32>, vector<16x32xf32>, vector<16x32xf32>, vector<16x32xf32>, vector<16x32xf32>, vector<16x32xf32>, vector<16x32xf32>, vector<16x32xf32>, vector<16x32xf32>, vector<16x32xf32> -> vector<16x384xf32>
    %332 = arith.mulf %322, %331 : vector<16x384xf32>
    %cst_200 = arith.constant dense<0.000000e+00> : vector<16x64xf32>
    %333 = tpu.matmul %332, %0, %cst_200 {dimension_numbers = #tpu.dot_dimension_numbers<[1], [0], [0], [1], [0, 0, 1, 1], [], []>} : vector<16x384xf32>, vector<384x64xf32>, vector<16x64xf32> -> vector<16x64xf32>
    %334 = arith.addf %324, %333 : vector<16x64xf32>
    %335 = arith.negf %334 : vector<16x64xf32>
    %336 = math.exp %335 : vector<16x64xf32>
    %cst_201 = arith.constant 1.000000e+00 : f32
    %337 = vector.broadcast %cst_201 : f32 to vector<16x64xf32>
    %338 = arith.addf %337, %336 : vector<16x64xf32>
    %339 = arith.divf %337, %338 : vector<16x64xf32>
    %340 = vector.extract_strided_slice %339 {offsets = [0, 0], sizes = [16, 32], strides = [1, 1]} : vector<16x64xf32> to vector<16x32xf32>
    %341 = vector.extract_strided_slice %339 {offsets = [0, 32], sizes = [16, 32], strides = [1, 1]} : vector<16x64xf32> to vector<16x32xf32>
    %c0_202 = arith.constant 0 : index
    %c7_203 = arith.constant 7 : index
    %c0_204 = arith.constant 0 : index
    %c0_205 = arith.constant 0 : index
    %342 = vector.load %arg2[%c0_202, %c7_203, %c0_204, %c0_205] : memref<1x8x16x32xf32, #tpu.memory_space<vmem>>, vector<1x1x16x32xf32>
    %343 = vector.shape_cast %342 : vector<1x1x16x32xf32> to vector<16x32xf32>
    %344 = arith.mulf %340, %315 : vector<16x32xf32>
    %345 = vector.extract_strided_slice %320 {offsets = [0, 0, 0], sizes = [1, 16, 16], strides = [1, 1, 1]} : vector<2x16x16xf32> to vector<1x16x16xf32>
    %346 = vector.shape_cast %345 : vector<1x16x16xf32> to vector<16x16xf32>
    %cst_206 = arith.constant dense<0.000000e+00> : vector<16x32xf32>
    %347 = tpu.matmul %346, %344, %cst_206 {dimension_numbers = #tpu.dot_dimension_numbers<[1], [0], [0], [1], [0, 0, 1, 1], [], []>} : vector<16x16xf32>, vector<16x32xf32>, vector<16x32xf32> -> vector<16x32xf32>
    %348 = vector.extract_strided_slice %320 {offsets = [1, 0, 0], sizes = [1, 16, 16], strides = [1, 1, 1]} : vector<2x16x16xf32> to vector<1x16x16xf32>
    %349 = vector.shape_cast %348 : vector<1x16x16xf32> to vector<16x16xf32>
    %cst_207 = arith.constant dense<0.000000e+00> : vector<16x32xf32>
    %350 = tpu.matmul %349, %344, %cst_207 {dimension_numbers = #tpu.dot_dimension_numbers<[1], [0], [0], [1], [0, 0, 1, 1], [], []>} : vector<16x16xf32>, vector<16x32xf32>, vector<16x32xf32> -> vector<16x32xf32>
    %351 = tpu.concatenate %344, %347, %350, %344, %347, %350, %344, %347, %350, %344, %347, %350 in 1 : vector<16x32xf32>, vector<16x32xf32>, vector<16x32xf32>, vector<16x32xf32>, vector<16x32xf32>, vector<16x32xf32>, vector<16x32xf32>, vector<16x32xf32>, vector<16x32xf32>, vector<16x32xf32>, vector<16x32xf32>, vector<16x32xf32> -> vector<16x384xf32>
    %352 = arith.mulf %322, %351 : vector<16x384xf32>
    %cst_208 = arith.constant dense<0.000000e+00> : vector<16x32xf32>
    %353 = tpu.matmul %352, %1, %cst_208 {dimension_numbers = #tpu.dot_dimension_numbers<[1], [0], [0], [1], [0, 0, 1, 1], [], []>} : vector<16x384xf32>, vector<384x32xf32>, vector<16x32xf32> -> vector<16x32xf32>
    %354 = arith.addf %343, %353 : vector<16x32xf32>
    %355 = math.tanh %354 : vector<16x32xf32>
    %356 = arith.mulf %341, %315 : vector<16x32xf32>
    %cst_209 = arith.constant 1.000000e+00 : f32
    %357 = vector.broadcast %cst_209 : f32 to vector<16x32xf32>
    %358 = arith.subf %357, %341 : vector<16x32xf32>
    %359 = arith.mulf %358, %355 : vector<16x32xf32>
    %360 = arith.addf %356, %359 : vector<16x32xf32>
    %c0_210 = arith.constant 0 : index
    %c7_211 = arith.constant 7 : index
    %c0_212 = arith.constant 0 : index
    %c0_213 = arith.constant 0 : index
    %361 = vector.load %arg8[%c0_210, %c7_211, %c0_212, %c0_213] : memref<1x8x16x32xf32, #tpu.memory_space<vmem>>, vector<1x1x16x32xf32>
    %362 = vector.shape_cast %361 : vector<1x1x16x32xf32> to vector<16x32xf32>
    %363 = vector.shape_cast %360 : vector<16x32xf32> to vector<1x1x16x32xf32>
    tpu.vector_store %arg8[%c0_210, %c7_211, %c0_212, %c0_213], %363 {strides = array<i32>} : memref<1x8x16x32xf32, #tpu.memory_space<vmem>>, vector<1x1x16x32xf32>,
    return
  }
  func.func @transform_0(%arg0: i32) -> (i32, i32, i32, i32) {
    %c0_i32 = arith.constant 0 : i32
    %c0_i32_0 = arith.constant 0 : i32
    %c0_i32_1 = arith.constant 0 : i32
    %c0_i32_2 = arith.constant 0 : i32
    return %arg0, %c0_i32, %c0_i32_0, %c0_i32_1 : i32, i32, i32, i32
  }
  func.func @transform_1(%arg0: i32) -> (i32, i32, i32, i32) {
    %c0_i32 = arith.constant 0 : i32
    %c0_i32_0 = arith.constant 0 : i32
    %c0_i32_1 = arith.constant 0 : i32
    %c0_i32_2 = arith.constant 0 : i32
    return %arg0, %c0_i32, %c0_i32_0, %c0_i32_1 : i32, i32, i32, i32
  }
  func.func @transform_2(%arg0: i32) -> (i32, i32, i32) {
    %c0_i32 = arith.constant 0 : i32
    %c0_i32_0 = arith.constant 0 : i32
    %c0_i32_1 = arith.constant 0 : i32
    return %arg0, %c0_i32, %c0_i32_0 : i32, i32, i32
  }
  func.func @transform_3(%arg0: i32) -> (i32, i32, i32, i32) {
    %c0_i32 = arith.constant 0 : i32
    %c0_i32_0 = arith.constant 0 : i32
    %c0_i32_1 = arith.constant 0 : i32
    %c0_i32_2 = arith.constant 0 : i32
    %c0_i32_3 = arith.constant 0 : i32
    return %c0_i32, %c0_i32_0, %c0_i32_1, %c0_i32_2 : i32, i32, i32, i32
  }
  func.func @transform_4(%arg0: i32) -> (i32, i32, i32) {
    %c0_i32 = arith.constant 0 : i32
    %c0_i32_0 = arith.constant 0 : i32
    %c0_i32_1 = arith.constant 0 : i32
    %c0_i32_2 = arith.constant 0 : i32
    return %c0_i32, %c0_i32_0, %c0_i32_1 : i32, i32, i32
  }
  func.func @transform_5(%arg0: i32) -> (i32, i32) {
    %c0_i32 = arith.constant 0 : i32
    %c0_i32_0 = arith.constant 0 : i32
    %c0_i32_1 = arith.constant 0 : i32
    return %c0_i32, %c0_i32_0 : i32, i32
  }
  func.func @transform_6(%arg0: i32) -> (i32, i32) {
    %c0_i32 = arith.constant 0 : i32
    %c0_i32_0 = arith.constant 0 : i32
    %c0_i32_1 = arith.constant 0 : i32
    return %c0_i32, %c0_i32_0 : i32, i32
  }
  func.func @transform_7(%arg0: i32) -> (i32, i32, i32, i32) {
    %c0_i32 = arith.constant 0 : i32
    %c0_i32_0 = arith.constant 0 : i32
    %c0_i32_1 = arith.constant 0 : i32
    %c0_i32_2 = arith.constant 0 : i32
    return %arg0, %c0_i32, %c0_i32_0, %c0_i32_1 : i32, i32, i32, i32
  }
}

</mosaic_0001>

<bundles_post_ra>
// kernel: ddgcn_e_forward.1
= control target key start
LH: loop header
LB: loop body
LE: loop exit
PB: predicated region body
PF: predicated region fallthrough
CT: control target
= control target key end

     0   :  { %s10528_s24 = smov 0   ;;  %s13160_s0 = inlined_call_operand.vmem [shape: f32[2,8,16,64], index: 0, kind: input, shape index: {}]   ;;  %s13161_s1 = inlined_call_operand.vmem [shape: f32[2,8,16,32], index: 1, kind: input, shape index: {}]   ;;  %s13162_s2 = inlined_call_operand.vmem [shape: f32[2,16,32], index: 2, kind: input, shape index: {}]   ;;  %s13163_s3 = inlined_call_operand.vmem [shape: f32[8,2,16,16], index: 3, kind: input, shape index: {}]   ;;  %s13164_s4 = inlined_call_operand.vmem [shape: f32[8,16,384], index: 4, kind: input, shape index: {}]   ;;  %s13165_s5 = inlined_call_operand.vmem [shape: f32[384,64], index: 5, kind: input, shape index: {}]   ;;  %s13166_s6 = inlined_call_operand.vmem [shape: f32[384,32], index: 6, kind: input, shape index: {}]   ;;  %s13167_s7 = inlined_call_operand.vmem [shape: f32[2,8,16,32], index: 7, kind: output, shape index: {}]  }
   0x1 LB: > { %s7199_s25 = sadd.s32 4294967295, %s10483_s24   ;;  %p7203_p0 = scmp.ge.s32.totalorder %s10483_s24, 1  ;;  %s10483_s24 = sphi %s10528_s24, %s17_s24  }
   0x2   : > { %p257_p1 = scmp.lt.s32.totalorder %s10483_s24, 3 }
   0x4   : > { %p258_p2 = pnand %p7203_p0, %p257_p1 }
   0x6   : > { %261 = sbr.rel (%p258_p2) target bundleno = 11392 (0x2c80), region = 48 }
   0xd   : > { %p299_p3 = scmp.lt.s32.totalorder %s7199_s25, 1  ;;  %v10539_v0 = vld [vmem:[%s13163_s3] sm:$0xff]  ;;  %vm429_vm0 = vcmask 130048   ;;  %v10544_v1 = vld [vmem:[%s13163_s3 + $0x10] sm:$0xff]  ;;  %s10485_s11 = smov 64   ;;  %v10569_v5 = vld [vmem:[%s13163_s3 + $0x8] sm:$0xff] }
   0xe   : > { %8438 = vmatprep.mubr.msk.f32.mxu0 %vm429_vm0, %v10539_v0  ;;  %8445 = vmatprep.mubr.msk.f32.mxu1 %vm429_vm0, %v10544_v1  ;;  %v10574_v6 = vld [vmem:[%s13163_s3 + $0x18] sm:$0xff]  ;;  %s10486_s16 = smov 96   ;;  %s10487_s17 = smov 32   ;;  %v335_v7 = vld [vmem:[%s13165_s5 + $0x80] sm:$0xff]  ;;  %v336_v8 = vld [vmem:[%s13165_s5 + $0x88] sm:$0xff]  ;;  %vm652_vm1 = vcmask 261120  }
   0xf   : > { %s13431_s25 = smov (!%p299_p3, %s7199_s25), 1  ;;  %v319_v9 = vld [vmem:[%s13165_s5] sm:$0xff]  ;;  %v10597_v10 = vpack.c.bf16 %v336_v8, %v335_v7  ;;  %v320_v11 = vld [vmem:[%s13165_s5 + $0x8] sm:$0xff]  ;;  %v337_v12 = vld [vmem:[%s13165_s5 + $0x90] sm:$0xff]  ;;  %vm655_vm2 = vcmask 523264   ;;  %vm658_vm3 = vcmask 785408  }
  0x10   : > { %s7408_s30 = sshll.u32 %s13431_s25, 4  ;;  %v338_v13 = vld [vmem:[%s13165_s5 + $0x98] sm:$0xff]  ;;  %v10608_v14 = vpack.c.bf16 %v320_v11, %v319_v9  ;;  %v321_v16 = vld [vmem:[%s13165_s5 + $0x10] sm:$0xff]  ;;  %v339_v18 = vld [vmem:[%s13165_s5 + $0xa0] sm:$0xff]  ;;  %s10903_s18 = sshll.u32 %s13431_s25, 7 }
  0x11   : > { %s313_s10 = scalar_lea.vmem %s13162_s2, %s7408_s30  ;;  %v10610_v15 = vpack.c.bf16 %v338_v13, %v337_v12  ;;  %v322_v17 = vld [vmem:[%s13165_s5 + $0x18] sm:$0xff]  ;;  %v340_v19 = vld [vmem:[%s13165_s5 + $0xa8] sm:$0xff]  ;;  %v351_v20 = vld [vmem:[%s13165_s5 + $0x100] sm:$0xff]  ;;  %s10909_s21 = scalar_lea.vmem %s13160_s0, %s10903_s18 }
  0x12   : > { %v10556_v2 = vld [vmem:[%s313_s10] sm:$0xff]  ;;  %v10558_v3 = vld [vmem:[%s313_s10 + $0x8] sm:$0xff]  ;;  %v10632_v22 = vpack.c.bf16 %v322_v17, %v321_v16  ;;  %v10637_v24 = vpack.c.bf16 %v340_v19, %v339_v18  ;;  %v341_v28 = vld [vmem:[%s13165_s5 + $0xb0] sm:$0xff]  ;;  %s11215_s14 = scalar_lea.vmem %s13161_s1, %s10903_s18  ;;  %s11261_s26 = scalar_lea.vmem %s13167_s7, %s10903_s18 }
  0x13   : > { %v9218_v4 = vpack.c.bf16 %v10558_v3, %v10556_v2  ;;  %622 = vrot.lane.b32.xlu1 %v10556_v2, %s10485_s11  ;;  %624 = vrot.lane.b32.xlu0 %v10558_v3, %s10485_s11  ;;  %v352_v21 = vld [vmem:[%s13165_s5 + $0x108] sm:$0xff]  ;;  %v323_v25 = vld [vmem:[%s13165_s5 + $0x20] sm:$0xff] }
  0x14   : > { %v10634_v23 = vpack.c.bf16 %v352_v21, %v351_v20  ;;  %v324_v26 = vld [vmem:[%s13165_s5 + $0x28] sm:$0xff]  ;;  %v342_v29 = vld [vmem:[%s13165_s5 + $0xb8] sm:$0xff]  ;;  %v353_v30 = vld [vmem:[%s13165_s5 + $0x110] sm:$0xff] }
  0x15   : > { %9219 = vmatprep.subr.bf16.mxu0 %v9218_v4  ;;  %9223 = vmatprep.subr.bf16.mxu1 %v9218_v4  ;;  %v10648_v27 = vpack.c.bf16 %v324_v26, %v323_v25  ;;  %v10661_v31 = vpack.c.bf16 %v342_v29, %v341_v28  ;;  %v354_v32 = vld [vmem:[%s13165_s5 + $0x118] sm:$0xff]  ;;  %v325_v33 = vld [vmem:[%s13165_s5 + $0x30] sm:$0xff]  ;;  %v343_v37 = vld [vmem:[%s13165_s5 + $0xc0] sm:$0xff] }
  0x16   : > { %9221 = vmatpush3.bf16.msra.mxu0 %v9218_v4  ;;  %9225 = vmatpush3.bf16.msra.mxu1 %v9218_v4  ;;  %v326_v34 = vld [vmem:[%s13165_s5 + $0x38] sm:$0xff]  ;;  %v10672_v35 = vpack.c.bf16 %v354_v32, %v353_v30  ;;  %v344_v38 = vld [vmem:[%s13165_s5 + $0xc8] sm:$0xff]  ;;  %v355_v39 = vld [vmem:[%s13165_s5 + $0x120] sm:$0xff] }
  0x17   : > { %610 = vrot.lane.b32.xlu1 %v10556_v2, %s10486_s16  ;;  %612 = vrot.lane.b32.xlu0 %v10558_v3, %s10486_s16  ;;  %v10674_v36 = vpack.c.bf16 %v326_v34, %v325_v33  ;;  %v10689_v40 = vpack.c.bf16 %v344_v38, %v343_v37  ;;  %v356_v41 = vld [vmem:[%s13165_s5 + $0x128] sm:$0xff]  ;;  %v327_v42 = vld [vmem:[%s13165_s5 + $0x40] sm:$0xff] }
  0x18   : > { %9227 = vmatprep.subr.bf16.mxu0 %v10597_v10  ;;  %9259 = vmatprep.subr.bf16.mxu1 %v10634_v23  ;;  %v328_v43 = vld [vmem:[%s13165_s5 + $0x48] sm:$0xff]  ;;  %v10700_v44 = vpack.c.bf16 %v356_v41, %v355_v39  ;;  %v345_v46 = vld [vmem:[%s13165_s5 + $0xd0] sm:$0xff]  ;;  %v346_v47 = vld [vmem:[%s13165_s5 + $0xd8] sm:$0xff] }
  0x19   : > { %8439 = vmatmul.mubr.msk.f32.vlgmr.msra.gmra.mrb[0].mxu0 %vm429_vm0, %v10569_v5  ;;  %8446 = vmatmul.mubr.msk.f32.vlgmr.msra.gmra.mrb[0].mxu1 %vm429_vm0, %v10574_v6  ;;  %v10702_v45 = vpack.c.bf16 %v328_v43, %v327_v42  ;;  %v357_v48 = vld [vmem:[%s13165_s5 + $0x130] sm:$0xff]  ;;  %v10717_v49 = vpack.c.bf16 %v346_v47, %v345_v46  ;;  %v358_v50 = vld [vmem:[%s13165_s5 + $0x138] sm:$0xff]  ;;  %v347_v55 = vld [vmem:[%s13165_s5 + $0xe0] sm:$0xff] }
  0x1a   : > { %9229 = vmatpush3.bf16.msra.mxu0 %v10608_v14  ;;  %9261 = vmatpush3.bf16.msra.mxu1 %v10634_v23  ;;  %v329_v51 = vld [vmem:[%s13165_s5 + $0x50] sm:$0xff]  ;;  %v330_v52 = vld [vmem:[%s13165_s5 + $0x58] sm:$0xff]  ;;  %v10728_v53 = vpack.c.bf16 %v358_v50, %v357_v48  ;;  %v348_v56 = vld [vmem:[%s13165_s5 + $0xe8] sm:$0xff] }
  0x1b   : > { %634 = vrot.lane.b32.xlu1 %v10556_v2, %s10487_s17  ;;  %9231 = vmatprep.subr.bf16.mxu0 %v10610_v15  ;;  %v10730_v54 = vpack.c.bf16 %v330_v52, %v329_v51  ;;  %v359_v57 = vld [vmem:[%s13165_s5 + $0x140] sm:$0xff]  ;;  %v10745_v58 = vpack.c.bf16 %v348_v56, %v347_v55  ;;  %v360_v59 = vld [vmem:[%s13165_s5 + $0x148] sm:$0xff]  ;;  %v349_v11 = vld [vmem:[%s13165_s5 + $0xf0] sm:$0xff] }
  0x1c   : > { %9263 = vmatprep.subr.bf16.mxu1 %v10672_v35  ;;  %v331_v60 = vld [vmem:[%s13165_s5 + $0x60] sm:$0xff]  ;;  %v332_v61 = vld [vmem:[%s13165_s5 + $0x68] sm:$0xff]  ;;  %v10756_v62 = vpack.c.bf16 %v360_v59, %v359_v57  ;;  %v350_v12 = vld [vmem:[%s13165_s5 + $0xf8] sm:$0xff] }
  0x1d   : > { %v10758_v63 = vpack.c.bf16 %v332_v61, %v331_v60  ;;  %v10776_v13 = vpack.c.bf16 %v350_v12, %v349_v11  ;;  %v361_v16 = vld [vmem:[%s13165_s5 + $0x150] sm:$0xff]  ;;  %v362_v17 = vld [vmem:[%s13165_s5 + $0x158] sm:$0xff]  ;;  %v363_v25 = vld [vmem:[%s13165_s5 + $0x160] sm:$0xff] }
  0x1e   : > { %9233 = vmatpush3.bf16.msra.mxu0 %v10632_v22  ;;  %9265 = vmatpush3.bf16.msra.mxu1 %v10672_v35  ;;  %v333_v18 = vld [vmem:[%s13165_s5 + $0x70] sm:$0xff]  ;;  %v10788_v19 = vpack.c.bf16 %v362_v17, %v361_v16  ;;  %v334_v20 = vld [vmem:[%s13165_s5 + $0x78] sm:$0xff]  ;;  %v364_v26 = vld [vmem:[%s13165_s5 + $0x168] sm:$0xff] }
  0x1f   : > { %636 = vrot.lane.b32.xlu1 %v10558_v3, %s10487_s17  ;;  %9235 = vmatprep.subr.bf16.mxu0 %v10637_v24  ;;  %v10794_v21 = vpack.c.bf16 %v334_v20, %v333_v18  ;;  %v10807_v28 = vpack.c.bf16 %v364_v26, %v363_v25  ;;  %v365_v29 = vld [vmem:[%s13165_s5 + $0x170] sm:$0xff]  ;;  %v366_v30 = vld [vmem:[%s13165_s5 + $0x178] sm:$0xff]  ;;  %v10848_v61 = vld [vmem:[%s13164_s4 + $0x8] sm:$0xff] }
  0x20   : > { %9267 = vmatprep.subr.bf16.mxu1 %v10700_v44  ;;  %v10822_v32 = vpack.c.bf16 %v366_v30, %v365_v29  ;;  %v10861_v17 = vld [vmem:[%s13164_s4 + $0x20] sm:$0xff] }
  0x22   : > { %9237 = vmatpush3.bf16.msra.mxu0 %v10648_v27  ;;  %9269 = vmatpush3.bf16.msra.mxu1 %v10700_v44 }
  0x23   : > { %9239 = vmatprep.subr.bf16.mxu0 %v10661_v31  ;;  %9271 = vmatprep.subr.bf16.mxu1 %v10728_v53 }
  0x26   : > { %9241 = vmatpush3.bf16.msra.mxu0 %v10674_v36  ;;  %9273 = vmatpush3.bf16.msra.mxu1 %v10728_v53 }
  0x27   : > { %9243 = vmatprep.subr.bf16.mxu0 %v10689_v40  ;;  %9275 = vmatprep.subr.bf16.mxu1 %v10756_v62 }
  0x2a   : > { %9245 = vmatpush3.bf16.msra.mxu0 %v10702_v45  ;;  %9277 = vmatpush3.bf16.msra.mxu1 %v10756_v62 }
  0x2b   : > { %9247 = vmatprep.subr.bf16.mxu0 %v10717_v49  ;;  %9279 = vmatprep.subr.bf16.mxu1 %v10788_v19 }
  0x2e   : > { %9249 = vmatpush3.bf16.msra.mxu0 %v10730_v54  ;;  %9281 = vmatpush3.bf16.msra.mxu1 %v10788_v19 }
  0x2f   : > { %9251 = vmatprep.subr.bf16.mxu0 %v10745_v58  ;;  %9283 = vmatprep.subr.bf16.mxu1 %v10807_v28 }
  0x32   : > { %9253 = vmatpush3.bf16.msra.mxu0 %v10758_v63  ;;  %9285 = vmatpush3.bf16.msra.mxu1 %v10807_v28 }
  0x33   : > { %9255 = vmatprep.subr.bf16.mxu0 %v10776_v13  ;;  %9287 = vmatprep.subr.bf16.mxu1 %v10822_v32 }
  0x36   : > { %9257 = vmatpush3.bf16.msra.mxu0 %v10794_v21  ;;  %9289 = vmatpush3.bf16.msra.mxu1 %v10822_v32 }
  0x85   : > { %v623_v33 = vpop.permute.xlu1 %622  ;;  %v625_v37 = vpop.permute.xlu0 %624 }
  0x89   : > { %v611_v34 = vpop.permute.xlu1 %610  ;;  %v613_v39 = vpop.permute.xlu0 %612 }
  0x8d   : > { %v10834_v38 = vpop.permute.xlu1 %634 }
  0x91   : > { %v10836_v41 = vpop.permute.xlu1 %636 }
  0xec   : > { %v8440_v4 = vpop.f32.mrb[0].mxu0  ;;  %v10760_v7 = vpop.f32.mrb[0].mxu1 }
  0xed   : > { %618 = vrot.lane.b32.xlu0 %v10760_v7, %s10487_s17  ;;  %v10765_v8 = vpop.f32.mrb[1].mxu1  ;;  %596 = vrot.lane.b32.xlu1 %v8440_v4, %s10487_s17  ;;  %v502_v9 = vpop.f32.mrb[1].mxu0 }
  0xf1   : > { %630 = vrot.lane.b32.xlu0 %v8440_v4, %s10486_s16  ;;  %604 = vrot.lane.b32.xlu1 %v10760_v7, %s10485_s11 }
  0xf5   : > { %616 = vrot.lane.b32.xlu0 %v10765_v8, %s10487_s17  ;;  %602 = vrot.lane.b32.xlu1 %v10765_v8, %s10485_s11 }
  0xf9   : > { %642 = vrot.lane.b32.xlu1 %v8440_v4, %s10485_s11  ;;  %594 = vrot.lane.b32.xlu0 %v502_v9, %s10487_s17 }
  0xfd   : > { %648 = vrot.lane.b32.xlu1 %v10760_v7, %s10486_s16  ;;  %628 = vrot.lane.b32.xlu0 %v502_v9, %s10486_s16 }
 0x101   : > { %640 = vrot.lane.b32.xlu0 %v502_v9, %s10485_s11 }
 0x105   : > { %646 = vrot.lane.b32.xlu0 %v10765_v8, %s10486_s16 }
 0x15f   : > { %v619_v42 = vpop.permute.xlu0 %618  ;;  %v597_v43 = vpop.permute.xlu1 %596 }
 0x160   : > { %v662_v52 = vsel %vm652_vm1, %v8440_v4, %v619_v42  ;;  %v654_v57 = vsel %vm652_vm1, %v10558_v3, %v597_v43  ;;  %v668_v43 = vsel %vm652_vm1, %v10760_v7, %v10836_v41 }
 0x161   : > { %v664_v4 = vsel %vm655_vm2, %v662_v52, %v625_v37  ;;  %v10873_v37 = vld [vmem:[%s13164_s4 + $0x18] sm:$0xff] }
 0x163   : > { %v631_v46 = vpop.permute.xlu0 %630  ;;  %v605_v47 = vpop.permute.xlu1 %604 }
 0x164   : > { %v666_v18 = vsel %vm658_vm3, %v664_v4, %v631_v46  ;;  %v657_v20 = vsel %vm655_vm2, %v654_v57, %v605_v47  ;;  %v10885_v47 = vld [vmem:[%s13164_s4 + $0x10] sm:$0xff] }
 0x165   : > { %v677_v30 = vmul.f32 %v666_v18, %v10861_v17 }
 0x167   : > { %v617_v48 = vpop.permute.xlu0 %616  ;;  %v603_v50 = vpop.permute.xlu1 %602 }
 0x168   : > { %v661_v55 = vsel %vm652_vm1, %v502_v9, %v617_v48  ;;  %v10854_v9 = vld [vmem:[%s13164_s4] sm:$0xff] }
 0x169   : > { %v663_v16 = vsel %vm655_vm2, %v661_v55, %v623_v33 }
 0x16b   : > { %v595_v51 = vpop.permute.xlu0 %594  ;;  %v643_v60 = vpop.permute.xlu1 %642 }
 0x16c   : > { %v653_v56 = vsel %vm652_vm1, %v10556_v2, %v595_v51  ;;  %v670_v46 = vsel %vm655_vm2, %v668_v43, %v643_v60 }
 0x16d   : > { %v656_v59 = vsel %vm655_vm2, %v653_v56, %v603_v50  ;;  %v10891_v50 = vld [vmem:[%s13164_s4 + $0x28] sm:$0xff] }
 0x16e   : > { %v659_v11 = vsel %vm658_vm3, %v656_v59, %v611_v34  ;;  %v660_v34 = vsel %vm658_vm3, %v657_v20, %v613_v39  ;;  %v667_v39 = vsel %vm652_vm1, %v10765_v8, %v10834_v38 }
 0x16f   : > { %v629_v12 = vpop.permute.xlu0 %628  ;;  %v673_v29 = vmul.f32 %v659_v11, %v10854_v9  ;;  %v649_v42 = vpop.permute.xlu1 %648  ;;  %v676_v48 = vmul.f32 %v660_v34, %v10873_v37 }
 0x170   : > { %v665_v25 = vsel %vm658_vm3, %v663_v16, %v629_v12  ;;  %v672_v7 = vsel %vm658_vm3, %v670_v46, %v649_v42  ;;  %v428_v12 = vld [vmem:[%s10909_s21 + $0x8] sm:$0xff] }
 0x171   : > { %v674_v26 = vmul.f32 %v665_v25, %v10848_v61  ;;  %v678_v56 = vmul.f32 %v672_v7, %v10891_v50 }
 0x173   : > { %v641_v33 = vpop.permute.xlu0 %640  ;;  %743 = vmatprep.mubr.f32.mxu0 %v674_v26 }
 0x174   : > { %744 = vmatmul.mubr.f32.vlgmr.msra.gmra.mrb[2].mxu0 %v673_v29  ;;  %v669_v51 = vsel %vm655_vm2, %v667_v39, %v641_v33 }
 0x175   : > { %748 = vmatprep.mubr.f32.mxu0 %v677_v30 }
 0x177   : > { %v647_v52 = vpop.permute.xlu0 %646 }
 0x178   : > { %v671_v8 = vsel %vm658_vm3, %v669_v51, %v647_v52  ;;  %749 = vmatmul.mubr.f32.gmra.mrb[4].mxu0 %v676_v48 }
 0x179   : > { %v675_v55 = vmul.f32 %v671_v8, %v10885_v47  ;;  %8494 = vmatprep.mubr.msk.f32.mxu0 %vm429_vm0, %v10544_v1 }
 0x17b   : > { %8480 = vmatprep.mubr.f32.mxu1 %v675_v55  ;;  %v385_v55 = vld [vmem:[%s13166_s6 + $0x90] sm:$0xff] }
 0x17c   : > { %8481 = vmatmul.mubr.f32.vlgmr.msra.gmra.mrb[2].mxu1 %v678_v56  ;;  %v386_v56 = vld [vmem:[%s13166_s6 + $0x98] sm:$0xff] }
 0x17d   : > { %8487 = vmatprep.mubr.msk.f32.mxu1 %vm429_vm0, %v10539_v0  ;;  %v427_v0 = vld [vmem:[%s10909_s21] sm:$0xff] }
 0x247   : > { %v7450_v57 = vpop.f32.mrb[2].mxu0 }
 0x248   : > { %v7451_v59 = vpop.f32.mrb[3].mxu0 }
 0x249   : > { %v7452_v60 = vadd.f32 %v7451_v59, %v7450_v57  ;;  %v10965_v59 = vpack.c.bf16 %v386_v56, %v385_v55  ;;  %v403_v55 = vld [vmem:[%s13166_s6 + $0x120] sm:$0xff] }
 0x24b   : > { %v7453_v4 = vpop.f32.mrb[4].mxu0  ;;  %13255 = vst [vmem:[#allocation3_spill] sm:$0xff] %v10965_v59 }
 0x24c   : > { %v7454_v1 = vpop.f32.mrb[5].mxu0 }
 0x24d   : > { %v7455_v11 = vadd.f32 %v7454_v1, %v7453_v4  ;;  %v370_v4 = vld [vmem:[%s13166_s6 + $0x18] sm:$0xff]  ;;  %v387_v1 = vld [vmem:[%s13166_s6 + $0xa0] sm:$0xff] }
 0x24f   : > { %v8482_v16 = vpop.f32.mrb[2].mxu1 }
 0x250   : > { %v826_v18 = vadd.f32 %v8482_v16, %v7455_v11  ;;  %v820_v20 = vpop.f32.mrb[3].mxu1  ;;  %v388_v11 = vld [vmem:[%s13166_s6 + $0xa8] sm:$0xff] }
 0x251   : > { %v821_v25 = vadd.f32 %v7452_v60, %v820_v20  ;;  %v369_v60 = vld [vmem:[%s13166_s6 + $0x10] sm:$0xff]  ;;  %v400_v16 = vld [vmem:[%s13166_s6 + $0x108] sm:$0xff]  ;;  %v371_v20 = vld [vmem:[%s13166_s6 + $0x20] sm:$0xff] }
 0x252   : > { %v830_v26 = vadd.f32 %v826_v18, %v428_v12  ;;  %v399_v12 = vld [vmem:[%s13166_s6 + $0x100] sm:$0xff]  ;;  %v10987_v18 = vpack.c.bf16 %v370_v4, %v369_v60  ;;  %v404_v60 = vld [vmem:[%s13166_s6 + $0x128] sm:$0xff] }
 0x253   : > { %v829_v29 = vadd.f32 %v821_v25, %v427_v0  ;;  %v10989_v0 = vpack.c.bf16 %v400_v16, %v399_v12  ;;  %v10995_v25 = vpack.c.bf16 %v388_v11, %v387_v1  ;;  %v375_v4 = vld [vmem:[%s13166_s6 + $0x40] sm:$0xff]  ;;  %v376_v1 = vld [vmem:[%s13166_s6 + $0x48] sm:$0xff]  ;;  %v11055_v11 = vpack.c.bf16 %v404_v60, %v403_v55  ;;  %v393_v16 = vld [vmem:[%s13166_s6 + $0xd0] sm:$0xff] }
 0x254   : > { %v7217_v30 = vmul.f32 -1.442695, %v830_v26  ;;  %13256 = vst [vmem:[#allocation4_spill] sm:$0xff] %v10987_v18  ;;  %v372_v26 = vld [vmem:[%s13166_s6 + $0x28] sm:$0xff]  ;;  %v11057_v12 = vpack.c.bf16 %v376_v1, %v375_v4  ;;  %v407_v55 = vld [vmem:[%s13166_s6 + $0x140] sm:$0xff] }
 0x255   : > { %v7216_v34 = vmul.f32 -1.442695, %v829_v29  ;;  %13257 = vst [vmem:[#allocation5_spill] sm:$0xff] %v10995_v25  ;;  %v401_v29 = vld [vmem:[%s13166_s6 + $0x110] sm:$0xff]  ;;  %13263 = vst [vmem:[#allocation11_spill] sm:$0xff] %v11055_v11  ;;  %v408_v4 = vld [vmem:[%s13166_s6 + $0x148] sm:$0xff] }
 0x256   : > { %10381 = vpow2.f32 %v7217_v30  ;;  %v402_v30 = vld [vmem:[%s13166_s6 + $0x118] sm:$0xff]  ;;  %13264 = vst [vmem:[#allocation12_spill] sm:$0xff] %v11057_v12  ;;  %v379_v1 = vld [vmem:[%s13166_s6 + $0x60] sm:$0xff] }
 0x257   : > { %10383 = vpow2.f32 %v7216_v34  ;;  %v389_v34 = vld [vmem:[%s13166_s6 + $0xb0] sm:$0xff] }
 0x260   : > { %v10382_v33 = vpop.eup %10381 }
 0x261   : > { %v10384_v42 = vpop.eup %10383  ;;  %v838_v43 = vadd.f32 1.0, %v10382_v33  ;;  %v390_v33 = vld [vmem:[%s13166_s6 + $0xb8] sm:$0xff] }
 0x262   : > { %v837_v46 = vadd.f32 1.0, %v10384_v42  ;;  %v11013_v42 = vpack.c.bf16 %v402_v30, %v401_v29  ;;  %v406_v30 = vld [vmem:[%s13166_s6 + $0x138] sm:$0xff] }
 0x263   : > { %10385 = vrcp.f32 %v838_v43  ;;  %v11017_v43 = vpack.c.bf16 %v372_v26, %v371_v20  ;;  %v394_v20 = vld [vmem:[%s13166_s6 + $0xd8] sm:$0xff]  ;;  %v405_v26 = vld [vmem:[%s13166_s6 + $0x130] sm:$0xff] }
 0x264   : > { %10387 = vrcp.f32 %v837_v46  ;;  %13258 = vst [vmem:[#allocation6_spill] sm:$0xff] %v11013_v42  ;;  %v11021_v46 = vpack.c.bf16 %v390_v33, %v389_v34  ;;  %v11072_v29 = vpack.c.bf16 %v394_v20, %v393_v16  ;;  %v377_v34 = vld [vmem:[%s13166_s6 + $0x50] sm:$0xff]  ;;  %v378_v33 = vld [vmem:[%s13166_s6 + $0x58] sm:$0xff]  ;;  %v380_v16 = vld [vmem:[%s13166_s6 + $0x68] sm:$0xff]  ;;  %v11111_v20 = vpack.c.bf16 %v408_v4, %v407_v55 }
 0x265   : > { %13259 = vst [vmem:[#allocation7_spill] sm:$0xff] %v11017_v43  ;;  %v381_v55 = vld [vmem:[%s13166_s6 + $0x70] sm:$0xff]  ;;  %v382_v4 = vld [vmem:[%s13166_s6 + $0x78] sm:$0xff] }
 0x266   : > { %13260 = vst [vmem:[#allocation8_spill] sm:$0xff] %v11021_v46  ;;  %13265 = vst [vmem:[#allocation13_spill] sm:$0xff] %v11072_v29 }
 0x267   : > { %13269 = vst [vmem:[#allocation17_spill] sm:$0xff] %v11111_v20 }
 0x26d   : > { %v10913_v39 = vpop.eup %10385 }
 0x26e   : > { %v10915_v48 = vpop.eup %10387  ;;  %v10919_v7 = vmul.f32 %v10913_v39, %v10558_v3  ;;  %v384_v3 = vld [vmem:[%s13166_s6 + $0x88] sm:$0xff] }
 0x26f   : > { %v10923_v51 = vmul.f32 %v10915_v48, %v10556_v2  ;;  %v383_v2 = vld [vmem:[%s13166_s6 + $0x80] sm:$0xff] }
 0x270   : > { %v10952_v8 = vpack.c.bf16 %v384_v3, %v383_v2  ;;  %v374_v2 = vld [vmem:[%s13166_s6 + $0x38] sm:$0xff] }
 0x271   : > { %1015 = vrot.lane.b32.xlu1 %v10923_v51, %s10486_s16  ;;  %1027 = vrot.lane.b32.xlu0 %v10923_v51, %s10485_s11  ;;  %v9290_v52 = vpack.c.bf16 %v10919_v7, %v10923_v51 }
 0x273   : > { %9291 = vmatprep.subr.bf16.mxu1 %v9290_v52  ;;  %9295 = vmatprep.subr.bf16.mxu0 %v9290_v52 }
 0x274   : > { %9293 = vmatpush3.bf16.msra.mxu1 %v9290_v52  ;;  %9297 = vmatpush3.bf16.msra.mxu0 %v9290_v52  ;;  %v373_v52 = vld [vmem:[%s13166_s6 + $0x30] sm:$0xff] }
 0x275   : > { %1039 = vrot.lane.b32.xlu1 %v10923_v51, %s10487_s17  ;;  %1029 = vrot.lane.b32.xlu0 %v10919_v7, %s10485_s11  ;;  %v11031_v3 = vpack.c.bf16 %v374_v2, %v373_v52  ;;  %v11083_v52 = vpack.c.bf16 %v406_v30, %v405_v26  ;;  %v11085_v2 = vpack.c.bf16 %v378_v33, %v377_v34  ;;  %v397_v30 = vld [vmem:[%s13166_s6 + $0xf0] sm:$0xff]  ;;  %v398_v34 = vld [vmem:[%s13166_s6 + $0xf8] sm:$0xff] }
 0x276   : > { %9299 = vmatprep.subr.bf16.mxu1 %v10952_v8  ;;  %9331 = vmatprep.subr.bf16.mxu0 %v10989_v0  ;;  %v11113_v26 = vpack.c.bf16 %v380_v16, %v379_v1  ;;  %v409_v33 = vld [vmem:[%s13166_s6 + $0x150] sm:$0xff]  ;;  %v11141_v16 = vpack.c.bf16 %v382_v4, %v381_v55  ;;  %v414_v4 = vld [vmem:[%s13166_s6 + $0x178] sm:$0xff] }
 0x277   : > { %8488 = vmatmul.mubr.msk.f32.vlgmr.msra.gmra.mrb[4].mxu1 %vm429_vm0, %v10569_v5  ;;  %8495 = vmatmul.mubr.msk.f32.vlgmr.msra.gmra.mrb[6].mxu0 %vm429_vm0, %v10574_v6  ;;  %v367_v5 = vld [vmem:[%s13166_s6] sm:$0xff]  ;;  %v368_v6 = vld [vmem:[%s13166_s6 + $0x8] sm:$0xff]  ;;  %13261 = vst [vmem:[#allocation9_spill] sm:$0xff] %v11031_v3  ;;  %13266 = vst [vmem:[#allocation14_spill] sm:$0xff] %v11083_v52 }
 0x278   : > { %v10963_v57 = vpack.c.bf16 %v368_v6, %v367_v5  ;;  %9333 = vmatpush3.bf16.msra.mxu0 %v10989_v0  ;;  %v391_v5 = vld [vmem:[%s13166_s6 + $0xc0] sm:$0xff]  ;;  %v392_v6 = vld [vmem:[%s13166_s6 + $0xc8] sm:$0xff]  ;;  %13267 = vst [vmem:[#allocation15_spill] sm:$0xff] %v11085_v2  ;;  %13270 = vst [vmem:[#allocation18_spill] sm:$0xff] %v11113_v26 }
 0x279   : > { %1041 = vrot.lane.b32.xlu1 %v10919_v7, %s10487_s17  ;;  %1017 = vrot.lane.b32.xlu0 %v10919_v7, %s10486_s16  ;;  %v11044_v56 = vpack.c.bf16 %v392_v6, %v391_v5  ;;  %v395_v5 = vld [vmem:[%s13166_s6 + $0xe0] sm:$0xff]  ;;  %v396_v6 = vld [vmem:[%s13166_s6 + $0xe8] sm:$0xff]  ;;  %13273 = vst [vmem:[#allocation21_spill] sm:$0xff] %v11141_v16 }
 0x27a   : > { %13254 = vst [vmem:[#allocation2_spill] sm:$0xff] %v10963_v57  ;;  %9301 = vmatpush3.bf16.msra.mxu1 %v10963_v57  ;;  %9335 = vmatprep.subr.bf16.mxu0 %v11013_v42  ;;  %v11100_v60 = vpack.c.bf16 %v396_v6, %v395_v5  ;;  %v11128_v5 = vpack.c.bf16 %v398_v34, %v397_v30  ;;  %v410_v6 = vld [vmem:[%s13166_s6 + $0x158] sm:$0xff]  ;;  %v413_v55 = vld [vmem:[%s13166_s6 + $0x170] sm:$0xff] }
 0x27b   : > { %9303 = vmatprep.subr.bf16.mxu1 %v10965_v59  ;;  %13262 = vst [vmem:[#allocation10_spill] sm:$0xff] %v11044_v56  ;;  %v11139_v1 = vpack.c.bf16 %v410_v6, %v409_v33  ;;  %v412_v33 = vld [vmem:[%s13166_s6 + $0x168] sm:$0xff] }
 0x27c   : > { %9337 = vmatpush3.bf16.msra.mxu0 %v11013_v42  ;;  %13268 = vst [vmem:[#allocation16_spill] sm:$0xff] %v11100_v60  ;;  %13271 = vst [vmem:[#allocation19_spill] sm:$0xff] %v11128_v5 }
 0x27d   : > { %9339 = vmatprep.subr.bf16.mxu0 %v11055_v11  ;;  %13272 = vst [vmem:[#allocation20_spill] sm:$0xff] %v11139_v1 }
 0x27e   : > { %9305 = vmatpush3.bf16.msra.mxu1 %v10987_v18 }
 0x27f   : > { %9307 = vmatprep.subr.bf16.mxu1 %v10995_v25 }
 0x280   : > { %9341 = vmatpush3.bf16.msra.mxu0 %v11055_v11 }
 0x281   : > { %9343 = vmatprep.subr.bf16.mxu0 %v11083_v52 }
 0x282   : > { %9309 = vmatpush3.bf16.msra.mxu1 %v11017_v43 }
 0x283   : > { %9311 = vmatprep.subr.bf16.mxu1 %v11021_v46 }
 0x284   : > { %9345 = vmatpush3.bf16.msra.mxu0 %v11083_v52 }
 0x285   : > { %9347 = vmatprep.subr.bf16.mxu0 %v11111_v20 }
 0x286   : > { %9313 = vmatpush3.bf16.msra.mxu1 %v11031_v3 }
 0x287   : > { %9315 = vmatprep.subr.bf16.mxu1 %v11044_v56 }
 0x288   : > { %9349 = vmatpush3.bf16.msra.mxu0 %v11111_v20 }
 0x289   : > { %9351 = vmatprep.subr.bf16.mxu0 %v11139_v1 }
 0x28a   : > { %9317 = vmatpush3.bf16.msra.mxu1 %v11057_v12 }
 0x28b   : > { %9319 = vmatprep.subr.bf16.mxu1 %v11072_v29 }
 0x28c   : > { %9353 = vmatpush3.bf16.msra.mxu0 %v11139_v1 }
 0x28e   : > { %9321 = vmatpush3.bf16.msra.mxu1 %v11085_v2  ;;  %v411_v2 = vld [vmem:[%s13166_s6 + $0x160] sm:$0xff] }
 0x28f   : > { %9323 = vmatprep.subr.bf16.mxu1 %v11100_v60  ;;  %v11157_v6 = vpack.c.bf16 %v412_v33, %v411_v2 }
 0x291   : > { %13274 = vst [vmem:[#allocation22_spill] sm:$0xff] %v11157_v6  ;;  %9355 = vmatprep.subr.bf16.mxu0 %v11157_v6 }
 0x292   : > { %9325 = vmatpush3.bf16.msra.mxu1 %v11113_v26  ;;  %9357 = vmatpush3.bf16.msra.mxu0 %v11157_v6 }
 0x293   : > { %9327 = vmatprep.subr.bf16.mxu1 %v11128_v5 }
 0x296   : > { %9329 = vmatpush3.bf16.msra.mxu1 %v11141_v16  ;;  %v11170_v16 = vpack.c.bf16 %v414_v4, %v413_v55 }
 0x298   : > { %13275 = vst [vmem:[#allocation23_spill] sm:$0xff] %v11170_v16  ;;  %9359 = vmatprep.subr.bf16.mxu0 %v11170_v16 }
 0x299   : > { %9361 = vmatpush3.bf16.msra.mxu0 %v11170_v16 }
 0x2e3   : > { %v1016_v2 = vpop.permute.xlu1 %1015  ;;  %v1028_v33 = vpop.permute.xlu0 %1027 }
 0x2e7   : > { %v1040_v55 = vpop.permute.xlu1 %1039  ;;  %v1030_v4 = vpop.permute.xlu0 %1029 }
 0x2eb   : > { %v1042_v5 = vpop.permute.xlu1 %1041  ;;  %v1018_v6 = vpop.permute.xlu0 %1017 }
 0x34a   : > { %v8489_v26 = vpop.f32.mrb[4].mxu1  ;;  %v11143_v60 = vpop.f32.mrb[6].mxu0 }
 0x34b   : > { %1023 = vrot.lane.b32.xlu0 %v11143_v60, %s10487_s17  ;;  %v988_v30 = vpop.f32.mrb[7].mxu0  ;;  %1001 = vrot.lane.b32.xlu1 %v8489_v26, %s10487_s17  ;;  %v913_v34 = vpop.f32.mrb[5].mxu1 }
 0x34f   : > { %1035 = vrot.lane.b32.xlu0 %v8489_v26, %s10486_s16  ;;  %1009 = vrot.lane.b32.xlu1 %v11143_v60, %s10485_s11 }
 0x353   : > { %1021 = vrot.lane.b32.xlu0 %v988_v30, %s10487_s17  ;;  %999 = vrot.lane.b32.xlu1 %v913_v34, %s10487_s17 }
 0x357   : > { %1033 = vrot.lane.b32.xlu0 %v913_v34, %s10486_s16  ;;  %1007 = vrot.lane.b32.xlu1 %v988_v30, %s10485_s11 }
 0x35b   : > { %1045 = vrot.lane.b32.xlu0 %v913_v34, %s10485_s11  ;;  %1047 = vrot.lane.b32.xlu1 %v8489_v26, %s10485_s11 }
 0x35f   : > { %1051 = vrot.lane.b32.xlu0 %v988_v30, %s10486_s16  ;;  %1053 = vrot.lane.b32.xlu1 %v11143_v60, %s10486_s16 }
 0x3bd   : > { %v1024_v16 = vpop.permute.xlu0 %1023  ;;  %v1002_v1 = vpop.permute.xlu1 %1001 }
 0x3be   : > { %v1064_v3 = vsel %vm652_vm1, %v8489_v26, %v1024_v16  ;;  %v1058_v46 = vsel %vm652_vm1, %v10919_v7, %v1002_v1 }
 0x3bf   : > { %v1066_v43 = vsel %vm655_vm2, %v1064_v3, %v1030_v4 }
 0x3c1   : > { %v1036_v29 = vpop.permute.xlu0 %1035  ;;  %v1010_v12 = vpop.permute.xlu1 %1009 }
 0x3c2   : > { %v1068_v59 = vsel %vm658_vm3, %v1066_v43, %v1036_v29  ;;  %v1060_v57 = vsel %vm655_vm2, %v1058_v46, %v1010_v12  ;;  %v1069_v43 = vsel %vm652_vm1, %v988_v30, %v1040_v55 }
 0x3c5   : > { %v1022_v20 = vpop.permute.xlu0 %1021  ;;  %v1000_v56 = vpop.permute.xlu1 %999 }
 0x3c6   : > { %v1063_v52 = vsel %vm652_vm1, %v913_v34, %v1022_v20  ;;  %v1057_v11 = vsel %vm652_vm1, %v10923_v51, %v1000_v56  ;;  %v1079_v51 = vmul.f32 %v1068_v59, %v10861_v17  ;;  %v1062_v56 = vsel %vm658_vm3, %v1060_v57, %v1018_v6  ;;  %v844_v34 = vld [vmem:[%s11215_s14 + $0x8] sm:$0xff] }
 0x3c7   : > { %v1065_v18 = vsel %vm655_vm2, %v1063_v52, %v1028_v33 }
 0x3c9   : > { %v1034_v25 = vpop.permute.xlu0 %1033  ;;  %v1008_v42 = vpop.permute.xlu1 %1007 }
 0x3ca   : > { %v1067_v26 = vsel %vm658_vm3, %v1065_v18, %v1034_v25  ;;  %v1059_v20 = vsel %vm655_vm2, %v1057_v11, %v1008_v42  ;;  %v1070_v18 = vsel %vm652_vm1, %v11143_v60, %v1042_v5 }
 0x3cb   : > { %v1076_v16 = vmul.f32 %v1067_v26, %v10848_v61  ;;  %v1061_v7 = vsel %vm658_vm3, %v1059_v20, %v1016_v2  ;;  %v1078_v61 = vmul.f32 %v1062_v56, %v10873_v37  ;;  %v843_v2 = vld [vmem:[%s11215_s14] sm:$0xff]  ;;  %v1237_v56 = vsub.f32 1.0, %v10915_v48 }
 0x3cc   : > { %v1075_v3 = vmul.f32 %v1061_v7, %v10854_v9  ;;  %v11229_v7 = vld [vmem:[%s13163_s3 + $0x30] sm:$0xff] }
 0x3cd   : > { %v1046_v52 = vpop.permute.xlu0 %1045  ;;  %v1048_v1 = vpop.permute.xlu1 %1047  ;;  %1145 = vmatprep.mubr.f32.mxu1 %v1076_v16  ;;  %v11224_v16 = vld [vmem:[%s13163_s3 + $0x20] sm:$0xff] }
 0x3ce   : > { %1146 = vmatmul.mubr.f32.vlgmr.msra.gmra.mrb[6].mxu1 %v1075_v3  ;;  %v1071_v25 = vsel %vm655_vm2, %v1069_v43, %v1046_v52  ;;  %v1072_v9 = vsel %vm655_vm2, %v1070_v18, %v1048_v1  ;;  %v1238_v3 = vsub.f32 1.0, %v10913_v39  ;;  %v1236_v52 = vmul.f32 %v10913_v39, %v10836_v41 }
 0x3cf   : > { %1150 = vmatprep.mubr.f32.mxu1 %v1079_v51  ;;  %v1235_v18 = vmul.f32 %v10915_v48, %v10834_v38  ;;  %v11278_v48 = vld [vmem:[%s13163_s3 + $0x28] sm:$0xff] }
 0x3d1   : > { %v1052_v17 = vpop.permute.xlu0 %1051  ;;  %v1054_v59 = vpop.permute.xlu1 %1053 }
 0x3d2   : > { %v1073_v57 = vsel %vm658_vm3, %v1071_v25, %v1052_v17  ;;  %v1074_v42 = vsel %vm658_vm3, %v1072_v9, %v1054_v59  ;;  %1151 = vmatmul.mubr.f32.gmra.mrb[8].mxu1 %v1078_v61  ;;  %v11283_v17 = vld [vmem:[%s13163_s3 + $0x38] sm:$0xff] }
 0x3d3   : > { %v1077_v46 = vmul.f32 %v1073_v57, %v10885_v47  ;;  %v1080_v11 = vmul.f32 %v1074_v42, %v10891_v50  ;;  %8543 = vmatprep.mubr.msk.f32.mxu1 %vm429_vm0, %v11229_v7 }
 0x3d5   : > { %8529 = vmatprep.mubr.f32.mxu0 %v1077_v46 }
 0x3d6   : > { %8530 = vmatmul.mubr.f32.vlgmr.msra.gmra.mrb[8].mxu0 %v1080_v11 }
 0x3d7   : > { %8536 = vmatprep.mubr.msk.f32.mxu0 %vm429_vm0, %v11224_v16 }
 0x4a1   : > { %v7514_v12 = vpop.f32.mrb[6].mxu1 }
 0x4a2   : > { %v7515_v37 = vpop.f32.mrb[7].mxu1 }
 0x4a3   : > { %v7516_v29 = vadd.f32 %v7515_v37, %v7514_v12 }
 0x4a5   : > { %v7517_v60 = vpop.f32.mrb[8].mxu1 }
 0x4a6   : > { %v7518_v5 = vpop.f32.mrb[9].mxu1 }
 0x4a7   : > { %v7519_v30 = vadd.f32 %v7518_v5, %v7517_v60 }
 0x4a9   : > { %v8531_v6 = vpop.f32.mrb[8].mxu0 }
 0x4aa   : > { %v1228_v47 = vadd.f32 %v8531_v6, %v7519_v30  ;;  %v1222_v50 = vpop.f32.mrb[9].mxu0 }
 0x4ab   : > { %v1223_v33 = vadd.f32 %v7516_v29, %v1222_v50 }
 0x4ac   : > { %v1232_v55 = vadd.f32 %v1228_v47, %v844_v34 }
 0x4ad   : > { %v1231_v4 = vadd.f32 %v1223_v33, %v843_v2  ;;  %v11338_v33 = vld [vmem:[%s13164_s4 + $0x38] sm:$0xff] }
 0x4ae   : > { %10389 = vtanh.f32 %v1232_v55 }
 0x4af   : > { %10391 = vtanh.f32 %v1231_v4 }
 0x4b8   : > { %v10390_v26 = vpop.eup %10389 }
 0x4b9   : > { %v10392_v20 = vpop.eup %10391  ;;  %1243 = vrot.lane.b32.xlu1 %v10390_v26, %s10487_s17 }
 0x4ba   : > { %1241 = vrot.lane.b32.xlu0 %v10392_v20, %s10487_s17  ;;  %v11348_v20 = vld [vmem:[%s13164_s4 + $0x30] sm:$0xff] }
 0x52b   : > { %v1244_v51 = vpop.permute.xlu1 %1243 }
 0x52c   : > { %v1248_v1 = vmul.f32 %v1244_v51, %v1238_v3  ;;  %v1242_v43 = vpop.permute.xlu0 %1241 }
 0x52d   : > { %v1247_v61 = vmul.f32 %v1242_v43, %v1237_v56 }
 0x52e   : > { %v11241_v25 = vadd.f32 %v1248_v1, %v1236_v52  ;;  %v11355_v1 = vld [vmem:[%s13164_s4 + $0x50] sm:$0xff] }
 0x52f   : > { %v11243_v9 = vadd.f32 %v1247_v61, %v1235_v18 }
 0x530   : > { %1255 = vrot.lane.b32.xlu1 %v11241_v25, %s10486_s16 }
 0x531   : > { %1253 = vrot.lane.b32.xlu0 %v11243_v9, %s10486_s16 }
 0x534   : > { %1454 = vrot.lane.b32.xlu1 %v11243_v9, %s10485_s11 }
 0x535   : > { %1466 = vrot.lane.b32.xlu0 %v11243_v9, %s10487_s17 }
 0x538   : > { %1456 = vrot.lane.b32.xlu1 %v11241_v25, %s10485_s11 }
 0x539   : > { %1468 = vrot.lane.b32.xlu0 %v11241_v25, %s10487_s17 }
 0x5a2   : > { %v11263_v38 = vpop.permute.xlu1 %1255 }
 0x5a3   : > { %1260 = vst.msk [vmem:[%s11261_s26 + $0x8] sm:$0xff] %vm652_vm1, %v11263_v38  ;;  %v11268_v41 = vpop.permute.xlu0 %1253 }
 0x5a4   : > { %1259 = vst.msk [vmem:[%s11261_s26] sm:$0xff] %vm652_vm1, %v11268_v41  ;;  %v9362_v39 = vpack.c.bf16 %v11263_v38, %v11268_v41 }
 0x5a6   : > { %9363 = vmatprep.subr.bf16.mxu0 %v9362_v39  ;;  %9367 = vmatprep.subr.bf16.mxu1 %v9362_v39  ;;  %v1455_v11 = vpop.permute.xlu1 %1454 }
 0x5a7   : > { %9365 = vmatpush3.bf16.msra.mxu0 %v9362_v39  ;;  %9369 = vmatpush3.bf16.msra.mxu1 %v9362_v39  ;;  %v1467_v12 = vpop.permute.xlu0 %1466 }
 0x5a8   : > { %9371 = vmatprep.subr.bf16.mxu0 %v10597_v10  ;;  %9403 = vmatprep.subr.bf16.mxu1 %v10634_v23 }
 0x5aa   : > { %8537 = vmatmul.mubr.msk.f32.vlgmr.msra.gmra.mrb[10].mxu0 %vm429_vm0, %v11278_v48  ;;  %8544 = vmatmul.mubr.msk.f32.vlgmr.msra.gmra.mrb[10].mxu1 %vm429_vm0, %v11283_v17  ;;  %v1457_v37 = vpop.permute.xlu1 %1456 }
 0x5ab   : > { %9373 = vmatpush3.bf16.msra.mxu0 %v10608_v14  ;;  %9405 = vmatpush3.bf16.msra.mxu1 %v10634_v23  ;;  %v1469_v29 = vpop.permute.xlu0 %1468 }
 0x5ac   : > { %9375 = vmatprep.subr.bf16.mxu0 %v10610_v15  ;;  %9407 = vmatprep.subr.bf16.mxu1 %v10672_v35 }
 0x5af   : > { %9377 = vmatpush3.bf16.msra.mxu0 %v10632_v22  ;;  %9409 = vmatpush3.bf16.msra.mxu1 %v10672_v35 }
 0x5b0   : > { %9379 = vmatprep.subr.bf16.mxu0 %v10637_v24  ;;  %9411 = vmatprep.subr.bf16.mxu1 %v10700_v44 }
 0x5b3   : > { %9381 = vmatpush3.bf16.msra.mxu0 %v10648_v27  ;;  %9413 = vmatpush3.bf16.msra.mxu1 %v10700_v44 }
 0x5b4   : > { %9383 = vmatprep.subr.bf16.mxu0 %v10661_v31  ;;  %9415 = vmatprep.subr.bf16.mxu1 %v10728_v53 }
 0x5b7   : > { %9385 = vmatpush3.bf16.msra.mxu0 %v10674_v36  ;;  %9417 = vmatpush3.bf16.msra.mxu1 %v10728_v53 }
 0x5b8   : > { %9387 = vmatprep.subr.bf16.mxu0 %v10689_v40  ;;  %9419 = vmatprep.subr.bf16.mxu1 %v10756_v62 }
 0x5bb   : > { %9389 = vmatpush3.bf16.msra.mxu0 %v10702_v45  ;;  %9421 = vmatpush3.bf16.msra.mxu1 %v10756_v62 }
 0x5bc   : > { %9391 = vmatprep.subr.bf16.mxu0 %v10717_v49  ;;  %9423 = vmatprep.subr.bf16.mxu1 %v10788_v19 }
 0x5bf   : > { %9393 = vmatpush3.bf16.msra.mxu0 %v10730_v54  ;;  %9425 = vmatpush3.bf16.msra.mxu1 %v10788_v19 }
 0x5c0   : > { %9395 = vmatprep.subr.bf16.mxu0 %v10745_v58  ;;  %9427 = vmatprep.subr.bf16.mxu1 %v10807_v28 }
 0x5c3   : > { %9397 = vmatpush3.bf16.msra.mxu0 %v10758_v63  ;;  %9429 = vmatpush3.bf16.msra.mxu1 %v10807_v28 }
 0x5c4   : > { %9399 = vmatprep.subr.bf16.mxu0 %v10776_v13  ;;  %9431 = vmatprep.subr.bf16.mxu1 %v10822_v32 }
 0x5c7   : > { %9401 = vmatpush3.bf16.msra.mxu0 %v10794_v21  ;;  %9433 = vmatpush3.bf16.msra.mxu1 %v10822_v32 }
 0x67d   : > { %v8538_v59 = vpop.f32.mrb[10].mxu0  ;;  %v8545_v57 = vpop.f32.mrb[10].mxu1 }
 0x67e   : > { %1462 = vrot.lane.b32.xlu0 %v8545_v57, %s10487_s17  ;;  %v1429_v42 = vpop.f32.mrb[11].mxu1  ;;  %1442 = vrot.lane.b32.xlu1 %v8538_v59, %s10487_s17  ;;  %v1348_v46 = vpop.f32.mrb[11].mxu0 }
 0x682   : > { %1474 = vrot.lane.b32.xlu0 %v8538_v59, %s10486_s16  ;;  %1450 = vrot.lane.b32.xlu1 %v8545_v57, %s10485_s11 }
 0x686   : > { %1460 = vrot.lane.b32.xlu0 %v1429_v42, %s10487_s17  ;;  %1440 = vrot.lane.b32.xlu1 %v1348_v46, %s10487_s17 }
 0x68a   : > { %1472 = vrot.lane.b32.xlu0 %v1348_v46, %s10486_s16  ;;  %1448 = vrot.lane.b32.xlu1 %v1429_v42, %s10485_s11 }
 0x68e   : > { %1478 = vrot.lane.b32.xlu0 %v1348_v46, %s10485_s11  ;;  %1480 = vrot.lane.b32.xlu1 %v8538_v59, %s10485_s11 }
 0x692   : > { %1484 = vrot.lane.b32.xlu0 %v1429_v42, %s10486_s16  ;;  %1486 = vrot.lane.b32.xlu1 %v8545_v57, %s10486_s16 }
 0x6f0   : > { %v1443_v60 = vpop.permute.xlu1 %1442  ;;  %v1463_v5 = vpop.permute.xlu0 %1462 }
 0x6f1   : > { %v1497_v2 = vsel %vm652_vm1, %v8538_v59, %v1463_v5  ;;  %v1491_v55 = vsel %vm652_vm1, %v11263_v38, %v1443_v60 }
 0x6f2   : > { %v1499_v4 = vsel %vm655_vm2, %v1497_v2, %v1469_v29 }
 0x6f4   : > { %v1451_v30 = vpop.permute.xlu1 %1450  ;;  %v1475_v34 = vpop.permute.xlu0 %1474 }
 0x6f5   : > { %v1493_v52 = vsel %vm655_vm2, %v1491_v55, %v1451_v30  ;;  %v1501_v43 = vsel %vm658_vm3, %v1499_v4, %v1475_v34  ;;  %v11368_v30 = vld [vmem:[%s13164_s4 + $0x48] sm:$0xff]  ;;  %v1502_v34 = vsel %vm652_vm1, %v1429_v42, %v11243_v9 }
 0x6f6   : > { %v1512_v29 = vmul.f32 %v11355_v1, %v1501_v43 }
 0x6f8   : > { %v1441_v6 = vpop.permute.xlu1 %1440  ;;  %v1461_v47 = vpop.permute.xlu0 %1460 }
 0x6f9   : > { %v1496_v50 = vsel %vm652_vm1, %v1348_v46, %v1461_v47  ;;  %v1490_v26 = vsel %vm652_vm1, %v11268_v41, %v1441_v6  ;;  %v11382_v6 = vld [vmem:[%s13164_s4 + $0x40] sm:$0xff] }
 0x6fa   : > { %v1498_v51 = vsel %vm655_vm2, %v1496_v50, %v1467_v12  ;;  %v1495_v12 = vsel %vm658_vm3, %v1493_v52, %v1457_v37  ;;  %v11377_v37 = vld [vmem:[%s13164_s4 + $0x58] sm:$0xff] }
 0x6fb   : > { %v1511_v47 = vmul.f32 %v11368_v30, %v1495_v12  ;;  %v7232_v12 = vld [vmem:[%s10909_s21 + $0x10] sm:$0xff] }
 0x6fc   : > { %v1449_v3 = vpop.permute.xlu1 %1448  ;;  %v1473_v56 = vpop.permute.xlu0 %1472 }
 0x6fd   : > { %v1492_v18 = vsel %vm655_vm2, %v1490_v26, %v1449_v3  ;;  %v1500_v61 = vsel %vm658_vm3, %v1498_v51, %v1473_v56 }
 0x6fe   : > { %v1494_v39 = vsel %vm658_vm3, %v1492_v18, %v1455_v11  ;;  %v1509_v59 = vmul.f32 %v11338_v33, %v1500_v61  ;;  %v1503_v11 = vsel %vm652_vm1, %v8545_v57, %v11241_v25 }
 0x6ff   : > { %v1508_v46 = vmul.f32 %v11348_v20, %v1494_v39  ;;  %v7233_v39 = vld [vmem:[%s10909_s21 + $0x18] sm:$0xff] }
 0x700   : > { %v1481_v60 = vpop.permute.xlu1 %1480  ;;  %1578 = vmatprep.mubr.f32.mxu0 %v1509_v59  ;;  %v1479_v5 = vpop.permute.xlu0 %1478 }
 0x701   : > { %1579 = vmatmul.mubr.f32.vlgmr.msra.gmra.mrb[12].mxu0 %v1508_v46  ;;  %v1505_v2 = vsel %vm655_vm2, %v1503_v11, %v1481_v60  ;;  %v1504_v50 = vsel %vm655_vm2, %v1502_v34, %v1479_v5 }
 0x702   : > { %1583 = vmatprep.mubr.f32.mxu0 %v1512_v29 }
 0x704   : > { %v1487_v57 = vpop.permute.xlu1 %1486  ;;  %v1485_v55 = vpop.permute.xlu0 %1484 }
 0x705   : > { %v1507_v42 = vsel %vm658_vm3, %v1505_v2, %v1487_v57  ;;  %v1506_v4 = vsel %vm658_vm3, %v1504_v50, %v1485_v55  ;;  %1584 = vmatmul.mubr.f32.gmra.mrb[14].mxu0 %v1511_v47 }
 0x706   : > { %v1513_v26 = vmul.f32 %v11377_v37, %v1507_v42  ;;  %v1510_v3 = vmul.f32 %v11382_v6, %v1506_v4  ;;  %8592 = vmatprep.mubr.msk.f32.mxu0 %vm429_vm0, %v11229_v7 }
 0x708   : > { %8578 = vmatprep.mubr.f32.mxu1 %v1510_v3  ;;  %v13278_v3 = vld [vmem:[#allocation6_spill] sm:$0xff] }
 0x709   : > { %8579 = vmatmul.mubr.f32.vlgmr.msra.gmra.mrb[12].mxu1 %v1513_v26 }
 0x70a   : > { %8585 = vmatprep.mubr.msk.f32.mxu1 %vm429_vm0, %v11224_v16 }
 0x7d4   : > { %v7578_v51 = vpop.f32.mrb[12].mxu0 }
 0x7d5   : > { %v7579_v56 = vpop.f32.mrb[13].mxu0 }
 0x7d6   : > { %v7580_v52 = vadd.f32 %v7579_v56, %v7578_v51  ;;  %v13279_v51 = vld [vmem:[#allocation4_spill] sm:$0xff]  ;;  %v13282_v56 = vld [vmem:[#allocation7_spill] sm:$0xff] }
 0x7d8   : > { %v7581_v43 = vpop.f32.mrb[14].mxu0 }
 0x7d9   : > { %v7582_v18 = vpop.f32.mrb[15].mxu0 }
 0x7da   : > { %v7583_v61 = vadd.f32 %v7582_v18, %v7581_v43  ;;  %v13284_v43 = vld [vmem:[#allocation14_spill] sm:$0xff]  ;;  %v13285_v18 = vld [vmem:[#allocation9_spill] sm:$0xff] }
 0x7dc   : > { %v8580_v59 = vpop.f32.mrb[12].mxu1 }
 0x7dd   : > { %v1661_v46 = vadd.f32 %v8580_v59, %v7583_v61  ;;  %v1655_v29 = vpop.f32.mrb[13].mxu1  ;;  %v13286_v61 = vld [vmem:[#allocation10_spill] sm:$0xff]  ;;  %v13288_v59 = vld [vmem:[#allocation12_spill] sm:$0xff] }
 0x7de   : > { %v1656_v60 = vadd.f32 %v7580_v52, %v1655_v29  ;;  %v13283_v52 = vld [vmem:[#allocation8_spill] sm:$0xff]  ;;  %v13291_v29 = vld [vmem:[#allocation15_spill] sm:$0xff] }
 0x7df   : > { %v1665_v5 = vadd.f32 %v7233_v39, %v1661_v46  ;;  %v13287_v39 = vld [vmem:[#allocation17_spill] sm:$0xff] }
 0x7e0   : > { %v1664_v11 = vadd.f32 %v7232_v12, %v1656_v60  ;;  %v13289_v46 = vld [vmem:[#allocation13_spill] sm:$0xff]  ;;  %v13290_v12 = vld [vmem:[#allocation20_spill] sm:$0xff] }
 0x7e1   : > { %v7239_v7 = vmul.f32 -1.442695, %v1665_v5  ;;  %v13292_v60 = vld [vmem:[#allocation16_spill] sm:$0xff]  ;;  %v13293_v5 = vld [vmem:[#allocation22_spill] sm:$0xff] }
 0x7e2   : > { %v7238_v34 = vmul.f32 -1.442695, %v1664_v11  ;;  %v13294_v11 = vld [vmem:[#allocation18_spill] sm:$0xff] }
 0x7e3   : > { %10393 = vpow2.f32 %v7239_v7  ;;  %v13295_v7 = vld [vmem:[#allocation19_spill] sm:$0xff] }
 0x7e4   : > { %10395 = vpow2.f32 %v7238_v34  ;;  %v13296_v34 = vld [vmem:[#allocation23_spill] sm:$0xff] }
 0x7ed   : > { %v10394_v47 = vpop.eup %10393 }
 0x7ee   : > { %v10396_v16 = vpop.eup %10395  ;;  %v1673_v2 = vadd.f32 1.0, %v10394_v47  ;;  %v13297_v47 = vld [vmem:[#allocation21_spill] sm:$0xff] }
 0x7ef   : > { %v1672_v50 = vadd.f32 1.0, %v10396_v16 }
 0x7f0   : > { %10397 = vrcp.f32 %v1673_v2 }
 0x7f1   : > { %10399 = vrcp.f32 %v1672_v50 }
 0x7fa   : > { %v11397_v57 = vpop.eup %10397 }
 0x7fb   : > { %v11399_v55 = vpop.eup %10399  ;;  %v11403_v42 = vmul.f32 %v11397_v57, %v11263_v38  ;;  %v13276_v38 = vld [vmem:[#allocation2_spill] sm:$0xff] }
 0x7fc   : > { %v11407_v4 = vmul.f32 %v11399_v55, %v11268_v41  ;;  %v13277_v41 = vld [vmem:[#allocation3_spill] sm:$0xff] }
 0x7fe   : > { %1851 = vrot.lane.b32.xlu1 %v11407_v4, %s10486_s16  ;;  %1863 = vrot.lane.b32.xlu0 %v11407_v4, %s10485_s11  ;;  %v9434_v26 = vpack.c.bf16 %v11403_v42, %v11407_v4 }
 0x800   : > { %9435 = vmatprep.subr.bf16.mxu1 %v9434_v26  ;;  %9439 = vmatprep.subr.bf16.mxu0 %v9434_v26 }
 0x801   : > { %9437 = vmatpush3.bf16.msra.mxu1 %v9434_v26  ;;  %9441 = vmatpush3.bf16.msra.mxu0 %v9434_v26 }
 0x802   : > { %1875 = vrot.lane.b32.xlu1 %v11407_v4, %s10487_s17  ;;  %1865 = vrot.lane.b32.xlu0 %v11403_v42, %s10485_s11 }
 0x803   : > { %9443 = vmatprep.subr.bf16.mxu1 %v10952_v8  ;;  %9475 = vmatprep.subr.bf16.mxu0 %v10989_v0 }
 0x804   : > { %8586 = vmatmul.mubr.msk.f32.vlgmr.msra.gmra.mrb[14].mxu1 %vm429_vm0, %v11278_v48  ;;  %8593 = vmatmul.mubr.msk.f32.vlgmr.msra.gmra.mrb[16].mxu0 %vm429_vm0, %v11283_v17  ;;  %v13280_v48 = vld [vmem:[#allocation5_spill] sm:$0xff]  ;;  %v13281_v17 = vld [vmem:[#allocation11_spill] sm:$0xff] }
 0x805   : > { %9445 = vmatpush3.bf16.msra.mxu1 %v13276_v38  ;;  %9477 = vmatpush3.bf16.msra.mxu0 %v10989_v0 }
 0x806   : > { %1877 = vrot.lane.b32.xlu1 %v11403_v42, %s10487_s17  ;;  %1853 = vrot.lane.b32.xlu0 %v11403_v42, %s10486_s16 }
 0x807   : > { %9447 = vmatprep.subr.bf16.mxu1 %v13277_v41  ;;  %9479 = vmatprep.subr.bf16.mxu0 %v13278_v3 }
 0x809   : > { %9449 = vmatpush3.bf16.msra.mxu1 %v13279_v51  ;;  %9481 = vmatpush3.bf16.msra.mxu0 %v13278_v3 }
 0x80a   : > { %9451 = vmatprep.subr.bf16.mxu1 %v13280_v48  ;;  %9483 = vmatprep.subr.bf16.mxu0 %v13281_v17 }
 0x80d   : > { %9453 = vmatpush3.bf16.msra.mxu1 %v13282_v56  ;;  %9485 = vmatpush3.bf16.msra.mxu0 %v13281_v17 }
 0x80e   : > { %9455 = vmatprep.subr.bf16.mxu1 %v13283_v52  ;;  %9487 = vmatprep.subr.bf16.mxu0 %v13284_v43 }
 0x811   : > { %9457 = vmatpush3.bf16.msra.mxu1 %v13285_v18  ;;  %9489 = vmatpush3.bf16.msra.mxu0 %v13284_v43 }
 0x812   : > { %9459 = vmatprep.subr.bf16.mxu1 %v13286_v61  ;;  %9491 = vmatprep.subr.bf16.mxu0 %v13287_v39 }
 0x815   : > { %9461 = vmatpush3.bf16.msra.mxu1 %v13288_v59  ;;  %9493 = vmatpush3.bf16.msra.mxu0 %v13287_v39 }
 0x816   : > { %9463 = vmatprep.subr.bf16.mxu1 %v13289_v46  ;;  %9495 = vmatprep.subr.bf16.mxu0 %v13290_v12 }
 0x819   : > { %9465 = vmatpush3.bf16.msra.mxu1 %v13291_v29  ;;  %9497 = vmatpush3.bf16.msra.mxu0 %v13290_v12 }
 0x81a   : > { %9467 = vmatprep.subr.bf16.mxu1 %v13292_v60  ;;  %9499 = vmatprep.subr.bf16.mxu0 %v13293_v5 }
 0x81d   : > { %9469 = vmatpush3.bf16.msra.mxu1 %v13294_v11  ;;  %9501 = vmatpush3.bf16.msra.mxu0 %v13293_v5 }
 0x81e   : > { %9471 = vmatprep.subr.bf16.mxu1 %v13295_v7  ;;  %9503 = vmatprep.subr.bf16.mxu0 %v13296_v34 }
 0x821   : > { %9473 = vmatpush3.bf16.msra.mxu1 %v13297_v47  ;;  %9505 = vmatpush3.bf16.msra.mxu0 %v13296_v34 }
 0x870   : > { %v1852_v47 = vpop.permute.xlu1 %1851  ;;  %v1864_v34 = vpop.permute.xlu0 %1863 }
 0x874   : > { %v1876_v7 = vpop.permute.xlu1 %1875  ;;  %v1866_v11 = vpop.permute.xlu0 %1865 }
 0x878   : > { %v1878_v5 = vpop.permute.xlu1 %1877  ;;  %v1854_v60 = vpop.permute.xlu0 %1853 }
 0x8d7   : > { %v8587_v16 = vpop.f32.mrb[14].mxu1  ;;  %v8594_v2 = vpop.f32.mrb[16].mxu0 }
 0x8d8   : > { %1859 = vrot.lane.b32.xlu0 %v8594_v2, %s10487_s17  ;;  %v1824_v50 = vpop.f32.mrb[17].mxu0  ;;  %1837 = vrot.lane.b32.xlu1 %v8587_v16, %s10487_s17  ;;  %v1749_v26 = vpop.f32.mrb[15].mxu1 }
 0x8dc   : > { %1871 = vrot.lane.b32.xlu0 %v8587_v16, %s10486_s16  ;;  %1845 = vrot.lane.b32.xlu1 %v8594_v2, %s10485_s11 }
 0x8e0   : > { %1857 = vrot.lane.b32.xlu0 %v1824_v50, %s10487_s17  ;;  %1835 = vrot.lane.b32.xlu1 %v1749_v26, %s10487_s17 }
 0x8e4   : > { %1869 = vrot.lane.b32.xlu0 %v1749_v26, %s10486_s16  ;;  %1843 = vrot.lane.b32.xlu1 %v1824_v50, %s10485_s11 }
 0x8e8   : > { %1881 = vrot.lane.b32.xlu0 %v1749_v26, %s10485_s11  ;;  %1883 = vrot.lane.b32.xlu1 %v8587_v16, %s10485_s11 }
 0x8ec   : > { %1887 = vrot.lane.b32.xlu0 %v1824_v50, %s10486_s16  ;;  %1889 = vrot.lane.b32.xlu1 %v8594_v2, %s10486_s16 }
 0x94a   : > { %v1860_v29 = vpop.permute.xlu0 %1859  ;;  %v1838_v12 = vpop.permute.xlu1 %1837 }
 0x94b   : > { %v1900_v18 = vsel %vm652_vm1, %v8587_v16, %v1860_v29  ;;  %v1894_v52 = vsel %vm652_vm1, %v11403_v42, %v1838_v12 }
 0x94c   : > { %v1902_v56 = vsel %vm655_vm2, %v1900_v18, %v1866_v11 }
 0x94e   : > { %v1872_v46 = vpop.permute.xlu0 %1871  ;;  %v1846_v59 = vpop.permute.xlu1 %1845 }
 0x94f   : > { %v1904_v41 = vsel %vm658_vm3, %v1902_v56, %v1872_v46  ;;  %v1896_v38 = vsel %vm655_vm2, %v1894_v52, %v1846_v59  ;;  %v1905_v56 = vsel %vm652_vm1, %v1824_v50, %v1876_v7  ;;  %v7241_v7 = vld [vmem:[%s11215_s14 + $0x18] sm:$0xff] }
 0x952   : > { %v1858_v39 = vpop.permute.xlu0 %1857  ;;  %v1836_v61 = vpop.permute.xlu1 %1835 }
 0x953   : > { %v1899_v43 = vsel %vm652_vm1, %v1749_v26, %v1858_v39  ;;  %v1893_v17 = vsel %vm652_vm1, %v11407_v4, %v1836_v61  ;;  %v1915_v4 = vmul.f32 %v11355_v1, %v1904_v41  ;;  %v1898_v61 = vsel %vm658_vm3, %v1896_v38, %v1854_v60 }
 0x954   : > { %v1901_v51 = vsel %vm655_vm2, %v1899_v43, %v1864_v34 }
 0x956   : > { %v1870_v48 = vpop.permute.xlu0 %1869  ;;  %v1844_v3 = vpop.permute.xlu1 %1843 }
 0x957   : > { %v1903_v29 = vsel %vm658_vm3, %v1901_v51, %v1870_v48  ;;  %v1895_v39 = vsel %vm655_vm2, %v1893_v17, %v1844_v3  ;;  %v1906_v51 = vsel %vm652_vm1, %v8594_v2, %v1878_v5  ;;  %v1914_v3 = vmul.f32 %v11368_v30, %v1898_v61  ;;  %v7240_v2 = vld [vmem:[%s11215_s14 + $0x10] sm:$0xff] }
 0x958   : > { %v1912_v16 = vmul.f32 %v11338_v33, %v1903_v29  ;;  %v1897_v42 = vsel %vm658_vm3, %v1895_v39, %v1852_v47  ;;  %v2073_v61 = vsub.f32 1.0, %v11399_v55 }
 0x959   : > { %v1911_v18 = vmul.f32 %v11348_v20, %v1897_v42  ;;  %v11509_v42 = vld [vmem:[%s13163_s3 + $0x50] sm:$0xff] }
 0x95a   : > { %v1882_v43 = vpop.permute.xlu0 %1881  ;;  %v1884_v12 = vpop.permute.xlu1 %1883  ;;  %1981 = vmatprep.mubr.f32.mxu1 %v1912_v16  ;;  %v11504_v16 = vld [vmem:[%s13163_s3 + $0x40] sm:$0xff] }
 0x95b   : > { %1982 = vmatmul.mubr.f32.vlgmr.msra.gmra.mrb[16].mxu1 %v1911_v18  ;;  %v1907_v33 = vsel %vm655_vm2, %v1905_v56, %v1882_v43  ;;  %v1908_v48 = vsel %vm655_vm2, %v1906_v51, %v1884_v12  ;;  %v2074_v18 = vsub.f32 1.0, %v11397_v57  ;;  %v2072_v43 = vmul.f32 %v11397_v57, %v11241_v25 }
 0x95c   : > { %1986 = vmatprep.mubr.f32.mxu1 %v1915_v4  ;;  %v2071_v51 = vmul.f32 %v11399_v55, %v11243_v9  ;;  %v11552_v55 = vld [vmem:[%s13163_s3 + $0x48] sm:$0xff] }
 0x95e   : > { %v1888_v20 = vpop.permute.xlu0 %1887  ;;  %v1890_v1 = vpop.permute.xlu1 %1889 }
 0x95f   : > { %v1909_v38 = vsel %vm658_vm3, %v1907_v33, %v1888_v20  ;;  %v1910_v41 = vsel %vm658_vm3, %v1908_v48, %v1890_v1  ;;  %1987 = vmatmul.mubr.f32.gmra.mrb[18].mxu1 %v1914_v3  ;;  %v11557_v20 = vld [vmem:[%s13163_s3 + $0x58] sm:$0xff] }
 0x960   : > { %v1913_v17 = vmul.f32 %v11382_v6, %v1909_v38  ;;  %v1916_v52 = vmul.f32 %v11377_v37, %v1910_v41  ;;  %8641 = vmatprep.mubr.msk.f32.mxu1 %vm429_vm0, %v11509_v42 }
 0x962   : > { %8627 = vmatprep.mubr.f32.mxu0 %v1913_v17 }
 0x963   : > { %8628 = vmatmul.mubr.f32.vlgmr.msra.gmra.mrb[18].mxu0 %v1916_v52 }
 0x964   : > { %8634 = vmatprep.mubr.msk.f32.mxu0 %vm429_vm0, %v11504_v16 }
 0xa2e   : > { %v7642_v30 = vpop.f32.mrb[16].mxu1 }
 0xa2f   : > { %v7643_v59 = vpop.f32.mrb[17].mxu1 }
 0xa30   : > { %v7644_v46 = vadd.f32 %v7643_v59, %v7642_v30 }
 0xa32   : > { %v7645_v60 = vpop.f32.mrb[18].mxu1 }
 0xa33   : > { %v7646_v5 = vpop.f32.mrb[19].mxu1 }
 0xa34   : > { %v7647_v11 = vadd.f32 %v7646_v5, %v7645_v60 }
 0xa36   : > { %v8629_v34 = vpop.f32.mrb[18].mxu0 }
 0xa37   : > { %v2064_v47 = vadd.f32 %v8629_v34, %v7647_v11  ;;  %v2058_v50 = vpop.f32.mrb[19].mxu0 }
 0xa38   : > { %v2059_v26 = vadd.f32 %v7644_v46, %v2058_v50 }
 0xa39   : > { %v2068_v29 = vadd.f32 %v7241_v7, %v2064_v47 }
 0xa3a   : > { %v2067_v39 = vadd.f32 %v7240_v2, %v2059_v26  ;;  %v11612_v26 = vld [vmem:[%s13164_s4 + $0x68] sm:$0xff] }
 0xa3b   : > { %10401 = vtanh.f32 %v2068_v29 }
 0xa3c   : > { %10403 = vtanh.f32 %v2067_v39 }
 0xa45   : > { %v10402_v6 = vpop.eup %10401 }
 0xa46   : > { %v10404_v37 = vpop.eup %10403  ;;  %2079 = vrot.lane.b32.xlu1 %v10402_v6, %s10487_s17 }
 0xa47   : > { %2077 = vrot.lane.b32.xlu0 %v10404_v37, %s10487_s17  ;;  %v11622_v37 = vld [vmem:[%s13164_s4 + $0x60] sm:$0xff] }
 0xab8   : > { %v2080_v4 = vpop.permute.xlu1 %2079 }
 0xab9   : > { %v2084_v12 = vmul.f32 %v2080_v4, %v2074_v18  ;;  %v2078_v56 = vpop.permute.xlu0 %2077 }
 0xaba   : > { %v2083_v3 = vmul.f32 %v2078_v56, %v2073_v61 }
 0xabb   : > { %v11521_v33 = vadd.f32 %v2084_v12, %v2072_v43  ;;  %v11629_v12 = vld [vmem:[%s13164_s4 + $0x80] sm:$0xff] }
 0xabc   : > { %v11523_v48 = vadd.f32 %v2083_v3, %v2071_v51 }
 0xabd   : > { %2091 = vrot.lane.b32.xlu1 %v11521_v33, %s10486_s16 }
 0xabe   : > { %2089 = vrot.lane.b32.xlu0 %v11523_v48, %s10486_s16 }
 0xac1   : > { %2291 = vrot.lane.b32.xlu1 %v11523_v48, %s10485_s11 }
 0xac2   : > { %2303 = vrot.lane.b32.xlu0 %v11523_v48, %s10487_s17 }
 0xac5   : > { %2293 = vrot.lane.b32.xlu1 %v11521_v33, %s10485_s11 }
 0xac6   : > { %2305 = vrot.lane.b32.xlu0 %v11521_v33, %s10487_s17 }
 0xb2f   : > { %v11537_v25 = vpop.permute.xlu1 %2091 }
 0xb30   : > { %7247 = vst.msk [vmem:[%s11261_s26 + $0x18] sm:$0xff] %vm652_vm1, %v11537_v25  ;;  %v11542_v9 = vpop.permute.xlu0 %2089 }
 0xb31   : > { %7246 = vst.msk [vmem:[%s11261_s26 + $0x10] sm:$0xff] %vm652_vm1, %v11542_v9  ;;  %v9506_v57 = vpack.c.bf16 %v11537_v25, %v11542_v9 }
 0xb33   : > { %9507 = vmatprep.subr.bf16.mxu0 %v9506_v57  ;;  %9511 = vmatprep.subr.bf16.mxu1 %v9506_v57  ;;  %v2292_v52 = vpop.permute.xlu1 %2291 }
 0xb34   : > { %9509 = vmatpush3.bf16.msra.mxu0 %v9506_v57  ;;  %9513 = vmatpush3.bf16.msra.mxu1 %v9506_v57  ;;  %v2304_v30 = vpop.permute.xlu0 %2303 }
 0xb35   : > { %9515 = vmatprep.subr.bf16.mxu0 %v10597_v10  ;;  %9547 = vmatprep.subr.bf16.mxu1 %v10634_v23 }
 0xb37   : > { %8635 = vmatmul.mubr.msk.f32.vlgmr.msra.gmra.mrb[20].mxu0 %vm429_vm0, %v11552_v55  ;;  %8642 = vmatmul.mubr.msk.f32.vlgmr.msra.gmra.mrb[20].mxu1 %vm429_vm0, %v11557_v20  ;;  %v2294_v59 = vpop.permute.xlu1 %2293 }
 0xb38   : > { %9517 = vmatpush3.bf16.msra.mxu0 %v10608_v14  ;;  %9549 = vmatpush3.bf16.msra.mxu1 %v10634_v23  ;;  %v2306_v46 = vpop.permute.xlu0 %2305 }
 0xb39   : > { %9519 = vmatprep.subr.bf16.mxu0 %v10610_v15  ;;  %9551 = vmatprep.subr.bf16.mxu1 %v10672_v35 }
 0xb3c   : > { %9521 = vmatpush3.bf16.msra.mxu0 %v10632_v22  ;;  %9553 = vmatpush3.bf16.msra.mxu1 %v10672_v35 }
 0xb3d   : > { %9523 = vmatprep.subr.bf16.mxu0 %v10637_v24  ;;  %9555 = vmatprep.subr.bf16.mxu1 %v10700_v44 }
 0xb40   : > { %9525 = vmatpush3.bf16.msra.mxu0 %v10648_v27  ;;  %9557 = vmatpush3.bf16.msra.mxu1 %v10700_v44 }
 0xb41   : > { %9527 = vmatprep.subr.bf16.mxu0 %v10661_v31  ;;  %9559 = vmatprep.subr.bf16.mxu1 %v10728_v53 }
 0xb44   : > { %9529 = vmatpush3.bf16.msra.mxu0 %v10674_v36  ;;  %9561 = vmatpush3.bf16.msra.mxu1 %v10728_v53 }
 0xb45   : > { %9531 = vmatprep.subr.bf16.mxu0 %v10689_v40  ;;  %9563 = vmatprep.subr.bf16.mxu1 %v10756_v62 }
 0xb48   : > { %9533 = vmatpush3.bf16.msra.mxu0 %v10702_v45  ;;  %9565 = vmatpush3.bf16.msra.mxu1 %v10756_v62 }
 0xb49   : > { %9535 = vmatprep.subr.bf16.mxu0 %v10717_v49  ;;  %9567 = vmatprep.subr.bf16.mxu1 %v10788_v19 }
 0xb4c   : > { %9537 = vmatpush3.bf16.msra.mxu0 %v10730_v54  ;;  %9569 = vmatpush3.bf16.msra.mxu1 %v10788_v19 }
 0xb4d   : > { %9539 = vmatprep.subr.bf16.mxu0 %v10745_v58  ;;  %9571 = vmatprep.subr.bf16.mxu1 %v10807_v28 }
 0xb50   : > { %9541 = vmatpush3.bf16.msra.mxu0 %v10758_v63  ;;  %9573 = vmatpush3.bf16.msra.mxu1 %v10807_v28 }
 0xb51   : > { %9543 = vmatprep.subr.bf16.mxu0 %v10776_v13  ;;  %9575 = vmatprep.subr.bf16.mxu1 %v10822_v32 }
 0xb54   : > { %9545 = vmatpush3.bf16.msra.mxu0 %v10794_v21  ;;  %9577 = vmatpush3.bf16.msra.mxu1 %v10822_v32 }
 0xc0a   : > { %v8636_v1 = vpop.f32.mrb[20].mxu0  ;;  %v8643_v38 = vpop.f32.mrb[20].mxu1 }
 0xc0b   : > { %2299 = vrot.lane.b32.xlu0 %v8643_v38, %s10487_s17  ;;  %v2266_v41 = vpop.f32.mrb[21].mxu1  ;;  %2279 = vrot.lane.b32.xlu1 %v8636_v1, %s10487_s17  ;;  %v2185_v17 = vpop.f32.mrb[21].mxu0 }
 0xc0f   : > { %2311 = vrot.lane.b32.xlu0 %v8636_v1, %s10486_s16  ;;  %2287 = vrot.lane.b32.xlu1 %v8643_v38, %s10485_s11 }
 0xc13   : > { %2297 = vrot.lane.b32.xlu0 %v2266_v41, %s10487_s17  ;;  %2277 = vrot.lane.b32.xlu1 %v2185_v17, %s10487_s17 }
 0xc17   : > { %2309 = vrot.lane.b32.xlu0 %v2185_v17, %s10486_s16  ;;  %2285 = vrot.lane.b32.xlu1 %v2266_v41, %s10485_s11 }
 0xc1b   : > { %2315 = vrot.lane.b32.xlu0 %v2185_v17, %s10485_s11  ;;  %2317 = vrot.lane.b32.xlu1 %v8636_v1, %s10485_s11 }
 0xc1f   : > { %2321 = vrot.lane.b32.xlu0 %v2266_v41, %s10486_s16  ;;  %2323 = vrot.lane.b32.xlu1 %v8643_v38, %s10486_s16 }
 0xc7d   : > { %v2280_v60 = vpop.permute.xlu1 %2279  ;;  %v2300_v5 = vpop.permute.xlu0 %2299 }
 0xc7e   : > { %v2334_v2 = vsel %vm652_vm1, %v8636_v1, %v2300_v5  ;;  %v2328_v29 = vsel %vm652_vm1, %v11537_v25, %v2280_v60 }
 0xc7f   : > { %v2336_v39 = vsel %vm655_vm2, %v2334_v2, %v2306_v46 }
 0xc81   : > { %v2288_v11 = vpop.permute.xlu1 %2287  ;;  %v2312_v7 = vpop.permute.xlu0 %2311 }
 0xc82   : > { %v2330_v43 = vsel %vm655_vm2, %v2328_v29, %v2288_v11  ;;  %v2338_v56 = vsel %vm658_vm3, %v2336_v39, %v2312_v7  ;;  %v11642_v11 = vld [vmem:[%s13164_s4 + $0x78] sm:$0xff]  ;;  %v2339_v7 = vsel %vm652_vm1, %v2266_v41, %v11523_v48 }
 0xc83   : > { %v2349_v46 = vmul.f32 %v11629_v12, %v2338_v56 }
 0xc85   : > { %v2278_v34 = vpop.permute.xlu1 %2277  ;;  %v2298_v47 = vpop.permute.xlu0 %2297 }
 0xc86   : > { %v2333_v50 = vsel %vm652_vm1, %v2185_v17, %v2298_v47  ;;  %v2327_v6 = vsel %vm652_vm1, %v11542_v9, %v2278_v34  ;;  %v11656_v34 = vld [vmem:[%s13164_s4 + $0x70] sm:$0xff] }
 0xc87   : > { %v2335_v4 = vsel %vm655_vm2, %v2333_v50, %v2304_v30  ;;  %v2332_v30 = vsel %vm658_vm3, %v2330_v43, %v2294_v59  ;;  %v11651_v59 = vld [vmem:[%s13164_s4 + $0x88] sm:$0xff] }
 0xc88   : > { %v2348_v47 = vmul.f32 %v11642_v11, %v2332_v30  ;;  %v7258_v30 = vld [vmem:[%s10909_s21 + $0x20] sm:$0xff] }
 0xc89   : > { %v2286_v18 = vpop.permute.xlu1 %2285  ;;  %v2310_v61 = vpop.permute.xlu0 %2309 }
 0xc8a   : > { %v2329_v51 = vsel %vm655_vm2, %v2327_v6, %v2286_v18  ;;  %v2337_v3 = vsel %vm658_vm3, %v2335_v4, %v2310_v61 }
 0xc8b   : > { %v2331_v57 = vsel %vm658_vm3, %v2329_v51, %v2292_v52  ;;  %v2346_v1 = vmul.f32 %v11612_v26, %v2337_v3  ;;  %v2340_v52 = vsel %vm652_vm1, %v8643_v38, %v11521_v33 }
 0xc8c   : > { %v2345_v17 = vmul.f32 %v11622_v37, %v2331_v57  ;;  %v7259_v57 = vld [vmem:[%s10909_s21 + $0x28] sm:$0xff] }
 0xc8d   : > { %v2318_v60 = vpop.permute.xlu1 %2317  ;;  %2415 = vmatprep.mubr.f32.mxu0 %v2346_v1  ;;  %v2316_v5 = vpop.permute.xlu0 %2315 }
 0xc8e   : > { %2416 = vmatmul.mubr.f32.vlgmr.msra.gmra.mrb[22].mxu0 %v2345_v17  ;;  %v2342_v2 = vsel %vm655_vm2, %v2340_v52, %v2318_v60  ;;  %v2341_v50 = vsel %vm655_vm2, %v2339_v7, %v2316_v5 }
 0xc8f   : > { %2420 = vmatprep.mubr.f32.mxu0 %v2349_v46 }
 0xc91   : > { %v2324_v38 = vpop.permute.xlu1 %2323  ;;  %v2322_v29 = vpop.permute.xlu0 %2321 }
 0xc92   : > { %v2344_v41 = vsel %vm658_vm3, %v2342_v2, %v2324_v38  ;;  %v2343_v39 = vsel %vm658_vm3, %v2341_v50, %v2322_v29  ;;  %2421 = vmatmul.mubr.f32.gmra.mrb[24].mxu0 %v2348_v47 }
 0xc93   : > { %v2350_v6 = vmul.f32 %v11651_v59, %v2344_v41  ;;  %v2347_v18 = vmul.f32 %v11656_v34, %v2343_v39  ;;  %8690 = vmatprep.mubr.msk.f32.mxu0 %vm429_vm0, %v11509_v42 }
 0xc95   : > { %8676 = vmatprep.mubr.f32.mxu1 %v2347_v18  ;;  %v13300_v18 = vld [vmem:[#allocation6_spill] sm:$0xff] }
 0xc96   : > { %8677 = vmatmul.mubr.f32.vlgmr.msra.gmra.mrb[22].mxu1 %v2350_v6 }
 0xc97   : > { %8683 = vmatprep.mubr.msk.f32.mxu1 %vm429_vm0, %v11504_v16 }
 0xd61   : > { %v7706_v4 = vpop.f32.mrb[22].mxu0 }
 0xd62   : > { %v7707_v61 = vpop.f32.mrb[23].mxu0 }
 0xd63   : > { %v7708_v43 = vadd.f32 %v7707_v61, %v7706_v4  ;;  %v13301_v4 = vld [vmem:[#allocation4_spill] sm:$0xff]  ;;  %v13304_v61 = vld [vmem:[#allocation7_spill] sm:$0xff] }
 0xd65   : > { %v7709_v56 = vpop.f32.mrb[24].mxu0 }
 0xd66   : > { %v7710_v51 = vpop.f32.mrb[25].mxu0 }
 0xd67   : > { %v7711_v3 = vadd.f32 %v7710_v51, %v7709_v56  ;;  %v13306_v56 = vld [vmem:[#allocation14_spill] sm:$0xff]  ;;  %v13307_v51 = vld [vmem:[#allocation9_spill] sm:$0xff] }
 0xd69   : > { %v8678_v1 = vpop.f32.mrb[22].mxu1 }
 0xd6a   : > { %v2498_v17 = vadd.f32 %v8678_v1, %v7711_v3  ;;  %v2492_v46 = vpop.f32.mrb[23].mxu1  ;;  %v13308_v3 = vld [vmem:[#allocation10_spill] sm:$0xff]  ;;  %v13310_v1 = vld [vmem:[#allocation12_spill] sm:$0xff] }
 0xd6b   : > { %v2493_v60 = vadd.f32 %v7708_v43, %v2492_v46  ;;  %v13305_v43 = vld [vmem:[#allocation8_spill] sm:$0xff]  ;;  %v13313_v46 = vld [vmem:[#allocation15_spill] sm:$0xff] }
 0xd6c   : > { %v2502_v5 = vadd.f32 %v7259_v57, %v2498_v17  ;;  %v13309_v57 = vld [vmem:[#allocation17_spill] sm:$0xff] }
 0xd6d   : > { %v2501_v52 = vadd.f32 %v7258_v30, %v2493_v60  ;;  %v13311_v17 = vld [vmem:[#allocation13_spill] sm:$0xff]  ;;  %v13312_v30 = vld [vmem:[#allocation20_spill] sm:$0xff] }
 0xd6e   : > { %v7265_v42 = vmul.f32 -1.442695, %v2502_v5  ;;  %v13314_v60 = vld [vmem:[#allocation16_spill] sm:$0xff]  ;;  %v13315_v5 = vld [vmem:[#allocation22_spill] sm:$0xff] }
 0xd6f   : > { %v7264_v7 = vmul.f32 -1.442695, %v2501_v52  ;;  %v13316_v52 = vld [vmem:[#allocation18_spill] sm:$0xff] }
 0xd70   : > { %10405 = vpow2.f32 %v7265_v42  ;;  %v13317_v42 = vld [vmem:[#allocation19_spill] sm:$0xff] }
 0xd71   : > { %10407 = vpow2.f32 %v7264_v7  ;;  %v13318_v7 = vld [vmem:[#allocation23_spill] sm:$0xff] }
 0xd7a   : > { %v10406_v47 = vpop.eup %10405 }
 0xd7b   : > { %v10408_v16 = vpop.eup %10407  ;;  %v2510_v2 = vadd.f32 1.0, %v10406_v47  ;;  %v13319_v47 = vld [vmem:[#allocation21_spill] sm:$0xff] }
 0xd7c   : > { %v2509_v50 = vadd.f32 1.0, %v10408_v16 }
 0xd7d   : > { %10409 = vrcp.f32 %v2510_v2 }
 0xd7e   : > { %10411 = vrcp.f32 %v2509_v50 }
 0xd87   : > { %v11671_v38 = vpop.eup %10409 }
 0xd88   : > { %v11673_v29 = vpop.eup %10411  ;;  %v11677_v41 = vmul.f32 %v11671_v38, %v11537_v25  ;;  %v13298_v25 = vld [vmem:[#allocation2_spill] sm:$0xff] }
 0xd89   : > { %v11681_v39 = vmul.f32 %v11673_v29, %v11542_v9  ;;  %v13299_v9 = vld [vmem:[#allocation3_spill] sm:$0xff] }
 0xd8b   : > { %2688 = vrot.lane.b32.xlu1 %v11681_v39, %s10486_s16  ;;  %2700 = vrot.lane.b32.xlu0 %v11681_v39, %s10485_s11  ;;  %v9578_v6 = vpack.c.bf16 %v11677_v41, %v11681_v39 }
 0xd8d   : > { %9579 = vmatprep.subr.bf16.mxu1 %v9578_v6  ;;  %9583 = vmatprep.subr.bf16.mxu0 %v9578_v6 }
 0xd8e   : > { %9581 = vmatpush3.bf16.msra.mxu1 %v9578_v6  ;;  %9585 = vmatpush3.bf16.msra.mxu0 %v9578_v6 }
 0xd8f   : > { %2712 = vrot.lane.b32.xlu1 %v11681_v39, %s10487_s17  ;;  %2702 = vrot.lane.b32.xlu0 %v11677_v41, %s10485_s11 }
 0xd90   : > { %9587 = vmatprep.subr.bf16.mxu1 %v10952_v8  ;;  %9619 = vmatprep.subr.bf16.mxu0 %v10989_v0 }
 0xd91   : > { %8684 = vmatmul.mubr.msk.f32.vlgmr.msra.gmra.mrb[24].mxu1 %vm429_vm0, %v11552_v55  ;;  %8691 = vmatmul.mubr.msk.f32.vlgmr.msra.gmra.mrb[26].mxu0 %vm429_vm0, %v11557_v20  ;;  %v13302_v55 = vld [vmem:[#allocation5_spill] sm:$0xff]  ;;  %v13303_v20 = vld [vmem:[#allocation11_spill] sm:$0xff] }
 0xd92   : > { %9589 = vmatpush3.bf16.msra.mxu1 %v13298_v25  ;;  %9621 = vmatpush3.bf16.msra.mxu0 %v10989_v0 }
 0xd93   : > { %2714 = vrot.lane.b32.xlu1 %v11677_v41, %s10487_s17  ;;  %2690 = vrot.lane.b32.xlu0 %v11677_v41, %s10486_s16 }
 0xd94   : > { %9591 = vmatprep.subr.bf16.mxu1 %v13299_v9  ;;  %9623 = vmatprep.subr.bf16.mxu0 %v13300_v18 }
 0xd96   : > { %9593 = vmatpush3.bf16.msra.mxu1 %v13301_v4  ;;  %9625 = vmatpush3.bf16.msra.mxu0 %v13300_v18 }
 0xd97   : > { %9595 = vmatprep.subr.bf16.mxu1 %v13302_v55  ;;  %9627 = vmatprep.subr.bf16.mxu0 %v13303_v20 }
 0xd9a   : > { %9597 = vmatpush3.bf16.msra.mxu1 %v13304_v61  ;;  %9629 = vmatpush3.bf16.msra.mxu0 %v13303_v20 }
 0xd9b   : > { %9599 = vmatprep.subr.bf16.mxu1 %v13305_v43  ;;  %9631 = vmatprep.subr.bf16.mxu0 %v13306_v56 }
 0xd9e   : > { %9601 = vmatpush3.bf16.msra.mxu1 %v13307_v51  ;;  %9633 = vmatpush3.bf16.msra.mxu0 %v13306_v56 }
 0xd9f   : > { %9603 = vmatprep.subr.bf16.mxu1 %v13308_v3  ;;  %9635 = vmatprep.subr.bf16.mxu0 %v13309_v57 }
 0xda2   : > { %9605 = vmatpush3.bf16.msra.mxu1 %v13310_v1  ;;  %9637 = vmatpush3.bf16.msra.mxu0 %v13309_v57 }
 0xda3   : > { %9607 = vmatprep.subr.bf16.mxu1 %v13311_v17  ;;  %9639 = vmatprep.subr.bf16.mxu0 %v13312_v30 }
 0xda6   : > { %9609 = vmatpush3.bf16.msra.mxu1 %v13313_v46  ;;  %9641 = vmatpush3.bf16.msra.mxu0 %v13312_v30 }
 0xda7   : > { %9611 = vmatprep.subr.bf16.mxu1 %v13314_v60  ;;  %9643 = vmatprep.subr.bf16.mxu0 %v13315_v5 }
 0xdaa   : > { %9613 = vmatpush3.bf16.msra.mxu1 %v13316_v52  ;;  %9645 = vmatpush3.bf16.msra.mxu0 %v13315_v5 }
 0xdab   : > { %9615 = vmatprep.subr.bf16.mxu1 %v13317_v42  ;;  %9647 = vmatprep.subr.bf16.mxu0 %v13318_v7 }
 0xdae   : > { %9617 = vmatpush3.bf16.msra.mxu1 %v13319_v47  ;;  %9649 = vmatpush3.bf16.msra.mxu0 %v13318_v7 }
 0xdfd   : > { %v2689_v47 = vpop.permute.xlu1 %2688  ;;  %v2701_v7 = vpop.permute.xlu0 %2700 }
 0xe01   : > { %v2713_v42 = vpop.permute.xlu1 %2712  ;;  %v2703_v52 = vpop.permute.xlu0 %2702 }
 0xe05   : > { %v2715_v5 = vpop.permute.xlu1 %2714  ;;  %v2691_v60 = vpop.permute.xlu0 %2690 }
 0xe64   : > { %v8685_v16 = vpop.f32.mrb[24].mxu1  ;;  %v8692_v2 = vpop.f32.mrb[26].mxu0 }
 0xe65   : > { %2696 = vrot.lane.b32.xlu0 %v8692_v2, %s10487_s17  ;;  %v2661_v50 = vpop.f32.mrb[27].mxu0  ;;  %2674 = vrot.lane.b32.xlu1 %v8685_v16, %s10487_s17  ;;  %v2586_v6 = vpop.f32.mrb[25].mxu1 }
 0xe69   : > { %2708 = vrot.lane.b32.xlu0 %v8685_v16, %s10486_s16  ;;  %2682 = vrot.lane.b32.xlu1 %v8692_v2, %s10485_s11 }
 0xe6d   : > { %2694 = vrot.lane.b32.xlu0 %v2661_v50, %s10487_s17  ;;  %2672 = vrot.lane.b32.xlu1 %v2586_v6, %s10487_s17 }
 0xe71   : > { %2706 = vrot.lane.b32.xlu0 %v2586_v6, %s10486_s16  ;;  %2680 = vrot.lane.b32.xlu1 %v2661_v50, %s10485_s11 }
 0xe75   : > { %2718 = vrot.lane.b32.xlu0 %v2586_v6, %s10485_s11  ;;  %2720 = vrot.lane.b32.xlu1 %v8685_v16, %s10485_s11 }
 0xe79   : > { %2724 = vrot.lane.b32.xlu0 %v2661_v50, %s10486_s16  ;;  %2726 = vrot.lane.b32.xlu1 %v8692_v2, %s10486_s16 }
 0xed7   : > { %v2697_v46 = vpop.permute.xlu0 %2696  ;;  %v2675_v30 = vpop.permute.xlu1 %2674 }
 0xed8   : > { %v2737_v51 = vsel %vm652_vm1, %v8685_v16, %v2697_v46  ;;  %v2731_v43 = vsel %vm652_vm1, %v11677_v41, %v2675_v30 }
 0xed9   : > { %v2739_v61 = vsel %vm655_vm2, %v2737_v51, %v2703_v52 }
 0xedb   : > { %v2709_v17 = vpop.permute.xlu0 %2708  ;;  %v2683_v1 = vpop.permute.xlu1 %2682 }
 0xedc   : > { %v2741_v9 = vsel %vm658_vm3, %v2739_v61, %v2709_v17  ;;  %v2733_v25 = vsel %vm655_vm2, %v2731_v43, %v2683_v1  ;;  %v2742_v61 = vsel %vm652_vm1, %v2661_v50, %v2713_v42  ;;  %v7267_v42 = vld [vmem:[%s11215_s14 + $0x28] sm:$0xff] }
 0xedf   : > { %v2695_v57 = vpop.permute.xlu0 %2694  ;;  %v2673_v3 = vpop.permute.xlu1 %2672 }
 0xee0   : > { %v2736_v56 = vsel %vm652_vm1, %v2586_v6, %v2695_v57  ;;  %v2730_v20 = vsel %vm652_vm1, %v11681_v39, %v2673_v3  ;;  %v2752_v39 = vmul.f32 %v11629_v12, %v2741_v9  ;;  %v2735_v3 = vsel %vm658_vm3, %v2733_v25, %v2691_v60 }
 0xee1   : > { %v2738_v4 = vsel %vm655_vm2, %v2736_v56, %v2701_v7 }
 0xee3   : > { %v2707_v55 = vpop.permute.xlu0 %2706  ;;  %v2681_v18 = vpop.permute.xlu1 %2680 }
 0xee4   : > { %v2740_v46 = vsel %vm658_vm3, %v2738_v4, %v2707_v55  ;;  %v2732_v57 = vsel %vm655_vm2, %v2730_v20, %v2681_v18  ;;  %v2743_v4 = vsel %vm652_vm1, %v8692_v2, %v2715_v5  ;;  %v2751_v18 = vmul.f32 %v11642_v11, %v2735_v3  ;;  %v7266_v2 = vld [vmem:[%s11215_s14 + $0x20] sm:$0xff] }
 0xee5   : > { %v2749_v16 = vmul.f32 %v11612_v26, %v2740_v46  ;;  %v2734_v41 = vsel %vm658_vm3, %v2732_v57, %v2689_v47  ;;  %v2910_v3 = vsub.f32 1.0, %v11673_v29 }
 0xee6   : > { %v2748_v51 = vmul.f32 %v11622_v37, %v2734_v41  ;;  %v11783_v41 = vld [vmem:[%s13163_s3 + $0x70] sm:$0xff] }
 0xee7   : > { %v2719_v56 = vpop.permute.xlu0 %2718  ;;  %v2721_v30 = vpop.permute.xlu1 %2720  ;;  %2818 = vmatprep.mubr.f32.mxu1 %v2749_v16  ;;  %v11778_v16 = vld [vmem:[%s13163_s3 + $0x60] sm:$0xff] }
 0xee8   : > { %2819 = vmatmul.mubr.f32.vlgmr.msra.gmra.mrb[26].mxu1 %v2748_v51  ;;  %v2744_v26 = vsel %vm655_vm2, %v2742_v61, %v2719_v56  ;;  %v2745_v55 = vsel %vm655_vm2, %v2743_v4, %v2721_v30  ;;  %v2911_v51 = vsub.f32 1.0, %v11671_v38  ;;  %v2909_v56 = vmul.f32 %v11671_v38, %v11521_v33 }
 0xee9   : > { %2823 = vmatprep.mubr.f32.mxu1 %v2752_v39  ;;  %v2908_v4 = vmul.f32 %v11673_v29, %v11523_v48  ;;  %v11826_v29 = vld [vmem:[%s13163_s3 + $0x68] sm:$0xff] }
 0xeeb   : > { %v2725_v37 = vpop.permute.xlu0 %2724  ;;  %v2727_v12 = vpop.permute.xlu1 %2726 }
 0xeec   : > { %v2746_v25 = vsel %vm658_vm3, %v2744_v26, %v2725_v37  ;;  %v2747_v9 = vsel %vm658_vm3, %v2745_v55, %v2727_v12  ;;  %2824 = vmatmul.mubr.f32.gmra.mrb[28].mxu1 %v2751_v18  ;;  %v11831_v37 = vld [vmem:[%s13163_s3 + $0x78] sm:$0xff] }
 0xeed   : > { %v2750_v20 = vmul.f32 %v11656_v34, %v2746_v25  ;;  %v2753_v43 = vmul.f32 %v11651_v59, %v2747_v9  ;;  %8739 = vmatprep.mubr.msk.f32.mxu1 %vm429_vm0, %v11783_v41 }
 0xeef   : > { %8725 = vmatprep.mubr.f32.mxu0 %v2750_v20 }
 0xef0   : > { %8726 = vmatmul.mubr.f32.vlgmr.msra.gmra.mrb[28].mxu0 %v2753_v43 }
 0xef1   : > { %8732 = vmatprep.mubr.msk.f32.mxu0 %vm429_vm0, %v11778_v16 }
 0xfbb   : > { %v7770_v11 = vpop.f32.mrb[26].mxu1 }
 0xfbc   : > { %v7771_v1 = vpop.f32.mrb[27].mxu1 }
 0xfbd   : > { %v7772_v17 = vadd.f32 %v7771_v1, %v7770_v11 }
 0xfbf   : > { %v7773_v60 = vpop.f32.mrb[28].mxu1 }
 0xfc0   : > { %v7774_v5 = vpop.f32.mrb[29].mxu1 }
 0xfc1   : > { %v7775_v52 = vadd.f32 %v7774_v5, %v7773_v60 }
 0xfc3   : > { %v8727_v7 = vpop.f32.mrb[28].mxu0 }
 0xfc4   : > { %v2901_v47 = vadd.f32 %v8727_v7, %v7775_v52  ;;  %v2895_v50 = vpop.f32.mrb[29].mxu0 }
 0xfc5   : > { %v2896_v6 = vadd.f32 %v7772_v17, %v2895_v50 }
 0xfc6   : > { %v2905_v46 = vadd.f32 %v7267_v42, %v2901_v47 }
 0xfc7   : > { %v2904_v57 = vadd.f32 %v7266_v2, %v2896_v6  ;;  %v11886_v6 = vld [vmem:[%s13164_s4 + $0x98] sm:$0xff] }
 0xfc8   : > { %10413 = vtanh.f32 %v2905_v46 }
 0xfc9   : > { %10415 = vtanh.f32 %v2904_v57 }
 0xfd2   : > { %v10414_v34 = vpop.eup %10413 }
 0xfd3   : > { %v10416_v59 = vpop.eup %10415  ;;  %2916 = vrot.lane.b32.xlu1 %v10414_v34, %s10487_s17 }
 0xfd4   : > { %2914 = vrot.lane.b32.xlu0 %v10416_v59, %s10487_s17  ;;  %v11896_v59 = vld [vmem:[%s13164_s4 + $0x90] sm:$0xff] }
0x1045   : > { %v2917_v39 = vpop.permute.xlu1 %2916 }
0x1046   : > { %v2921_v30 = vmul.f32 %v2917_v39, %v2911_v51  ;;  %v2915_v61 = vpop.permute.xlu0 %2914 }
0x1047   : > { %v2920_v18 = vmul.f32 %v2915_v61, %v2910_v3 }
0x1048   : > { %v11795_v26 = vadd.f32 %v2921_v30, %v2909_v56  ;;  %v11903_v30 = vld [vmem:[%s13164_s4 + $0xb0] sm:$0xff] }
0x1049   : > { %v11797_v55 = vadd.f32 %v2920_v18, %v2908_v4 }
0x104a   : > { %2928 = vrot.lane.b32.xlu1 %v11795_v26, %s10486_s16 }
0x104b   : > { %2926 = vrot.lane.b32.xlu0 %v11797_v55, %s10486_s16 }
0x104e   : > { %3128 = vrot.lane.b32.xlu1 %v11797_v55, %s10485_s11 }
0x104f   : > { %3140 = vrot.lane.b32.xlu0 %v11797_v55, %s10487_s17 }
0x1052   : > { %3130 = vrot.lane.b32.xlu1 %v11795_v26, %s10485_s11 }
0x1053   : > { %3142 = vrot.lane.b32.xlu0 %v11795_v26, %s10487_s17 }
0x10bc   : > { %v11811_v33 = vpop.permute.xlu1 %2928 }
0x10bd   : > { %7273 = vst.msk [vmem:[%s11261_s26 + $0x28] sm:$0xff] %vm652_vm1, %v11811_v33  ;;  %v11816_v48 = vpop.permute.xlu0 %2926 }
0x10be   : > { %7272 = vst.msk [vmem:[%s11261_s26 + $0x20] sm:$0xff] %vm652_vm1, %v11816_v48  ;;  %v9650_v38 = vpack.c.bf16 %v11811_v33, %v11816_v48 }
0x10c0   : > { %9651 = vmatprep.subr.bf16.mxu0 %v9650_v38  ;;  %9655 = vmatprep.subr.bf16.mxu1 %v9650_v38  ;;  %v3129_v43 = vpop.permute.xlu1 %3128 }
0x10c1   : > { %9653 = vmatpush3.bf16.msra.mxu0 %v9650_v38  ;;  %9657 = vmatpush3.bf16.msra.mxu1 %v9650_v38  ;;  %v3141_v11 = vpop.permute.xlu0 %3140 }
0x10c2   : > { %9659 = vmatprep.subr.bf16.mxu0 %v10597_v10  ;;  %9691 = vmatprep.subr.bf16.mxu1 %v10634_v23 }
0x10c4   : > { %8733 = vmatmul.mubr.msk.f32.vlgmr.msra.gmra.mrb[30].mxu0 %vm429_vm0, %v11826_v29  ;;  %8740 = vmatmul.mubr.msk.f32.vlgmr.msra.gmra.mrb[30].mxu1 %vm429_vm0, %v11831_v37  ;;  %v3131_v1 = vpop.permute.xlu1 %3130 }
0x10c5   : > { %9661 = vmatpush3.bf16.msra.mxu0 %v10608_v14  ;;  %9693 = vmatpush3.bf16.msra.mxu1 %v10634_v23  ;;  %v3143_v17 = vpop.permute.xlu0 %3142 }
0x10c6   : > { %9663 = vmatprep.subr.bf16.mxu0 %v10610_v15  ;;  %9695 = vmatprep.subr.bf16.mxu1 %v10672_v35 }
0x10c9   : > { %9665 = vmatpush3.bf16.msra.mxu0 %v10632_v22  ;;  %9697 = vmatpush3.bf16.msra.mxu1 %v10672_v35 }
0x10ca   : > { %9667 = vmatprep.subr.bf16.mxu0 %v10637_v24  ;;  %9699 = vmatprep.subr.bf16.mxu1 %v10700_v44 }
0x10cd   : > { %9669 = vmatpush3.bf16.msra.mxu0 %v10648_v27  ;;  %9701 = vmatpush3.bf16.msra.mxu1 %v10700_v44 }
0x10ce   : > { %9671 = vmatprep.subr.bf16.mxu0 %v10661_v31  ;;  %9703 = vmatprep.subr.bf16.mxu1 %v10728_v53 }
0x10d1   : > { %9673 = vmatpush3.bf16.msra.mxu0 %v10674_v36  ;;  %9705 = vmatpush3.bf16.msra.mxu1 %v10728_v53 }
0x10d2   : > { %9675 = vmatprep.subr.bf16.mxu0 %v10689_v40  ;;  %9707 = vmatprep.subr.bf16.mxu1 %v10756_v62 }
0x10d5   : > { %9677 = vmatpush3.bf16.msra.mxu0 %v10702_v45  ;;  %9709 = vmatpush3.bf16.msra.mxu1 %v10756_v62 }
0x10d6   : > { %9679 = vmatprep.subr.bf16.mxu0 %v10717_v49  ;;  %9711 = vmatprep.subr.bf16.mxu1 %v10788_v19 }
0x10d9   : > { %9681 = vmatpush3.bf16.msra.mxu0 %v10730_v54  ;;  %9713 = vmatpush3.bf16.msra.mxu1 %v10788_v19 }
0x10da   : > { %9683 = vmatprep.subr.bf16.mxu0 %v10745_v58  ;;  %9715 = vmatprep.subr.bf16.mxu1 %v10807_v28 }
0x10dd   : > { %9685 = vmatpush3.bf16.msra.mxu0 %v10758_v63  ;;  %9717 = vmatpush3.bf16.msra.mxu1 %v10807_v28 }
0x10de   : > { %9687 = vmatprep.subr.bf16.mxu0 %v10776_v13  ;;  %9719 = vmatprep.subr.bf16.mxu1 %v10822_v32 }
0x10e1   : > { %9689 = vmatpush3.bf16.msra.mxu0 %v10794_v21  ;;  %9721 = vmatpush3.bf16.msra.mxu1 %v10822_v32 }
0x1197   : > { %v8734_v12 = vpop.f32.mrb[30].mxu0  ;;  %v8741_v25 = vpop.f32.mrb[30].mxu1 }
0x1198   : > { %3136 = vrot.lane.b32.xlu0 %v8741_v25, %s10487_s17  ;;  %v3103_v9 = vpop.f32.mrb[31].mxu1  ;;  %3116 = vrot.lane.b32.xlu1 %v8734_v12, %s10487_s17  ;;  %v3022_v20 = vpop.f32.mrb[31].mxu0 }
0x119c   : > { %3148 = vrot.lane.b32.xlu0 %v8734_v12, %s10486_s16  ;;  %3124 = vrot.lane.b32.xlu1 %v8741_v25, %s10485_s11 }
0x11a0   : > { %3134 = vrot.lane.b32.xlu0 %v3103_v9, %s10487_s17  ;;  %3114 = vrot.lane.b32.xlu1 %v3022_v20, %s10487_s17 }
0x11a4   : > { %3146 = vrot.lane.b32.xlu0 %v3022_v20, %s10486_s16  ;;  %3122 = vrot.lane.b32.xlu1 %v3103_v9, %s10485_s11 }
0x11a8   : > { %3152 = vrot.lane.b32.xlu0 %v3022_v20, %s10485_s11  ;;  %3154 = vrot.lane.b32.xlu1 %v8734_v12, %s10485_s11 }
0x11ac   : > { %3158 = vrot.lane.b32.xlu0 %v3103_v9, %s10486_s16  ;;  %3160 = vrot.lane.b32.xlu1 %v8741_v25, %s10486_s16 }
0x120a   : > { %v3117_v60 = vpop.permute.xlu1 %3116  ;;  %v3137_v5 = vpop.permute.xlu0 %3136 }
0x120b   : > { %v3171_v2 = vsel %vm652_vm1, %v8734_v12, %v3137_v5  ;;  %v3165_v46 = vsel %vm652_vm1, %v11811_v33, %v3117_v60 }
0x120c   : > { %v3173_v57 = vsel %vm655_vm2, %v3171_v2, %v3143_v17 }
0x120e   : > { %v3125_v52 = vpop.permute.xlu1 %3124  ;;  %v3149_v42 = vpop.permute.xlu0 %3148 }
0x120f   : > { %v3167_v56 = vsel %vm655_vm2, %v3165_v46, %v3125_v52  ;;  %v3175_v61 = vsel %vm658_vm3, %v3173_v57, %v3149_v42  ;;  %v11916_v52 = vld [vmem:[%s13164_s4 + $0xa8] sm:$0xff]  ;;  %v3176_v42 = vsel %vm652_vm1, %v3103_v9, %v11797_v55 }
0x1210   : > { %v3186_v17 = vmul.f32 %v11903_v30, %v3175_v61 }
0x1212   : > { %v3115_v7 = vpop.permute.xlu1 %3114  ;;  %v3135_v47 = vpop.permute.xlu0 %3134 }
0x1213   : > { %v3170_v50 = vsel %vm652_vm1, %v3022_v20, %v3135_v47  ;;  %v3164_v34 = vsel %vm652_vm1, %v11816_v48, %v3115_v7  ;;  %v11930_v7 = vld [vmem:[%s13164_s4 + $0xa0] sm:$0xff] }
0x1214   : > { %v3172_v39 = vsel %vm655_vm2, %v3170_v50, %v3141_v11  ;;  %v3169_v11 = vsel %vm658_vm3, %v3167_v56, %v3131_v1  ;;  %v11925_v1 = vld [vmem:[%s13164_s4 + $0xb8] sm:$0xff] }
0x1215   : > { %v3185_v47 = vmul.f32 %v11916_v52, %v3169_v11  ;;  %v7284_v11 = vld [vmem:[%s10909_s21 + $0x30] sm:$0xff] }
0x1216   : > { %v3123_v51 = vpop.permute.xlu1 %3122  ;;  %v3147_v3 = vpop.permute.xlu0 %3146 }
0x1217   : > { %v3166_v4 = vsel %vm655_vm2, %v3164_v34, %v3123_v51  ;;  %v3174_v18 = vsel %vm658_vm3, %v3172_v39, %v3147_v3 }
0x1218   : > { %v3168_v38 = vsel %vm658_vm3, %v3166_v4, %v3129_v43  ;;  %v3183_v12 = vmul.f32 %v11886_v6, %v3174_v18  ;;  %v3177_v43 = vsel %vm652_vm1, %v8741_v25, %v11795_v26 }
0x1219   : > { %v3182_v20 = vmul.f32 %v11896_v59, %v3168_v38  ;;  %v7285_v38 = vld [vmem:[%s10909_s21 + $0x38] sm:$0xff] }
0x121a   : > { %v3155_v60 = vpop.permute.xlu1 %3154  ;;  %3252 = vmatprep.mubr.f32.mxu0 %v3183_v12  ;;  %v3153_v5 = vpop.permute.xlu0 %3152 }
0x121b   : > { %3253 = vmatmul.mubr.f32.vlgmr.msra.gmra.mrb[32].mxu0 %v3182_v20  ;;  %v3179_v2 = vsel %vm655_vm2, %v3177_v43, %v3155_v60  ;;  %v3178_v50 = vsel %vm655_vm2, %v3176_v42, %v3153_v5 }
0x121c   : > { %3257 = vmatprep.mubr.f32.mxu0 %v3186_v17 }
0x121e   : > { %v3161_v25 = vpop.permute.xlu1 %3160  ;;  %v3159_v46 = vpop.permute.xlu0 %3158 }
0x121f   : > { %v3181_v9 = vsel %vm658_vm3, %v3179_v2, %v3161_v25  ;;  %v3180_v57 = vsel %vm658_vm3, %v3178_v50, %v3159_v46  ;;  %3258 = vmatmul.mubr.f32.gmra.mrb[34].mxu0 %v3185_v47 }
0x1220   : > { %v3187_v34 = vmul.f32 %v11925_v1, %v3181_v9  ;;  %v3184_v51 = vmul.f32 %v11930_v7, %v3180_v57  ;;  %8788 = vmatprep.mubr.msk.f32.mxu0 %vm429_vm0, %v11783_v41 }
0x1222   : > { %8774 = vmatprep.mubr.f32.mxu1 %v3184_v51  ;;  %v13322_v51 = vld [vmem:[#allocation6_spill] sm:$0xff] }
0x1223   : > { %8775 = vmatmul.mubr.f32.vlgmr.msra.gmra.mrb[32].mxu1 %v3187_v34 }
0x1224   : > { %8781 = vmatprep.mubr.msk.f32.mxu1 %vm429_vm0, %v11778_v16 }
0x12ee   : > { %v7834_v39 = vpop.f32.mrb[32].mxu0 }
0x12ef   : > { %v7835_v3 = vpop.f32.mrb[33].mxu0 }
0x12f0   : > { %v7836_v56 = vadd.f32 %v7835_v3, %v7834_v39  ;;  %v13323_v39 = vld [vmem:[#allocation4_spill] sm:$0xff]  ;;  %v13326_v3 = vld [vmem:[#allocation7_spill] sm:$0xff] }
0x12f2   : > { %v7837_v61 = vpop.f32.mrb[34].mxu0 }
0x12f3   : > { %v7838_v4 = vpop.f32.mrb[35].mxu0 }
0x12f4   : > { %v7839_v18 = vadd.f32 %v7838_v4, %v7837_v61  ;;  %v13328_v61 = vld [vmem:[#allocation14_spill] sm:$0xff]  ;;  %v13329_v4 = vld [vmem:[#allocation9_spill] sm:$0xff] }
0x12f6   : > { %v8776_v12 = vpop.f32.mrb[32].mxu1 }
0x12f7   : > { %v3335_v20 = vadd.f32 %v8776_v12, %v7839_v18  ;;  %v3329_v17 = vpop.f32.mrb[33].mxu1  ;;  %v13330_v18 = vld [vmem:[#allocation10_spill] sm:$0xff]  ;;  %v13332_v12 = vld [vmem:[#allocation12_spill] sm:$0xff] }
0x12f8   : > { %v3330_v60 = vadd.f32 %v7836_v56, %v3329_v17  ;;  %v13327_v56 = vld [vmem:[#allocation8_spill] sm:$0xff]  ;;  %v13335_v17 = vld [vmem:[#allocation15_spill] sm:$0xff] }
0x12f9   : > { %v3339_v5 = vadd.f32 %v7285_v38, %v3335_v20  ;;  %v13331_v38 = vld [vmem:[#allocation17_spill] sm:$0xff] }
0x12fa   : > { %v3338_v43 = vadd.f32 %v7284_v11, %v3330_v60  ;;  %v13333_v20 = vld [vmem:[#allocation13_spill] sm:$0xff]  ;;  %v13334_v11 = vld [vmem:[#allocation20_spill] sm:$0xff] }
0x12fb   : > { %v7291_v41 = vmul.f32 -1.442695, %v3339_v5  ;;  %v13336_v60 = vld [vmem:[#allocation16_spill] sm:$0xff]  ;;  %v13337_v5 = vld [vmem:[#allocation22_spill] sm:$0xff] }
0x12fc   : > { %v7290_v42 = vmul.f32 -1.442695, %v3338_v43  ;;  %v13338_v43 = vld [vmem:[#allocation18_spill] sm:$0xff] }
0x12fd   : > { %10417 = vpow2.f32 %v7291_v41  ;;  %v13339_v41 = vld [vmem:[#allocation19_spill] sm:$0xff] }
0x12fe   : > { %10419 = vpow2.f32 %v7290_v42  ;;  %v13340_v42 = vld [vmem:[#allocation23_spill] sm:$0xff] }
0x1307   : > { %v10418_v47 = vpop.eup %10417 }
0x1308   : > { %v10420_v16 = vpop.eup %10419  ;;  %v3347_v2 = vadd.f32 1.0, %v10418_v47  ;;  %v13341_v47 = vld [vmem:[#allocation21_spill] sm:$0xff] }
0x1309   : > { %v3346_v50 = vadd.f32 1.0, %v10420_v16 }
0x130a   : > { %10421 = vrcp.f32 %v3347_v2 }
0x130b   : > { %10423 = vrcp.f32 %v3346_v50 }
0x1314   : > { %v11945_v25 = vpop.eup %10421 }
0x1315   : > { %v11947_v46 = vpop.eup %10423  ;;  %v11951_v9 = vmul.f32 %v11945_v25, %v11811_v33  ;;  %v13320_v33 = vld [vmem:[#allocation2_spill] sm:$0xff] }
0x1316   : > { %v11955_v57 = vmul.f32 %v11947_v46, %v11816_v48  ;;  %v13321_v48 = vld [vmem:[#allocation3_spill] sm:$0xff] }
0x1318   : > { %3525 = vrot.lane.b32.xlu1 %v11955_v57, %s10486_s16  ;;  %3537 = vrot.lane.b32.xlu0 %v11955_v57, %s10485_s11  ;;  %v9722_v34 = vpack.c.bf16 %v11951_v9, %v11955_v57 }
0x131a   : > { %9723 = vmatprep.subr.bf16.mxu1 %v9722_v34  ;;  %9727 = vmatprep.subr.bf16.mxu0 %v9722_v34 }
0x131b   : > { %9725 = vmatpush3.bf16.msra.mxu1 %v9722_v34  ;;  %9729 = vmatpush3.bf16.msra.mxu0 %v9722_v34 }
0x131c   : > { %3549 = vrot.lane.b32.xlu1 %v11955_v57, %s10487_s17  ;;  %3539 = vrot.lane.b32.xlu0 %v11951_v9, %s10485_s11 }
0x131d   : > { %9731 = vmatprep.subr.bf16.mxu1 %v10952_v8  ;;  %9763 = vmatprep.subr.bf16.mxu0 %v10989_v0 }
0x131e   : > { %8782 = vmatmul.mubr.msk.f32.vlgmr.msra.gmra.mrb[34].mxu1 %vm429_vm0, %v11826_v29  ;;  %8789 = vmatmul.mubr.msk.f32.vlgmr.msra.gmra.mrb[36].mxu0 %vm429_vm0, %v11831_v37  ;;  %v13324_v29 = vld [vmem:[#allocation5_spill] sm:$0xff]  ;;  %v13325_v37 = vld [vmem:[#allocation11_spill] sm:$0xff] }
0x131f   : > { %9733 = vmatpush3.bf16.msra.mxu1 %v13320_v33  ;;  %9765 = vmatpush3.bf16.msra.mxu0 %v10989_v0 }
0x1320   : > { %3551 = vrot.lane.b32.xlu1 %v11951_v9, %s10487_s17  ;;  %3527 = vrot.lane.b32.xlu0 %v11951_v9, %s10486_s16 }
0x1321   : > { %9735 = vmatprep.subr.bf16.mxu1 %v13321_v48  ;;  %9767 = vmatprep.subr.bf16.mxu0 %v13322_v51 }
0x1323   : > { %9737 = vmatpush3.bf16.msra.mxu1 %v13323_v39  ;;  %9769 = vmatpush3.bf16.msra.mxu0 %v13322_v51 }
0x1324   : > { %9739 = vmatprep.subr.bf16.mxu1 %v13324_v29  ;;  %9771 = vmatprep.subr.bf16.mxu0 %v13325_v37 }
0x1327   : > { %9741 = vmatpush3.bf16.msra.mxu1 %v13326_v3  ;;  %9773 = vmatpush3.bf16.msra.mxu0 %v13325_v37 }
0x1328   : > { %9743 = vmatprep.subr.bf16.mxu1 %v13327_v56  ;;  %9775 = vmatprep.subr.bf16.mxu0 %v13328_v61 }
0x132b   : > { %9745 = vmatpush3.bf16.msra.mxu1 %v13329_v4  ;;  %9777 = vmatpush3.bf16.msra.mxu0 %v13328_v61 }
0x132c   : > { %9747 = vmatprep.subr.bf16.mxu1 %v13330_v18  ;;  %9779 = vmatprep.subr.bf16.mxu0 %v13331_v38 }
0x132f   : > { %9749 = vmatpush3.bf16.msra.mxu1 %v13332_v12  ;;  %9781 = vmatpush3.bf16.msra.mxu0 %v13331_v38 }
0x1330   : > { %9751 = vmatprep.subr.bf16.mxu1 %v13333_v20  ;;  %9783 = vmatprep.subr.bf16.mxu0 %v13334_v11 }
0x1333   : > { %9753 = vmatpush3.bf16.msra.mxu1 %v13335_v17  ;;  %9785 = vmatpush3.bf16.msra.mxu0 %v13334_v11 }
0x1334   : > { %9755 = vmatprep.subr.bf16.mxu1 %v13336_v60  ;;  %9787 = vmatprep.subr.bf16.mxu0 %v13337_v5 }
0x1337   : > { %9757 = vmatpush3.bf16.msra.mxu1 %v13338_v43  ;;  %9789 = vmatpush3.bf16.msra.mxu0 %v13337_v5 }
0x1338   : > { %9759 = vmatprep.subr.bf16.mxu1 %v13339_v41  ;;  %9791 = vmatprep.subr.bf16.mxu0 %v13340_v42 }
0x133b   : > { %9761 = vmatpush3.bf16.msra.mxu1 %v13341_v47  ;;  %9793 = vmatpush3.bf16.msra.mxu0 %v13340_v42 }
0x138a   : > { %v3526_v47 = vpop.permute.xlu1 %3525  ;;  %v3538_v42 = vpop.permute.xlu0 %3537 }
0x138e   : > { %v3550_v41 = vpop.permute.xlu1 %3549  ;;  %v3540_v43 = vpop.permute.xlu0 %3539 }
0x1392   : > { %v3552_v5 = vpop.permute.xlu1 %3551  ;;  %v3528_v60 = vpop.permute.xlu0 %3527 }
0x13f1   : > { %v8783_v16 = vpop.f32.mrb[34].mxu1  ;;  %v8790_v2 = vpop.f32.mrb[36].mxu0 }
0x13f2   : > { %3533 = vrot.lane.b32.xlu0 %v8790_v2, %s10487_s17  ;;  %v3498_v50 = vpop.f32.mrb[37].mxu0  ;;  %3511 = vrot.lane.b32.xlu1 %v8783_v16, %s10487_s17  ;;  %v3423_v34 = vpop.f32.mrb[35].mxu1 }
0x13f6   : > { %3545 = vrot.lane.b32.xlu0 %v8783_v16, %s10486_s16  ;;  %3519 = vrot.lane.b32.xlu1 %v8790_v2, %s10485_s11 }
0x13fa   : > { %3531 = vrot.lane.b32.xlu0 %v3498_v50, %s10487_s17  ;;  %3509 = vrot.lane.b32.xlu1 %v3423_v34, %s10487_s17 }
0x13fe   : > { %3543 = vrot.lane.b32.xlu0 %v3423_v34, %s10486_s16  ;;  %3517 = vrot.lane.b32.xlu1 %v3498_v50, %s10485_s11 }
0x1402   : > { %3555 = vrot.lane.b32.xlu0 %v3423_v34, %s10485_s11  ;;  %3557 = vrot.lane.b32.xlu1 %v8783_v16, %s10485_s11 }
0x1406   : > { %3561 = vrot.lane.b32.xlu0 %v3498_v50, %s10486_s16  ;;  %3563 = vrot.lane.b32.xlu1 %v8790_v2, %s10486_s16 }
0x1464   : > { %v3534_v17 = vpop.permute.xlu0 %3533  ;;  %v3512_v11 = vpop.permute.xlu1 %3511 }
0x1465   : > { %v3574_v4 = vsel %vm652_vm1, %v8783_v16, %v3534_v17  ;;  %v3568_v56 = vsel %vm652_vm1, %v11951_v9, %v3512_v11 }
0x1466   : > { %v3576_v3 = vsel %vm655_vm2, %v3574_v4, %v3540_v43 }
0x1468   : > { %v3546_v20 = vpop.permute.xlu0 %3545  ;;  %v3520_v12 = vpop.permute.xlu1 %3519 }
0x1469   : > { %v3578_v48 = vsel %vm658_vm3, %v3576_v3, %v3546_v20  ;;  %v3570_v33 = vsel %vm655_vm2, %v3568_v56, %v3520_v12  ;;  %v3579_v3 = vsel %vm652_vm1, %v3498_v50, %v3550_v41  ;;  %v7293_v41 = vld [vmem:[%s11215_s14 + $0x38] sm:$0xff] }
0x146c   : > { %v3532_v38 = vpop.permute.xlu0 %3531  ;;  %v3510_v18 = vpop.permute.xlu1 %3509 }
0x146d   : > { %v3573_v61 = vsel %vm652_vm1, %v3423_v34, %v3532_v38  ;;  %v3567_v37 = vsel %vm652_vm1, %v11955_v57, %v3510_v18  ;;  %v3589_v57 = vmul.f32 %v11903_v30, %v3578_v48  ;;  %v3572_v18 = vsel %vm658_vm3, %v3570_v33, %v3528_v60 }
0x146e   : > { %v3575_v39 = vsel %vm655_vm2, %v3573_v61, %v3538_v42 }
0x1470   : > { %v3544_v29 = vpop.permute.xlu0 %3543  ;;  %v3518_v51 = vpop.permute.xlu1 %3517 }
0x1471   : > { %v3577_v17 = vsel %vm658_vm3, %v3575_v39, %v3544_v29  ;;  %v3569_v38 = vsel %vm655_vm2, %v3567_v37, %v3518_v51  ;;  %v3580_v39 = vsel %vm652_vm1, %v8790_v2, %v3552_v5  ;;  %v3588_v51 = vmul.f32 %v11916_v52, %v3572_v18  ;;  %v7292_v2 = vld [vmem:[%s11215_s14 + $0x30] sm:$0xff] }
0x1472   : > { %v3586_v16 = vmul.f32 %v11886_v6, %v3577_v17  ;;  %v3571_v9 = vsel %vm658_vm3, %v3569_v38, %v3526_v47  ;;  %v3747_v18 = vsub.f32 1.0, %v11947_v46 }
0x1473   : > { %v3585_v4 = vmul.f32 %v11896_v59, %v3571_v9  ;;  %v12057_v9 = vld [vmem:[%s13163_s3 + $0x90] sm:$0xff] }
0x1474   : > { %v3556_v61 = vpop.permute.xlu0 %3555  ;;  %v3558_v11 = vpop.permute.xlu1 %3557  ;;  %3655 = vmatprep.mubr.f32.mxu1 %v3586_v16  ;;  %v12052_v16 = vld [vmem:[%s13163_s3 + $0x80] sm:$0xff] }
0x1475   : > { %3656 = vmatmul.mubr.f32.vlgmr.msra.gmra.mrb[36].mxu1 %v3585_v4  ;;  %v3581_v6 = vsel %vm655_vm2, %v3579_v3, %v3556_v61  ;;  %v3582_v29 = vsel %vm655_vm2, %v3580_v39, %v3558_v11  ;;  %v3748_v4 = vsub.f32 1.0, %v11945_v25  ;;  %v3746_v61 = vmul.f32 %v11945_v25, %v11795_v26 }
0x1476   : > { %3660 = vmatprep.mubr.f32.mxu1 %v3589_v57  ;;  %v3745_v39 = vmul.f32 %v11947_v46, %v11797_v55  ;;  %v12100_v46 = vld [vmem:[%s13163_s3 + $0x88] sm:$0xff] }
0x1478   : > { %v3562_v59 = vpop.permute.xlu0 %3561  ;;  %v3564_v30 = vpop.permute.xlu1 %3563 }
0x1479   : > { %v3583_v33 = vsel %vm658_vm3, %v3581_v6, %v3562_v59  ;;  %v3584_v48 = vsel %vm658_vm3, %v3582_v29, %v3564_v30  ;;  %3661 = vmatmul.mubr.f32.gmra.mrb[38].mxu1 %v3588_v51  ;;  %v12105_v59 = vld [vmem:[%s13163_s3 + $0x98] sm:$0xff] }
0x147a   : > { %v3587_v37 = vmul.f32 %v11930_v7, %v3583_v33  ;;  %v3590_v56 = vmul.f32 %v11925_v1, %v3584_v48  ;;  %8837 = vmatprep.mubr.msk.f32.mxu1 %vm429_vm0, %v12057_v9 }
0x147c   : > { %8823 = vmatprep.mubr.f32.mxu0 %v3587_v37 }
0x147d   : > { %8824 = vmatmul.mubr.f32.vlgmr.msra.gmra.mrb[38].mxu0 %v3590_v56 }
0x147e   : > { %8830 = vmatprep.mubr.msk.f32.mxu0 %vm429_vm0, %v12052_v16 }
0x1548   : > { %v7898_v52 = vpop.f32.mrb[36].mxu1 }
0x1549   : > { %v7899_v12 = vpop.f32.mrb[37].mxu1 }
0x154a   : > { %v7900_v20 = vadd.f32 %v7899_v12, %v7898_v52 }
0x154c   : > { %v7901_v60 = vpop.f32.mrb[38].mxu1 }
0x154d   : > { %v7902_v5 = vpop.f32.mrb[39].mxu1 }
0x154e   : > { %v7903_v43 = vadd.f32 %v7902_v5, %v7901_v60 }
0x1550   : > { %v8825_v42 = vpop.f32.mrb[38].mxu0 }
0x1551   : > { %v3738_v47 = vadd.f32 %v8825_v42, %v7903_v43  ;;  %v3732_v50 = vpop.f32.mrb[39].mxu0 }
0x1552   : > { %v3733_v34 = vadd.f32 %v7900_v20, %v3732_v50 }
0x1553   : > { %v3742_v17 = vadd.f32 %v7293_v41, %v3738_v47 }
0x1554   : > { %v3741_v38 = vadd.f32 %v7292_v2, %v3733_v34  ;;  %v12160_v34 = vld [vmem:[%s13164_s4 + $0xc8] sm:$0xff] }
0x1555   : > { %10425 = vtanh.f32 %v3742_v17 }
0x1556   : > { %10427 = vtanh.f32 %v3741_v38 }
0x155f   : > { %v10426_v7 = vpop.eup %10425 }
0x1560   : > { %v10428_v1 = vpop.eup %10427  ;;  %3753 = vrot.lane.b32.xlu1 %v10426_v7, %s10487_s17 }
0x1561   : > { %3751 = vrot.lane.b32.xlu0 %v10428_v1, %s10487_s17  ;;  %v12170_v1 = vld [vmem:[%s13164_s4 + $0xc0] sm:$0xff] }
0x15d2   : > { %v3754_v57 = vpop.permute.xlu1 %3753 }
0x15d3   : > { %v3758_v11 = vmul.f32 %v3754_v57, %v3748_v4  ;;  %v3752_v3 = vpop.permute.xlu0 %3751 }
0x15d4   : > { %v3757_v51 = vmul.f32 %v3752_v3, %v3747_v18 }
0x15d5   : > { %v12069_v6 = vadd.f32 %v3758_v11, %v3746_v61  ;;  %v12177_v11 = vld [vmem:[%s13164_s4 + $0xe0] sm:$0xff] }
0x15d6   : > { %v12071_v29 = vadd.f32 %v3757_v51, %v3745_v39 }
0x15d7   : > { %3765 = vrot.lane.b32.xlu1 %v12069_v6, %s10486_s16 }
0x15d8   : > { %3763 = vrot.lane.b32.xlu0 %v12071_v29, %s10486_s16 }
0x15db   : > { %3965 = vrot.lane.b32.xlu1 %v12071_v29, %s10485_s11 }
0x15dc   : > { %3977 = vrot.lane.b32.xlu0 %v12071_v29, %s10487_s17 }
0x15df   : > { %3967 = vrot.lane.b32.xlu1 %v12069_v6, %s10485_s11 }
0x15e0   : > { %3979 = vrot.lane.b32.xlu0 %v12069_v6, %s10487_s17 }
0x1649   : > { %v12085_v26 = vpop.permute.xlu1 %3765 }
0x164a   : > { %7299 = vst.msk [vmem:[%s11261_s26 + $0x38] sm:$0xff] %vm652_vm1, %v12085_v26  ;;  %v12090_v55 = vpop.permute.xlu0 %3763 }
0x164b   : > { %7298 = vst.msk [vmem:[%s11261_s26 + $0x30] sm:$0xff] %vm652_vm1, %v12090_v55  ;;  %v9794_v25 = vpack.c.bf16 %v12085_v26, %v12090_v55 }
0x164d   : > { %9795 = vmatprep.subr.bf16.mxu0 %v9794_v25  ;;  %9799 = vmatprep.subr.bf16.mxu1 %v9794_v25  ;;  %v3966_v56 = vpop.permute.xlu1 %3965 }
0x164e   : > { %9797 = vmatpush3.bf16.msra.mxu0 %v9794_v25  ;;  %9801 = vmatpush3.bf16.msra.mxu1 %v9794_v25  ;;  %v3978_v52 = vpop.permute.xlu0 %3977 }
0x164f   : > { %9803 = vmatprep.subr.bf16.mxu0 %v10597_v10  ;;  %9835 = vmatprep.subr.bf16.mxu1 %v10634_v23 }
0x1651   : > { %8831 = vmatmul.mubr.msk.f32.vlgmr.msra.gmra.mrb[40].mxu0 %vm429_vm0, %v12100_v46  ;;  %8838 = vmatmul.mubr.msk.f32.vlgmr.msra.gmra.mrb[40].mxu1 %vm429_vm0, %v12105_v59  ;;  %v3968_v12 = vpop.permute.xlu1 %3967 }
0x1652   : > { %9805 = vmatpush3.bf16.msra.mxu0 %v10608_v14  ;;  %9837 = vmatpush3.bf16.msra.mxu1 %v10634_v23  ;;  %v3980_v20 = vpop.permute.xlu0 %3979 }
0x1653   : > { %9807 = vmatprep.subr.bf16.mxu0 %v10610_v15  ;;  %9839 = vmatprep.subr.bf16.mxu1 %v10672_v35 }
0x1656   : > { %9809 = vmatpush3.bf16.msra.mxu0 %v10632_v22  ;;  %9841 = vmatpush3.bf16.msra.mxu1 %v10672_v35 }
0x1657   : > { %9811 = vmatprep.subr.bf16.mxu0 %v10637_v24  ;;  %9843 = vmatprep.subr.bf16.mxu1 %v10700_v44 }
0x165a   : > { %9813 = vmatpush3.bf16.msra.mxu0 %v10648_v27  ;;  %9845 = vmatpush3.bf16.msra.mxu1 %v10700_v44 }
0x165b   : > { %9815 = vmatprep.subr.bf16.mxu0 %v10661_v31  ;;  %9847 = vmatprep.subr.bf16.mxu1 %v10728_v53 }
0x165e   : > { %9817 = vmatpush3.bf16.msra.mxu0 %v10674_v36  ;;  %9849 = vmatpush3.bf16.msra.mxu1 %v10728_v53 }
0x165f   : > { %9819 = vmatprep.subr.bf16.mxu0 %v10689_v40  ;;  %9851 = vmatprep.subr.bf16.mxu1 %v10756_v62 }
0x1662   : > { %9821 = vmatpush3.bf16.msra.mxu0 %v10702_v45  ;;  %9853 = vmatpush3.bf16.msra.mxu1 %v10756_v62 }
0x1663   : > { %9823 = vmatprep.subr.bf16.mxu0 %v10717_v49  ;;  %9855 = vmatprep.subr.bf16.mxu1 %v10788_v19 }
0x1666   : > { %9825 = vmatpush3.bf16.msra.mxu0 %v10730_v54  ;;  %9857 = vmatpush3.bf16.msra.mxu1 %v10788_v19 }
0x1667   : > { %9827 = vmatprep.subr.bf16.mxu0 %v10745_v58  ;;  %9859 = vmatprep.subr.bf16.mxu1 %v10807_v28 }
0x166a   : > { %9829 = vmatpush3.bf16.msra.mxu0 %v10758_v63  ;;  %9861 = vmatpush3.bf16.msra.mxu1 %v10807_v28 }
0x166b   : > { %9831 = vmatprep.subr.bf16.mxu0 %v10776_v13  ;;  %9863 = vmatprep.subr.bf16.mxu1 %v10822_v32 }
0x166e   : > { %9833 = vmatpush3.bf16.msra.mxu0 %v10794_v21  ;;  %9865 = vmatpush3.bf16.msra.mxu1 %v10822_v32 }
0x1724   : > { %v8832_v30 = vpop.f32.mrb[40].mxu0  ;;  %v8839_v33 = vpop.f32.mrb[40].mxu1 }
0x1725   : > { %3973 = vrot.lane.b32.xlu0 %v8839_v33, %s10487_s17  ;;  %v3940_v48 = vpop.f32.mrb[41].mxu1  ;;  %3953 = vrot.lane.b32.xlu1 %v8832_v30, %s10487_s17  ;;  %v3859_v37 = vpop.f32.mrb[41].mxu0 }
0x1729   : > { %3985 = vrot.lane.b32.xlu0 %v8832_v30, %s10486_s16  ;;  %3961 = vrot.lane.b32.xlu1 %v8839_v33, %s10485_s11 }
0x172d   : > { %3971 = vrot.lane.b32.xlu0 %v3940_v48, %s10487_s17  ;;  %3951 = vrot.lane.b32.xlu1 %v3859_v37, %s10487_s17 }
0x1731   : > { %3983 = vrot.lane.b32.xlu0 %v3859_v37, %s10486_s16  ;;  %3959 = vrot.lane.b32.xlu1 %v3940_v48, %s10485_s11 }
0x1735   : > { %3989 = vrot.lane.b32.xlu0 %v3859_v37, %s10485_s11  ;;  %3991 = vrot.lane.b32.xlu1 %v8832_v30, %s10485_s11 }
0x1739   : > { %3995 = vrot.lane.b32.xlu0 %v3940_v48, %s10486_s16  ;;  %3997 = vrot.lane.b32.xlu1 %v8839_v33, %s10486_s16 }
0x1797   : > { %v3954_v60 = vpop.permute.xlu1 %3953  ;;  %v3974_v5 = vpop.permute.xlu0 %3973 }
0x1798   : > { %v4008_v2 = vsel %vm652_vm1, %v8832_v30, %v3974_v5  ;;  %v4002_v17 = vsel %vm652_vm1, %v12085_v26, %v3954_v60 }
0x1799   : > { %v4010_v38 = vsel %vm655_vm2, %v4008_v2, %v3980_v20 }
0x179b   : > { %v3962_v43 = vpop.permute.xlu1 %3961  ;;  %v3986_v41 = vpop.permute.xlu0 %3985 }
0x179c   : > { %v4004_v61 = vsel %vm655_vm2, %v4002_v17, %v3962_v43  ;;  %v4012_v3 = vsel %vm658_vm3, %v4010_v38, %v3986_v41  ;;  %v12190_v43 = vld [vmem:[%s13164_s4 + $0xd8] sm:$0xff]  ;;  %v4013_v41 = vsel %vm652_vm1, %v3940_v48, %v12071_v29 }
0x179d   : > { %v4023_v20 = vmul.f32 %v12177_v11, %v4012_v3 }
0x179f   : > { %v3952_v42 = vpop.permute.xlu1 %3951  ;;  %v3972_v47 = vpop.permute.xlu0 %3971 }
0x17a0   : > { %v4007_v50 = vsel %vm652_vm1, %v3859_v37, %v3972_v47  ;;  %v4001_v7 = vsel %vm652_vm1, %v12090_v55, %v3952_v42  ;;  %v12204_v42 = vld [vmem:[%s13164_s4 + $0xd0] sm:$0xff] }
0x17a1   : > { %v4009_v57 = vsel %vm655_vm2, %v4007_v50, %v3978_v52  ;;  %v4006_v52 = vsel %vm658_vm3, %v4004_v61, %v3968_v12  ;;  %v12199_v12 = vld [vmem:[%s13164_s4 + $0xe8] sm:$0xff] }
0x17a2   : > { %v4022_v47 = vmul.f32 %v12190_v43, %v4006_v52  ;;  %v7310_v52 = vld [vmem:[%s10909_s21 + $0x40] sm:$0xff] }
0x17a3   : > { %v3960_v4 = vpop.permute.xlu1 %3959  ;;  %v3984_v18 = vpop.permute.xlu0 %3983 }
0x17a4   : > { %v4003_v39 = vsel %vm655_vm2, %v4001_v7, %v3960_v4  ;;  %v4011_v51 = vsel %vm658_vm3, %v4009_v57, %v3984_v18 }
0x17a5   : > { %v4005_v25 = vsel %vm658_vm3, %v4003_v39, %v3966_v56  ;;  %v4020_v30 = vmul.f32 %v12160_v34, %v4011_v51  ;;  %v4014_v56 = vsel %vm652_vm1, %v8839_v33, %v12069_v6 }
0x17a6   : > { %v4019_v37 = vmul.f32 %v12170_v1, %v4005_v25  ;;  %v7311_v25 = vld [vmem:[%s10909_s21 + $0x48] sm:$0xff] }
0x17a7   : > { %v3992_v60 = vpop.permute.xlu1 %3991  ;;  %4089 = vmatprep.mubr.f32.mxu0 %v4020_v30  ;;  %v3990_v5 = vpop.permute.xlu0 %3989 }
0x17a8   : > { %4090 = vmatmul.mubr.f32.vlgmr.msra.gmra.mrb[42].mxu0 %v4019_v37  ;;  %v4016_v2 = vsel %vm655_vm2, %v4014_v56, %v3992_v60  ;;  %v4015_v50 = vsel %vm655_vm2, %v4013_v41, %v3990_v5 }
0x17a9   : > { %4094 = vmatprep.mubr.f32.mxu0 %v4023_v20 }
0x17ab   : > { %v3998_v33 = vpop.permute.xlu1 %3997  ;;  %v3996_v17 = vpop.permute.xlu0 %3995 }
0x17ac   : > { %v4018_v48 = vsel %vm658_vm3, %v4016_v2, %v3998_v33  ;;  %v4017_v38 = vsel %vm658_vm3, %v4015_v50, %v3996_v17  ;;  %4095 = vmatmul.mubr.f32.gmra.mrb[44].mxu0 %v4022_v47 }
0x17ad   : > { %v4024_v7 = vmul.f32 %v12199_v12, %v4018_v48  ;;  %v4021_v4 = vmul.f32 %v12204_v42, %v4017_v38  ;;  %8886 = vmatprep.mubr.msk.f32.mxu0 %vm429_vm0, %v12057_v9 }
0x17af   : > { %8872 = vmatprep.mubr.f32.mxu1 %v4021_v4  ;;  %v13344_v4 = vld [vmem:[#allocation6_spill] sm:$0xff] }
0x17b0   : > { %8873 = vmatmul.mubr.f32.vlgmr.msra.gmra.mrb[42].mxu1 %v4024_v7 }
0x17b1   : > { %8879 = vmatprep.mubr.msk.f32.mxu1 %vm429_vm0, %v12052_v16 }
0x187b   : > { %v7962_v57 = vpop.f32.mrb[42].mxu0 }
0x187c   : > { %v7963_v18 = vpop.f32.mrb[43].mxu0 }
0x187d   : > { %v7964_v61 = vadd.f32 %v7963_v18, %v7962_v57  ;;  %v13345_v57 = vld [vmem:[#allocation4_spill] sm:$0xff]  ;;  %v13348_v18 = vld [vmem:[#allocation7_spill] sm:$0xff] }
0x187f   : > { %v7965_v3 = vpop.f32.mrb[44].mxu0 }
0x1880   : > { %v7966_v39 = vpop.f32.mrb[45].mxu0 }
0x1881   : > { %v7967_v51 = vadd.f32 %v7966_v39, %v7965_v3  ;;  %v13350_v3 = vld [vmem:[#allocation14_spill] sm:$0xff]  ;;  %v13351_v39 = vld [vmem:[#allocation9_spill] sm:$0xff] }
0x1883   : > { %v8874_v30 = vpop.f32.mrb[42].mxu1 }
0x1884   : > { %v4172_v37 = vadd.f32 %v8874_v30, %v7967_v51  ;;  %v4166_v20 = vpop.f32.mrb[43].mxu1  ;;  %v13352_v51 = vld [vmem:[#allocation10_spill] sm:$0xff]  ;;  %v13354_v30 = vld [vmem:[#allocation12_spill] sm:$0xff] }
0x1885   : > { %v4167_v60 = vadd.f32 %v7964_v61, %v4166_v20  ;;  %v13349_v61 = vld [vmem:[#allocation8_spill] sm:$0xff]  ;;  %v13357_v20 = vld [vmem:[#allocation15_spill] sm:$0xff] }
0x1886   : > { %v4176_v5 = vadd.f32 %v7311_v25, %v4172_v37  ;;  %v13353_v25 = vld [vmem:[#allocation17_spill] sm:$0xff] }
0x1887   : > { %v4175_v56 = vadd.f32 %v7310_v52, %v4167_v60  ;;  %v13355_v37 = vld [vmem:[#allocation13_spill] sm:$0xff]  ;;  %v13356_v52 = vld [vmem:[#allocation20_spill] sm:$0xff] }
0x1888   : > { %v7317_v9 = vmul.f32 -1.442695, %v4176_v5  ;;  %v13358_v60 = vld [vmem:[#allocation16_spill] sm:$0xff]  ;;  %v13359_v5 = vld [vmem:[#allocation22_spill] sm:$0xff] }
0x1889   : > { %v7316_v41 = vmul.f32 -1.442695, %v4175_v56  ;;  %v13360_v56 = vld [vmem:[#allocation18_spill] sm:$0xff] }
0x188a   : > { %10429 = vpow2.f32 %v7317_v9  ;;  %v13361_v9 = vld [vmem:[#allocation19_spill] sm:$0xff] }
0x188b   : > { %10431 = vpow2.f32 %v7316_v41  ;;  %v13362_v41 = vld [vmem:[#allocation23_spill] sm:$0xff] }
0x1894   : > { %v10430_v47 = vpop.eup %10429 }
0x1895   : > { %v10432_v16 = vpop.eup %10431  ;;  %v4184_v2 = vadd.f32 1.0, %v10430_v47  ;;  %v13363_v47 = vld [vmem:[#allocation21_spill] sm:$0xff] }
0x1896   : > { %v4183_v50 = vadd.f32 1.0, %v10432_v16 }
0x1897   : > { %10433 = vrcp.f32 %v4184_v2 }
0x1898   : > { %10435 = vrcp.f32 %v4183_v50 }
0x18a1   : > { %v12219_v33 = vpop.eup %10433 }
0x18a2   : > { %v12221_v17 = vpop.eup %10435  ;;  %v12225_v48 = vmul.f32 %v12219_v33, %v12085_v26  ;;  %v13342_v26 = vld [vmem:[#allocation2_spill] sm:$0xff] }
0x18a3   : > { %v12229_v38 = vmul.f32 %v12221_v17, %v12090_v55  ;;  %v13343_v55 = vld [vmem:[#allocation3_spill] sm:$0xff] }
0x18a5   : > { %4362 = vrot.lane.b32.xlu1 %v12229_v38, %s10486_s16  ;;  %4374 = vrot.lane.b32.xlu0 %v12229_v38, %s10485_s11  ;;  %v9866_v7 = vpack.c.bf16 %v12225_v48, %v12229_v38 }
0x18a7   : > { %9867 = vmatprep.subr.bf16.mxu1 %v9866_v7  ;;  %9871 = vmatprep.subr.bf16.mxu0 %v9866_v7 }
0x18a8   : > { %9869 = vmatpush3.bf16.msra.mxu1 %v9866_v7  ;;  %9873 = vmatpush3.bf16.msra.mxu0 %v9866_v7 }
0x18a9   : > { %4386 = vrot.lane.b32.xlu1 %v12229_v38, %s10487_s17  ;;  %4376 = vrot.lane.b32.xlu0 %v12225_v48, %s10485_s11 }
0x18aa   : > { %9875 = vmatprep.subr.bf16.mxu1 %v10952_v8  ;;  %9907 = vmatprep.subr.bf16.mxu0 %v10989_v0 }
0x18ab   : > { %8880 = vmatmul.mubr.msk.f32.vlgmr.msra.gmra.mrb[44].mxu1 %vm429_vm0, %v12100_v46  ;;  %8887 = vmatmul.mubr.msk.f32.vlgmr.msra.gmra.mrb[46].mxu0 %vm429_vm0, %v12105_v59  ;;  %v13346_v46 = vld [vmem:[#allocation5_spill] sm:$0xff]  ;;  %v13347_v59 = vld [vmem:[#allocation11_spill] sm:$0xff] }
0x18ac   : > { %9877 = vmatpush3.bf16.msra.mxu1 %v13342_v26  ;;  %9909 = vmatpush3.bf16.msra.mxu0 %v10989_v0 }
0x18ad   : > { %4388 = vrot.lane.b32.xlu1 %v12225_v48, %s10487_s17  ;;  %4364 = vrot.lane.b32.xlu0 %v12225_v48, %s10486_s16 }
0x18ae   : > { %9879 = vmatprep.subr.bf16.mxu1 %v13343_v55  ;;  %9911 = vmatprep.subr.bf16.mxu0 %v13344_v4 }
0x18b0   : > { %9881 = vmatpush3.bf16.msra.mxu1 %v13345_v57  ;;  %9913 = vmatpush3.bf16.msra.mxu0 %v13344_v4 }
0x18b1   : > { %9883 = vmatprep.subr.bf16.mxu1 %v13346_v46  ;;  %9915 = vmatprep.subr.bf16.mxu0 %v13347_v59 }
0x18b4   : > { %9885 = vmatpush3.bf16.msra.mxu1 %v13348_v18  ;;  %9917 = vmatpush3.bf16.msra.mxu0 %v13347_v59 }
0x18b5   : > { %9887 = vmatprep.subr.bf16.mxu1 %v13349_v61  ;;  %9919 = vmatprep.subr.bf16.mxu0 %v13350_v3 }
0x18b8   : > { %9889 = vmatpush3.bf16.msra.mxu1 %v13351_v39  ;;  %9921 = vmatpush3.bf16.msra.mxu0 %v13350_v3 }
0x18b9   : > { %9891 = vmatprep.subr.bf16.mxu1 %v13352_v51  ;;  %9923 = vmatprep.subr.bf16.mxu0 %v13353_v25 }
0x18bc   : > { %9893 = vmatpush3.bf16.msra.mxu1 %v13354_v30  ;;  %9925 = vmatpush3.bf16.msra.mxu0 %v13353_v25 }
0x18bd   : > { %9895 = vmatprep.subr.bf16.mxu1 %v13355_v37  ;;  %9927 = vmatprep.subr.bf16.mxu0 %v13356_v52 }
0x18c0   : > { %9897 = vmatpush3.bf16.msra.mxu1 %v13357_v20  ;;  %9929 = vmatpush3.bf16.msra.mxu0 %v13356_v52 }
0x18c1   : > { %9899 = vmatprep.subr.bf16.mxu1 %v13358_v60  ;;  %9931 = vmatprep.subr.bf16.mxu0 %v13359_v5 }
0x18c4   : > { %9901 = vmatpush3.bf16.msra.mxu1 %v13360_v56  ;;  %9933 = vmatpush3.bf16.msra.mxu0 %v13359_v5 }
0x18c5   : > { %9903 = vmatprep.subr.bf16.mxu1 %v13361_v9  ;;  %9935 = vmatprep.subr.bf16.mxu0 %v13362_v41 }
0x18c8   : > { %9905 = vmatpush3.bf16.msra.mxu1 %v13363_v47  ;;  %9937 = vmatpush3.bf16.msra.mxu0 %v13362_v41 }
0x1917   : > { %v4363_v47 = vpop.permute.xlu1 %4362  ;;  %v4375_v41 = vpop.permute.xlu0 %4374 }
0x191b   : > { %v4387_v9 = vpop.permute.xlu1 %4386  ;;  %v4377_v56 = vpop.permute.xlu0 %4376 }
0x191f   : > { %v4389_v5 = vpop.permute.xlu1 %4388  ;;  %v4365_v60 = vpop.permute.xlu0 %4364 }
0x197e   : > { %v8881_v16 = vpop.f32.mrb[44].mxu1  ;;  %v8888_v2 = vpop.f32.mrb[46].mxu0 }
0x197f   : > { %4370 = vrot.lane.b32.xlu0 %v8888_v2, %s10487_s17  ;;  %v4335_v50 = vpop.f32.mrb[47].mxu0  ;;  %4348 = vrot.lane.b32.xlu1 %v8881_v16, %s10487_s17  ;;  %v4260_v7 = vpop.f32.mrb[45].mxu1 }
0x1983   : > { %4382 = vrot.lane.b32.xlu0 %v8881_v16, %s10486_s16  ;;  %4356 = vrot.lane.b32.xlu1 %v8888_v2, %s10485_s11 }
0x1987   : > { %4368 = vrot.lane.b32.xlu0 %v4335_v50, %s10487_s17  ;;  %4346 = vrot.lane.b32.xlu1 %v4260_v7, %s10487_s17 }
0x198b   : > { %4380 = vrot.lane.b32.xlu0 %v4260_v7, %s10486_s16  ;;  %4354 = vrot.lane.b32.xlu1 %v4335_v50, %s10485_s11 }
0x198f   : > { %4392 = vrot.lane.b32.xlu0 %v4260_v7, %s10485_s11  ;;  %4394 = vrot.lane.b32.xlu1 %v8881_v16, %s10485_s11 }
0x1993   : > { %4398 = vrot.lane.b32.xlu0 %v4335_v50, %s10486_s16  ;;  %4400 = vrot.lane.b32.xlu1 %v8888_v2, %s10486_s16 }
0x19f1   : > { %v4371_v20 = vpop.permute.xlu0 %4370  ;;  %v4349_v52 = vpop.permute.xlu1 %4348 }
0x19f2   : > { %v4411_v39 = vsel %vm652_vm1, %v8881_v16, %v4371_v20  ;;  %v4405_v61 = vsel %vm652_vm1, %v12225_v48, %v4349_v52 }
0x19f3   : > { %v4413_v18 = vsel %vm655_vm2, %v4411_v39, %v4377_v56 }
0x19f5   : > { %v4383_v37 = vpop.permute.xlu0 %4382  ;;  %v4357_v30 = vpop.permute.xlu1 %4356 }
0x19f6   : > { %v4415_v55 = vsel %vm658_vm3, %v4413_v18, %v4383_v37  ;;  %v4407_v26 = vsel %vm655_vm2, %v4405_v61, %v4357_v30  ;;  %v4416_v18 = vsel %vm652_vm1, %v4335_v50, %v4387_v9  ;;  %v7319_v9 = vld [vmem:[%s11215_s14 + $0x48] sm:$0xff] }
0x19f9   : > { %v4369_v25 = vpop.permute.xlu0 %4368  ;;  %v4347_v51 = vpop.permute.xlu1 %4346 }
0x19fa   : > { %v4410_v3 = vsel %vm652_vm1, %v4260_v7, %v4369_v25  ;;  %v4404_v59 = vsel %vm652_vm1, %v12229_v38, %v4347_v51  ;;  %v4426_v38 = vmul.f32 %v12177_v11, %v4415_v55  ;;  %v4409_v51 = vsel %vm658_vm3, %v4407_v26, %v4365_v60 }
0x19fb   : > { %v4412_v57 = vsel %vm655_vm2, %v4410_v3, %v4375_v41 }
0x19fd   : > { %v4381_v46 = vpop.permute.xlu0 %4380  ;;  %v4355_v4 = vpop.permute.xlu1 %4354 }
0x19fe   : > { %v4414_v20 = vsel %vm658_vm3, %v4412_v57, %v4381_v46  ;;  %v4406_v25 = vsel %vm655_vm2, %v4404_v59, %v4355_v4  ;;  %v4417_v57 = vsel %vm652_vm1, %v8888_v2, %v4389_v5  ;;  %v4425_v4 = vmul.f32 %v12190_v43, %v4409_v51  ;;  %v7318_v2 = vld [vmem:[%s11215_s14 + $0x40] sm:$0xff] }
0x19ff   : > { %v4423_v16 = vmul.f32 %v12160_v34, %v4414_v20  ;;  %v4408_v48 = vsel %vm658_vm3, %v4406_v25, %v4363_v47  ;;  %v4584_v51 = vsub.f32 1.0, %v12221_v17 }
0x1a00   : > { %v4422_v39 = vmul.f32 %v12170_v1, %v4408_v48  ;;  %v12331_v48 = vld [vmem:[%s13163_s3 + $0xb0] sm:$0xff] }
0x1a01   : > { %v4393_v3 = vpop.permute.xlu0 %4392  ;;  %v4395_v52 = vpop.permute.xlu1 %4394  ;;  %4492 = vmatprep.mubr.f32.mxu1 %v4423_v16  ;;  %v12326_v16 = vld [vmem:[%s13163_s3 + $0xa0] sm:$0xff] }
0x1a02   : > { %4493 = vmatmul.mubr.f32.vlgmr.msra.gmra.mrb[46].mxu1 %v4422_v39  ;;  %v4418_v34 = vsel %vm655_vm2, %v4416_v18, %v4393_v3  ;;  %v4419_v46 = vsel %vm655_vm2, %v4417_v57, %v4395_v52  ;;  %v4585_v39 = vsub.f32 1.0, %v12219_v33  ;;  %v4583_v3 = vmul.f32 %v12219_v33, %v12069_v6 }
0x1a03   : > { %4497 = vmatprep.mubr.f32.mxu1 %v4426_v38  ;;  %v4582_v57 = vmul.f32 %v12221_v17, %v12071_v29  ;;  %v12374_v17 = vld [vmem:[%s13163_s3 + $0xa8] sm:$0xff] }
0x1a05   : > { %v4399_v1 = vpop.permute.xlu0 %4398  ;;  %v4401_v11 = vpop.permute.xlu1 %4400 }
0x1a06   : > { %v4420_v26 = vsel %vm658_vm3, %v4418_v34, %v4399_v1  ;;  %v4421_v55 = vsel %vm658_vm3, %v4419_v46, %v4401_v11  ;;  %4498 = vmatmul.mubr.f32.gmra.mrb[48].mxu1 %v4425_v4  ;;  %v12379_v1 = vld [vmem:[%s13163_s3 + $0xb8] sm:$0xff] }
0x1a07   : > { %v4424_v59 = vmul.f32 %v12204_v42, %v4420_v26  ;;  %v4427_v61 = vmul.f32 %v12199_v12, %v4421_v55  ;;  %8935 = vmatprep.mubr.msk.f32.mxu1 %vm429_vm0, %v12331_v48 }
0x1a09   : > { %8921 = vmatprep.mubr.f32.mxu0 %v4424_v59 }
0x1a0a   : > { %8922 = vmatmul.mubr.f32.vlgmr.msra.gmra.mrb[48].mxu0 %v4427_v61 }
0x1a0b   : > { %8928 = vmatprep.mubr.msk.f32.mxu0 %vm429_vm0, %v12326_v16 }
0x1ad5   : > { %v8026_v43 = vpop.f32.mrb[46].mxu1 }
0x1ad6   : > { %v8027_v30 = vpop.f32.mrb[47].mxu1 }
0x1ad7   : > { %v8028_v37 = vadd.f32 %v8027_v30, %v8026_v43 }
0x1ad9   : > { %v8029_v60 = vpop.f32.mrb[48].mxu1 }
0x1ada   : > { %v8030_v5 = vpop.f32.mrb[49].mxu1 }
0x1adb   : > { %v8031_v56 = vadd.f32 %v8030_v5, %v8029_v60 }
0x1add   : > { %v8923_v41 = vpop.f32.mrb[48].mxu0 }
0x1ade   : > { %v4575_v47 = vadd.f32 %v8923_v41, %v8031_v56  ;;  %v4569_v50 = vpop.f32.mrb[49].mxu0 }
0x1adf   : > { %v4570_v7 = vadd.f32 %v8028_v37, %v4569_v50 }
0x1ae0   : > { %v4579_v20 = vadd.f32 %v7319_v9, %v4575_v47 }
0x1ae1   : > { %v4578_v25 = vadd.f32 %v7318_v2, %v4570_v7  ;;  %v12434_v7 = vld [vmem:[%s13164_s4 + $0xf8] sm:$0xff] }
0x1ae2   : > { %10437 = vtanh.f32 %v4579_v20 }
0x1ae3   : > { %10439 = vtanh.f32 %v4578_v25 }
0x1aec   : > { %v10438_v42 = vpop.eup %10437 }
0x1aed   : > { %v10440_v12 = vpop.eup %10439  ;;  %4590 = vrot.lane.b32.xlu1 %v10438_v42, %s10487_s17 }
0x1aee   : > { %4588 = vrot.lane.b32.xlu0 %v10440_v12, %s10487_s17  ;;  %v12444_v12 = vld [vmem:[%s13164_s4 + $0xf0] sm:$0xff] }
0x1b5f   : > { %v4591_v38 = vpop.permute.xlu1 %4590 }
0x1b60   : > { %v4595_v52 = vmul.f32 %v4591_v38, %v4585_v39  ;;  %v4589_v18 = vpop.permute.xlu0 %4588 }
0x1b61   : > { %v4594_v4 = vmul.f32 %v4589_v18, %v4584_v51 }
0x1b62   : > { %v12343_v34 = vadd.f32 %v4595_v52, %v4583_v3  ;;  %v12451_v52 = vld [vmem:[%s13164_s4 + $0x110] sm:$0xff] }
0x1b63   : > { %v12345_v46 = vadd.f32 %v4594_v4, %v4582_v57 }
0x1b64   : > { %4602 = vrot.lane.b32.xlu1 %v12343_v34, %s10486_s16 }
0x1b65   : > { %4600 = vrot.lane.b32.xlu0 %v12345_v46, %s10486_s16 }
0x1b68   : > { %4802 = vrot.lane.b32.xlu1 %v12345_v46, %s10485_s11 }
0x1b69   : > { %4814 = vrot.lane.b32.xlu0 %v12345_v46, %s10487_s17 }
0x1b6c   : > { %4804 = vrot.lane.b32.xlu1 %v12343_v34, %s10485_s11 }
0x1b6d   : > { %4816 = vrot.lane.b32.xlu0 %v12343_v34, %s10487_s17 }
0x1bd6   : > { %v12359_v6 = vpop.permute.xlu1 %4602 }
0x1bd7   : > { %7325 = vst.msk [vmem:[%s11261_s26 + $0x48] sm:$0xff] %vm652_vm1, %v12359_v6  ;;  %v12364_v29 = vpop.permute.xlu0 %4600 }
0x1bd8   : > { %7324 = vst.msk [vmem:[%s11261_s26 + $0x40] sm:$0xff] %vm652_vm1, %v12364_v29  ;;  %v9938_v33 = vpack.c.bf16 %v12359_v6, %v12364_v29 }
0x1bda   : > { %9939 = vmatprep.subr.bf16.mxu0 %v9938_v33  ;;  %9943 = vmatprep.subr.bf16.mxu1 %v9938_v33  ;;  %v4803_v61 = vpop.permute.xlu1 %4802 }
0x1bdb   : > { %9941 = vmatpush3.bf16.msra.mxu0 %v9938_v33  ;;  %9945 = vmatpush3.bf16.msra.mxu1 %v9938_v33  ;;  %v4815_v43 = vpop.permute.xlu0 %4814 }
0x1bdc   : > { %9947 = vmatprep.subr.bf16.mxu0 %v10597_v10  ;;  %9979 = vmatprep.subr.bf16.mxu1 %v10634_v23 }
0x1bde   : > { %8929 = vmatmul.mubr.msk.f32.vlgmr.msra.gmra.mrb[50].mxu0 %vm429_vm0, %v12374_v17  ;;  %8936 = vmatmul.mubr.msk.f32.vlgmr.msra.gmra.mrb[50].mxu1 %vm429_vm0, %v12379_v1  ;;  %v4805_v30 = vpop.permute.xlu1 %4804 }
0x1bdf   : > { %9949 = vmatpush3.bf16.msra.mxu0 %v10608_v14  ;;  %9981 = vmatpush3.bf16.msra.mxu1 %v10634_v23  ;;  %v4817_v37 = vpop.permute.xlu0 %4816 }
0x1be0   : > { %9951 = vmatprep.subr.bf16.mxu0 %v10610_v15  ;;  %9983 = vmatprep.subr.bf16.mxu1 %v10672_v35 }
0x1be3   : > { %9953 = vmatpush3.bf16.msra.mxu0 %v10632_v22  ;;  %9985 = vmatpush3.bf16.msra.mxu1 %v10672_v35 }
0x1be4   : > { %9955 = vmatprep.subr.bf16.mxu0 %v10637_v24  ;;  %9987 = vmatprep.subr.bf16.mxu1 %v10700_v44 }
0x1be7   : > { %9957 = vmatpush3.bf16.msra.mxu0 %v10648_v27  ;;  %9989 = vmatpush3.bf16.msra.mxu1 %v10700_v44 }
0x1be8   : > { %9959 = vmatprep.subr.bf16.mxu0 %v10661_v31  ;;  %9991 = vmatprep.subr.bf16.mxu1 %v10728_v53 }
0x1beb   : > { %9961 = vmatpush3.bf16.msra.mxu0 %v10674_v36  ;;  %9993 = vmatpush3.bf16.msra.mxu1 %v10728_v53 }
0x1bec   : > { %9963 = vmatprep.subr.bf16.mxu0 %v10689_v40  ;;  %9995 = vmatprep.subr.bf16.mxu1 %v10756_v62 }
0x1bef   : > { %9965 = vmatpush3.bf16.msra.mxu0 %v10702_v45  ;;  %9997 = vmatpush3.bf16.msra.mxu1 %v10756_v62 }
0x1bf0   : > { %9967 = vmatprep.subr.bf16.mxu0 %v10717_v49  ;;  %9999 = vmatprep.subr.bf16.mxu1 %v10788_v19 }
0x1bf3   : > { %9969 = vmatpush3.bf16.msra.mxu0 %v10730_v54  ;;  %10001 = vmatpush3.bf16.msra.mxu1 %v10788_v19 }
0x1bf4   : > { %9971 = vmatprep.subr.bf16.mxu0 %v10745_v58  ;;  %10003 = vmatprep.subr.bf16.mxu1 %v10807_v28 }
0x1bf7   : > { %9973 = vmatpush3.bf16.msra.mxu0 %v10758_v63  ;;  %10005 = vmatpush3.bf16.msra.mxu1 %v10807_v28 }
0x1bf8   : > { %9975 = vmatprep.subr.bf16.mxu0 %v10776_v13  ;;  %10007 = vmatprep.subr.bf16.mxu1 %v10822_v32 }
0x1bfb   : > { %9977 = vmatpush3.bf16.msra.mxu0 %v10794_v21  ;;  %10009 = vmatpush3.bf16.msra.mxu1 %v10822_v32 }
0x1cb1   : > { %v8930_v11 = vpop.f32.mrb[50].mxu0  ;;  %v8937_v26 = vpop.f32.mrb[50].mxu1 }
0x1cb2   : > { %4810 = vrot.lane.b32.xlu0 %v8937_v26, %s10487_s17  ;;  %v4777_v55 = vpop.f32.mrb[51].mxu1  ;;  %4790 = vrot.lane.b32.xlu1 %v8930_v11, %s10487_s17  ;;  %v4696_v59 = vpop.f32.mrb[51].mxu0 }
0x1cb6   : > { %4822 = vrot.lane.b32.xlu0 %v8930_v11, %s10486_s16  ;;  %4798 = vrot.lane.b32.xlu1 %v8937_v26, %s10485_s11 }
0x1cba   : > { %4808 = vrot.lane.b32.xlu0 %v4777_v55, %s10487_s17  ;;  %4788 = vrot.lane.b32.xlu1 %v4696_v59, %s10487_s17 }
0x1cbe   : > { %4820 = vrot.lane.b32.xlu0 %v4696_v59, %s10486_s16  ;;  %4796 = vrot.lane.b32.xlu1 %v4777_v55, %s10485_s11 }
0x1cc2   : > { %4826 = vrot.lane.b32.xlu0 %v4696_v59, %s10485_s11  ;;  %4828 = vrot.lane.b32.xlu1 %v8930_v11, %s10485_s11 }
0x1cc6   : > { %4832 = vrot.lane.b32.xlu0 %v4777_v55, %s10486_s16  ;;  %4834 = vrot.lane.b32.xlu1 %v8937_v26, %s10486_s16 }
0x1d24   : > { %v4791_v60 = vpop.permute.xlu1 %4790  ;;  %v4811_v5 = vpop.permute.xlu0 %4810 }
0x1d25   : > { %v4845_v2 = vsel %vm652_vm1, %v8930_v11, %v4811_v5  ;;  %v4839_v20 = vsel %vm652_vm1, %v12359_v6, %v4791_v60 }
0x1d26   : > { %v4847_v25 = vsel %vm655_vm2, %v4845_v2, %v4817_v37 }
0x1d28   : > { %v4799_v56 = vpop.permute.xlu1 %4798  ;;  %v4823_v9 = vpop.permute.xlu0 %4822 }
0x1d29   : > { %v4841_v3 = vsel %vm655_vm2, %v4839_v20, %v4799_v56  ;;  %v4849_v18 = vsel %vm658_vm3, %v4847_v25, %v4823_v9  ;;  %v12464_v56 = vld [vmem:[%s13164_s4 + $0x108] sm:$0xff]  ;;  %v4850_v9 = vsel %vm652_vm1, %v4777_v55, %v12345_v46 }
0x1d2a   : > { %v4860_v37 = vmul.f32 %v12451_v52, %v4849_v18 }
0x1d2c   : > { %v4789_v41 = vpop.permute.xlu1 %4788  ;;  %v4809_v47 = vpop.permute.xlu0 %4808 }
0x1d2d   : > { %v4844_v50 = vsel %vm652_vm1, %v4696_v59, %v4809_v47  ;;  %v4838_v42 = vsel %vm652_vm1, %v12364_v29, %v4789_v41  ;;  %v12478_v41 = vld [vmem:[%s13164_s4 + $0x100] sm:$0xff] }
0x1d2e   : > { %v4846_v38 = vsel %vm655_vm2, %v4844_v50, %v4815_v43  ;;  %v4843_v43 = vsel %vm658_vm3, %v4841_v3, %v4805_v30  ;;  %v12473_v30 = vld [vmem:[%s13164_s4 + $0x118] sm:$0xff] }
0x1d2f   : > { %v4859_v47 = vmul.f32 %v12464_v56, %v4843_v43  ;;  %v7336_v43 = vld [vmem:[%s10909_s21 + $0x50] sm:$0xff] }
0x1d30   : > { %v4797_v39 = vpop.permute.xlu1 %4796  ;;  %v4821_v51 = vpop.permute.xlu0 %4820 }
0x1d31   : > { %v4840_v57 = vsel %vm655_vm2, %v4838_v42, %v4797_v39  ;;  %v4848_v4 = vsel %vm658_vm3, %v4846_v38, %v4821_v51 }
0x1d32   : > { %v4842_v33 = vsel %vm658_vm3, %v4840_v57, %v4803_v61  ;;  %v4857_v11 = vmul.f32 %v12434_v7, %v4848_v4  ;;  %v4851_v61 = vsel %vm652_vm1, %v8937_v26, %v12343_v34 }
0x1d33   : > { %v4856_v59 = vmul.f32 %v12444_v12, %v4842_v33  ;;  %v7337_v33 = vld [vmem:[%s10909_s21 + $0x58] sm:$0xff] }
0x1d34   : > { %v4829_v60 = vpop.permute.xlu1 %4828  ;;  %4926 = vmatprep.mubr.f32.mxu0 %v4857_v11  ;;  %v4827_v5 = vpop.permute.xlu0 %4826 }
0x1d35   : > { %4927 = vmatmul.mubr.f32.vlgmr.msra.gmra.mrb[52].mxu0 %v4856_v59  ;;  %v4853_v2 = vsel %vm655_vm2, %v4851_v61, %v4829_v60  ;;  %v4852_v50 = vsel %vm655_vm2, %v4850_v9, %v4827_v5 }
0x1d36   : > { %4931 = vmatprep.mubr.f32.mxu0 %v4860_v37 }
0x1d38   : > { %v4835_v26 = vpop.permute.xlu1 %4834  ;;  %v4833_v20 = vpop.permute.xlu0 %4832 }
0x1d39   : > { %v4855_v55 = vsel %vm658_vm3, %v4853_v2, %v4835_v26  ;;  %v4854_v25 = vsel %vm658_vm3, %v4852_v50, %v4833_v20  ;;  %4932 = vmatmul.mubr.f32.gmra.mrb[54].mxu0 %v4859_v47 }
0x1d3a   : > { %v4861_v42 = vmul.f32 %v12473_v30, %v4855_v55  ;;  %v4858_v39 = vmul.f32 %v12478_v41, %v4854_v25  ;;  %8984 = vmatprep.mubr.msk.f32.mxu0 %vm429_vm0, %v12331_v48 }
0x1d3c   : > { %8970 = vmatprep.mubr.f32.mxu1 %v4858_v39  ;;  %v13366_v39 = vld [vmem:[#allocation6_spill] sm:$0xff] }
0x1d3d   : > { %8971 = vmatmul.mubr.f32.vlgmr.msra.gmra.mrb[52].mxu1 %v4861_v42 }
0x1d3e   : > { %8977 = vmatprep.mubr.msk.f32.mxu1 %vm429_vm0, %v12326_v16 }
0x1e08   : > { %v8090_v38 = vpop.f32.mrb[52].mxu0 }
0x1e09   : > { %v8091_v51 = vpop.f32.mrb[53].mxu0 }
0x1e0a   : > { %v8092_v3 = vadd.f32 %v8091_v51, %v8090_v38  ;;  %v13367_v38 = vld [vmem:[#allocation4_spill] sm:$0xff]  ;;  %v13370_v51 = vld [vmem:[#allocation7_spill] sm:$0xff] }
0x1e0c   : > { %v8093_v18 = vpop.f32.mrb[54].mxu0 }
0x1e0d   : > { %v8094_v57 = vpop.f32.mrb[55].mxu0 }
0x1e0e   : > { %v8095_v4 = vadd.f32 %v8094_v57, %v8093_v18  ;;  %v13372_v18 = vld [vmem:[#allocation14_spill] sm:$0xff]  ;;  %v13373_v57 = vld [vmem:[#allocation9_spill] sm:$0xff] }
0x1e10   : > { %v8972_v11 = vpop.f32.mrb[52].mxu1 }
0x1e11   : > { %v5009_v59 = vadd.f32 %v8972_v11, %v8095_v4  ;;  %v5003_v37 = vpop.f32.mrb[53].mxu1  ;;  %v13374_v4 = vld [vmem:[#allocation10_spill] sm:$0xff]  ;;  %v13376_v11 = vld [vmem:[#allocation12_spill] sm:$0xff] }
0x1e12   : > { %v5004_v60 = vadd.f32 %v8092_v3, %v5003_v37  ;;  %v13371_v3 = vld [vmem:[#allocation8_spill] sm:$0xff]  ;;  %v13379_v37 = vld [vmem:[#allocation15_spill] sm:$0xff] }
0x1e13   : > { %v5013_v5 = vadd.f32 %v7337_v33, %v5009_v59  ;;  %v13375_v33 = vld [vmem:[#allocation17_spill] sm:$0xff] }
0x1e14   : > { %v5012_v61 = vadd.f32 %v7336_v43, %v5004_v60  ;;  %v13377_v59 = vld [vmem:[#allocation13_spill] sm:$0xff]  ;;  %v13378_v43 = vld [vmem:[#allocation20_spill] sm:$0xff] }
0x1e15   : > { %v7343_v48 = vmul.f32 -1.442695, %v5013_v5  ;;  %v13380_v60 = vld [vmem:[#allocation16_spill] sm:$0xff]  ;;  %v13381_v5 = vld [vmem:[#allocation22_spill] sm:$0xff] }
0x1e16   : > { %v7342_v9 = vmul.f32 -1.442695, %v5012_v61  ;;  %v13382_v61 = vld [vmem:[#allocation18_spill] sm:$0xff] }
0x1e17   : > { %10441 = vpow2.f32 %v7343_v48  ;;  %v13383_v48 = vld [vmem:[#allocation19_spill] sm:$0xff] }
0x1e18   : > { %10443 = vpow2.f32 %v7342_v9  ;;  %v13384_v9 = vld [vmem:[#allocation23_spill] sm:$0xff] }
0x1e21   : > { %v10442_v47 = vpop.eup %10441 }
0x1e22   : > { %v10444_v16 = vpop.eup %10443  ;;  %v5021_v2 = vadd.f32 1.0, %v10442_v47  ;;  %v13385_v47 = vld [vmem:[#allocation21_spill] sm:$0xff] }
0x1e23   : > { %v5020_v50 = vadd.f32 1.0, %v10444_v16 }
0x1e24   : > { %10445 = vrcp.f32 %v5021_v2 }
0x1e25   : > { %10447 = vrcp.f32 %v5020_v50 }
0x1e2e   : > { %v12493_v26 = vpop.eup %10445 }
0x1e2f   : > { %v12495_v20 = vpop.eup %10447  ;;  %v12499_v55 = vmul.f32 %v12493_v26, %v12359_v6  ;;  %v13364_v6 = vld [vmem:[#allocation2_spill] sm:$0xff] }
0x1e30   : > { %v12503_v25 = vmul.f32 %v12495_v20, %v12364_v29  ;;  %v13365_v29 = vld [vmem:[#allocation3_spill] sm:$0xff] }
0x1e32   : > { %5199 = vrot.lane.b32.xlu1 %v12503_v25, %s10486_s16  ;;  %5211 = vrot.lane.b32.xlu0 %v12503_v25, %s10485_s11  ;;  %v10010_v42 = vpack.c.bf16 %v12499_v55, %v12503_v25 }
0x1e34   : > { %10011 = vmatprep.subr.bf16.mxu1 %v10010_v42  ;;  %10015 = vmatprep.subr.bf16.mxu0 %v10010_v42 }
0x1e35   : > { %10013 = vmatpush3.bf16.msra.mxu1 %v10010_v42  ;;  %10017 = vmatpush3.bf16.msra.mxu0 %v10010_v42 }
0x1e36   : > { %5223 = vrot.lane.b32.xlu1 %v12503_v25, %s10487_s17  ;;  %5213 = vrot.lane.b32.xlu0 %v12499_v55, %s10485_s11 }
0x1e37   : > { %10019 = vmatprep.subr.bf16.mxu1 %v10952_v8  ;;  %10051 = vmatprep.subr.bf16.mxu0 %v10989_v0 }
0x1e38   : > { %8978 = vmatmul.mubr.msk.f32.vlgmr.msra.gmra.mrb[54].mxu1 %vm429_vm0, %v12374_v17  ;;  %8985 = vmatmul.mubr.msk.f32.vlgmr.msra.gmra.mrb[56].mxu0 %vm429_vm0, %v12379_v1  ;;  %v13368_v17 = vld [vmem:[#allocation5_spill] sm:$0xff]  ;;  %v13369_v1 = vld [vmem:[#allocation11_spill] sm:$0xff] }
0x1e39   : > { %10021 = vmatpush3.bf16.msra.mxu1 %v13364_v6  ;;  %10053 = vmatpush3.bf16.msra.mxu0 %v10989_v0 }
0x1e3a   : > { %5225 = vrot.lane.b32.xlu1 %v12499_v55, %s10487_s17  ;;  %5201 = vrot.lane.b32.xlu0 %v12499_v55, %s10486_s16 }
0x1e3b   : > { %10023 = vmatprep.subr.bf16.mxu1 %v13365_v29  ;;  %10055 = vmatprep.subr.bf16.mxu0 %v13366_v39 }
0x1e3d   : > { %10025 = vmatpush3.bf16.msra.mxu1 %v13367_v38  ;;  %10057 = vmatpush3.bf16.msra.mxu0 %v13366_v39 }
0x1e3e   : > { %10027 = vmatprep.subr.bf16.mxu1 %v13368_v17  ;;  %10059 = vmatprep.subr.bf16.mxu0 %v13369_v1 }
0x1e41   : > { %10029 = vmatpush3.bf16.msra.mxu1 %v13370_v51  ;;  %10061 = vmatpush3.bf16.msra.mxu0 %v13369_v1 }
0x1e42   : > { %10031 = vmatprep.subr.bf16.mxu1 %v13371_v3  ;;  %10063 = vmatprep.subr.bf16.mxu0 %v13372_v18 }
0x1e45   : > { %10033 = vmatpush3.bf16.msra.mxu1 %v13373_v57  ;;  %10065 = vmatpush3.bf16.msra.mxu0 %v13372_v18 }
0x1e46   : > { %10035 = vmatprep.subr.bf16.mxu1 %v13374_v4  ;;  %10067 = vmatprep.subr.bf16.mxu0 %v13375_v33 }
0x1e49   : > { %10037 = vmatpush3.bf16.msra.mxu1 %v13376_v11  ;;  %10069 = vmatpush3.bf16.msra.mxu0 %v13375_v33 }
0x1e4a   : > { %10039 = vmatprep.subr.bf16.mxu1 %v13377_v59  ;;  %10071 = vmatprep.subr.bf16.mxu0 %v13378_v43 }
0x1e4d   : > { %10041 = vmatpush3.bf16.msra.mxu1 %v13379_v37  ;;  %10073 = vmatpush3.bf16.msra.mxu0 %v13378_v43 }
0x1e4e   : > { %10043 = vmatprep.subr.bf16.mxu1 %v13380_v60  ;;  %10075 = vmatprep.subr.bf16.mxu0 %v13381_v5 }
0x1e51   : > { %10045 = vmatpush3.bf16.msra.mxu1 %v13382_v61  ;;  %10077 = vmatpush3.bf16.msra.mxu0 %v13381_v5 }
0x1e52   : > { %10047 = vmatprep.subr.bf16.mxu1 %v13383_v48  ;;  %10079 = vmatprep.subr.bf16.mxu0 %v13384_v9 }
0x1e55   : > { %10049 = vmatpush3.bf16.msra.mxu1 %v13385_v47  ;;  %10081 = vmatpush3.bf16.msra.mxu0 %v13384_v9 }
0x1ea4   : > { %v5200_v47 = vpop.permute.xlu1 %5199  ;;  %v5212_v9 = vpop.permute.xlu0 %5211 }
0x1ea8   : > { %v5224_v48 = vpop.permute.xlu1 %5223  ;;  %v5214_v61 = vpop.permute.xlu0 %5213 }
0x1eac   : > { %v5226_v5 = vpop.permute.xlu1 %5225  ;;  %v5202_v60 = vpop.permute.xlu0 %5201 }
0x1f0b   : > { %v8979_v16 = vpop.f32.mrb[54].mxu1  ;;  %v8986_v2 = vpop.f32.mrb[56].mxu0 }
0x1f0c   : > { %5207 = vrot.lane.b32.xlu0 %v8986_v2, %s10487_s17  ;;  %v5172_v50 = vpop.f32.mrb[57].mxu0  ;;  %5185 = vrot.lane.b32.xlu1 %v8979_v16, %s10487_s17  ;;  %v5097_v42 = vpop.f32.mrb[55].mxu1 }
0x1f10   : > { %5219 = vrot.lane.b32.xlu0 %v8979_v16, %s10486_s16  ;;  %5193 = vrot.lane.b32.xlu1 %v8986_v2, %s10485_s11 }
0x1f14   : > { %5205 = vrot.lane.b32.xlu0 %v5172_v50, %s10487_s17  ;;  %5183 = vrot.lane.b32.xlu1 %v5097_v42, %s10487_s17 }
0x1f18   : > { %5217 = vrot.lane.b32.xlu0 %v5097_v42, %s10486_s16  ;;  %5191 = vrot.lane.b32.xlu1 %v5172_v50, %s10485_s11 }
0x1f1c   : > { %5229 = vrot.lane.b32.xlu0 %v5097_v42, %s10485_s11  ;;  %5231 = vrot.lane.b32.xlu1 %v8979_v16, %s10485_s11 }
0x1f20   : > { %5235 = vrot.lane.b32.xlu0 %v5172_v50, %s10486_s16  ;;  %5237 = vrot.lane.b32.xlu1 %v8986_v2, %s10486_s16 }
0x1f7e   : > { %v5208_v37 = vpop.permute.xlu0 %5207  ;;  %v5186_v43 = vpop.permute.xlu1 %5185 }
0x1f7f   : > { %v5248_v57 = vsel %vm652_vm1, %v8979_v16, %v5208_v37  ;;  %v5242_v3 = vsel %vm652_vm1, %v12499_v55, %v5186_v43 }
0x1f80   : > { %v5250_v51 = vsel %vm655_vm2, %v5248_v57, %v5214_v61 }
0x1f82   : > { %v5220_v59 = vpop.permute.xlu0 %5219  ;;  %v5194_v11 = vpop.permute.xlu1 %5193 }
0x1f83   : > { %v5252_v29 = vsel %vm658_vm3, %v5250_v51, %v5220_v59  ;;  %v5244_v6 = vsel %vm655_vm2, %v5242_v3, %v5194_v11  ;;  %v5253_v51 = vsel %vm652_vm1, %v5172_v50, %v5224_v48  ;;  %v7345_v48 = vld [vmem:[%s11215_s14 + $0x58] sm:$0xff] }
0x1f86   : > { %v5206_v33 = vpop.permute.xlu0 %5205  ;;  %v5184_v4 = vpop.permute.xlu1 %5183 }
0x1f87   : > { %v5247_v18 = vsel %vm652_vm1, %v5097_v42, %v5206_v33  ;;  %v5241_v1 = vsel %vm652_vm1, %v12503_v25, %v5184_v4  ;;  %v5263_v25 = vmul.f32 %v12451_v52, %v5252_v29  ;;  %v5246_v4 = vsel %vm658_vm3, %v5244_v6, %v5202_v60 }
0x1f88   : > { %v5249_v38 = vsel %vm655_vm2, %v5247_v18, %v5212_v9 }
0x1f8a   : > { %v5218_v17 = vpop.permute.xlu0 %5217  ;;  %v5192_v39 = vpop.permute.xlu1 %5191 }
0x1f8b   : > { %v5251_v37 = vsel %vm658_vm3, %v5249_v38, %v5218_v17  ;;  %v5243_v33 = vsel %vm655_vm2, %v5241_v1, %v5192_v39  ;;  %v5254_v38 = vsel %vm652_vm1, %v8986_v2, %v5226_v5  ;;  %v5262_v39 = vmul.f32 %v12464_v56, %v5246_v4  ;;  %v7344_v2 = vld [vmem:[%s11215_s14 + $0x50] sm:$0xff] }
0x1f8c   : > { %v5260_v16 = vmul.f32 %v12434_v7, %v5251_v37  ;;  %v5245_v55 = vsel %vm658_vm3, %v5243_v33, %v5200_v47  ;;  %v5421_v4 = vsub.f32 1.0, %v12495_v20 }
0x1f8d   : > { %v5259_v57 = vmul.f32 %v12444_v12, %v5245_v55  ;;  %v12605_v55 = vld [vmem:[%s13163_s3 + $0xd0] sm:$0xff] }
0x1f8e   : > { %v5230_v18 = vpop.permute.xlu0 %5229  ;;  %v5232_v43 = vpop.permute.xlu1 %5231  ;;  %5329 = vmatprep.mubr.f32.mxu1 %v5260_v16  ;;  %v12600_v16 = vld [vmem:[%s13163_s3 + $0xc0] sm:$0xff] }
0x1f8f   : > { %5330 = vmatmul.mubr.f32.vlgmr.msra.gmra.mrb[56].mxu1 %v5259_v57  ;;  %v5255_v7 = vsel %vm655_vm2, %v5253_v51, %v5230_v18  ;;  %v5256_v17 = vsel %vm655_vm2, %v5254_v38, %v5232_v43  ;;  %v5422_v57 = vsub.f32 1.0, %v12493_v26  ;;  %v5420_v18 = vmul.f32 %v12493_v26, %v12343_v34 }
0x1f90   : > { %5334 = vmatprep.mubr.f32.mxu1 %v5263_v25  ;;  %v5419_v38 = vmul.f32 %v12495_v20, %v12345_v46  ;;  %v12648_v20 = vld [vmem:[%s13163_s3 + $0xc8] sm:$0xff] }
0x1f92   : > { %v5236_v12 = vpop.permute.xlu0 %5235  ;;  %v5238_v52 = vpop.permute.xlu1 %5237 }
0x1f93   : > { %v5257_v6 = vsel %vm658_vm3, %v5255_v7, %v5236_v12  ;;  %v5258_v29 = vsel %vm658_vm3, %v5256_v17, %v5238_v52  ;;  %5335 = vmatmul.mubr.f32.gmra.mrb[58].mxu1 %v5262_v39  ;;  %v12653_v12 = vld [vmem:[%s13163_s3 + $0xd8] sm:$0xff] }
0x1f94   : > { %v5261_v1 = vmul.f32 %v12478_v41, %v5257_v6  ;;  %v5264_v3 = vmul.f32 %v12473_v30, %v5258_v29  ;;  %9033 = vmatprep.mubr.msk.f32.mxu1 %vm429_vm0, %v12605_v55 }
0x1f96   : > { %9019 = vmatprep.mubr.f32.mxu0 %v5261_v1 }
0x1f97   : > { %9020 = vmatmul.mubr.f32.vlgmr.msra.gmra.mrb[58].mxu0 %v5264_v3 }
0x1f98   : > { %9026 = vmatprep.mubr.msk.f32.mxu0 %vm429_vm0, %v12600_v16 }
0x2062   : > { %v8154_v56 = vpop.f32.mrb[56].mxu1 }
0x2063   : > { %v8155_v11 = vpop.f32.mrb[57].mxu1 }
0x2064   : > { %v8156_v59 = vadd.f32 %v8155_v11, %v8154_v56 }
0x2066   : > { %v8157_v60 = vpop.f32.mrb[58].mxu1 }
0x2067   : > { %v8158_v5 = vpop.f32.mrb[59].mxu1 }
0x2068   : > { %v8159_v61 = vadd.f32 %v8158_v5, %v8157_v60 }
0x206a   : > { %v9021_v9 = vpop.f32.mrb[58].mxu0 }
0x206b   : > { %v5412_v47 = vadd.f32 %v9021_v9, %v8159_v61  ;;  %v5406_v50 = vpop.f32.mrb[59].mxu0 }
0x206c   : > { %v5407_v42 = vadd.f32 %v8156_v59, %v5406_v50 }
0x206d   : > { %v5416_v37 = vadd.f32 %v7345_v48, %v5412_v47 }
0x206e   : > { %v5415_v33 = vadd.f32 %v7344_v2, %v5407_v42  ;;  %v12708_v42 = vld [vmem:[%s13164_s4 + $0x128] sm:$0xff] }
0x206f   : > { %10449 = vtanh.f32 %v5416_v37 }
0x2070   : > { %10451 = vtanh.f32 %v5415_v33 }
0x2079   : > { %v10450_v41 = vpop.eup %10449 }
0x207a   : > { %v10452_v30 = vpop.eup %10451  ;;  %5427 = vrot.lane.b32.xlu1 %v10450_v41, %s10487_s17 }
0x207b   : > { %5425 = vrot.lane.b32.xlu0 %v10452_v30, %s10487_s17  ;;  %v12718_v30 = vld [vmem:[%s13164_s4 + $0x120] sm:$0xff] }
0x20ec   : > { %v5428_v25 = vpop.permute.xlu1 %5427 }
0x20ed   : > { %v5432_v43 = vmul.f32 %v5428_v25, %v5422_v57  ;;  %v5426_v51 = vpop.permute.xlu0 %5425 }
0x20ee   : > { %v5431_v39 = vmul.f32 %v5426_v51, %v5421_v4 }
0x20ef   : > { %v12617_v7 = vadd.f32 %v5432_v43, %v5420_v18  ;;  %v12725_v43 = vld [vmem:[%s13164_s4 + $0x140] sm:$0xff] }
0x20f0   : > { %v12619_v17 = vadd.f32 %v5431_v39, %v5419_v38 }
0x20f1   : > { %5439 = vrot.lane.b32.xlu1 %v12617_v7, %s10486_s16 }
0x20f2   : > { %5437 = vrot.lane.b32.xlu0 %v12619_v17, %s10486_s16 }
0x20f5   : > { %5639 = vrot.lane.b32.xlu1 %v12619_v17, %s10485_s11 }
0x20f6   : > { %5651 = vrot.lane.b32.xlu0 %v12619_v17, %s10487_s17 }
0x20f9   : > { %5641 = vrot.lane.b32.xlu1 %v12617_v7, %s10485_s11 }
0x20fa   : > { %5653 = vrot.lane.b32.xlu0 %v12617_v7, %s10487_s17 }
0x2163   : > { %v12633_v34 = vpop.permute.xlu1 %5439 }
0x2164   : > { %7351 = vst.msk [vmem:[%s11261_s26 + $0x58] sm:$0xff] %vm652_vm1, %v12633_v34  ;;  %v12638_v46 = vpop.permute.xlu0 %5437 }
0x2165   : > { %7350 = vst.msk [vmem:[%s11261_s26 + $0x50] sm:$0xff] %vm652_vm1, %v12638_v46  ;;  %v10082_v26 = vpack.c.bf16 %v12633_v34, %v12638_v46 }
0x2167   : > { %10083 = vmatprep.subr.bf16.mxu0 %v10082_v26  ;;  %10087 = vmatprep.subr.bf16.mxu1 %v10082_v26  ;;  %v5640_v3 = vpop.permute.xlu1 %5639 }
0x2168   : > { %10085 = vmatpush3.bf16.msra.mxu0 %v10082_v26  ;;  %10089 = vmatpush3.bf16.msra.mxu1 %v10082_v26  ;;  %v5652_v56 = vpop.permute.xlu0 %5651 }
0x2169   : > { %10091 = vmatprep.subr.bf16.mxu0 %v10597_v10  ;;  %10123 = vmatprep.subr.bf16.mxu1 %v10634_v23 }
0x216b   : > { %9027 = vmatmul.mubr.msk.f32.vlgmr.msra.gmra.mrb[60].mxu0 %vm429_vm0, %v12648_v20  ;;  %9034 = vmatmul.mubr.msk.f32.vlgmr.msra.gmra.mrb[60].mxu1 %vm429_vm0, %v12653_v12  ;;  %v5642_v11 = vpop.permute.xlu1 %5641 }
0x216c   : > { %10093 = vmatpush3.bf16.msra.mxu0 %v10608_v14  ;;  %10125 = vmatpush3.bf16.msra.mxu1 %v10634_v23  ;;  %v5654_v59 = vpop.permute.xlu0 %5653 }
0x216d   : > { %10095 = vmatprep.subr.bf16.mxu0 %v10610_v15  ;;  %10127 = vmatprep.subr.bf16.mxu1 %v10672_v35 }
0x2170   : > { %10097 = vmatpush3.bf16.msra.mxu0 %v10632_v22  ;;  %10129 = vmatpush3.bf16.msra.mxu1 %v10672_v35 }
0x2171   : > { %10099 = vmatprep.subr.bf16.mxu0 %v10637_v24  ;;  %10131 = vmatprep.subr.bf16.mxu1 %v10700_v44 }
0x2174   : > { %10101 = vmatpush3.bf16.msra.mxu0 %v10648_v27  ;;  %10133 = vmatpush3.bf16.msra.mxu1 %v10700_v44 }
0x2175   : > { %10103 = vmatprep.subr.bf16.mxu0 %v10661_v31  ;;  %10135 = vmatprep.subr.bf16.mxu1 %v10728_v53 }
0x2178   : > { %10105 = vmatpush3.bf16.msra.mxu0 %v10674_v36  ;;  %10137 = vmatpush3.bf16.msra.mxu1 %v10728_v53 }
0x2179   : > { %10107 = vmatprep.subr.bf16.mxu0 %v10689_v40  ;;  %10139 = vmatprep.subr.bf16.mxu1 %v10756_v62 }
0x217c   : > { %10109 = vmatpush3.bf16.msra.mxu0 %v10702_v45  ;;  %10141 = vmatpush3.bf16.msra.mxu1 %v10756_v62 }
0x217d   : > { %10111 = vmatprep.subr.bf16.mxu0 %v10717_v49  ;;  %10143 = vmatprep.subr.bf16.mxu1 %v10788_v19 }
0x2180   : > { %10113 = vmatpush3.bf16.msra.mxu0 %v10730_v54  ;;  %10145 = vmatpush3.bf16.msra.mxu1 %v10788_v19 }
0x2181   : > { %10115 = vmatprep.subr.bf16.mxu0 %v10745_v58  ;;  %10147 = vmatprep.subr.bf16.mxu1 %v10807_v28 }
0x2184   : > { %10117 = vmatpush3.bf16.msra.mxu0 %v10758_v63  ;;  %10149 = vmatpush3.bf16.msra.mxu1 %v10807_v28 }
0x2185   : > { %10119 = vmatprep.subr.bf16.mxu0 %v10776_v13  ;;  %10151 = vmatprep.subr.bf16.mxu1 %v10822_v32 }
0x2188   : > { %10121 = vmatpush3.bf16.msra.mxu0 %v10794_v21  ;;  %10153 = vmatpush3.bf16.msra.mxu1 %v10822_v32 }
0x223e   : > { %v9028_v52 = vpop.f32.mrb[60].mxu0  ;;  %v9035_v6 = vpop.f32.mrb[60].mxu1 }
0x223f   : > { %5647 = vrot.lane.b32.xlu0 %v9035_v6, %s10487_s17  ;;  %v5614_v29 = vpop.f32.mrb[61].mxu1  ;;  %5627 = vrot.lane.b32.xlu1 %v9028_v52, %s10487_s17  ;;  %v5533_v1 = vpop.f32.mrb[61].mxu0 }
0x2243   : > { %5659 = vrot.lane.b32.xlu0 %v9028_v52, %s10486_s16  ;;  %5635 = vrot.lane.b32.xlu1 %v9035_v6, %s10485_s11 }
0x2247   : > { %5645 = vrot.lane.b32.xlu0 %v5614_v29, %s10487_s17  ;;  %5625 = vrot.lane.b32.xlu1 %v5533_v1, %s10487_s17 }
0x224b   : > { %5657 = vrot.lane.b32.xlu0 %v5533_v1, %s10486_s16  ;;  %5633 = vrot.lane.b32.xlu1 %v5614_v29, %s10485_s11 }
0x224f   : > { %5663 = vrot.lane.b32.xlu0 %v5533_v1, %s10485_s11  ;;  %5665 = vrot.lane.b32.xlu1 %v9028_v52, %s10485_s11 }
0x2253   : > { %5669 = vrot.lane.b32.xlu0 %v5614_v29, %s10486_s16  ;;  %5671 = vrot.lane.b32.xlu1 %v9035_v6, %s10486_s16 }
0x22b1   : > { %v5628_v60 = vpop.permute.xlu1 %5627  ;;  %v5648_v5 = vpop.permute.xlu0 %5647 }
0x22b2   : > { %v5682_v2 = vsel %vm652_vm1, %v9028_v52, %v5648_v5  ;;  %v5676_v37 = vsel %vm652_vm1, %v12633_v34, %v5628_v60 }
0x22b3   : > { %v5684_v33 = vsel %vm655_vm2, %v5682_v2, %v5654_v59 }
0x22b5   : > { %v5636_v61 = vpop.permute.xlu1 %5635  ;;  %v5660_v48 = vpop.permute.xlu0 %5659 }
0x22b6   : > { %v5678_v18 = vsel %vm655_vm2, %v5676_v37, %v5636_v61  ;;  %v5686_v51 = vsel %vm658_vm3, %v5684_v33, %v5660_v48  ;;  %v12738_v61 = vld [vmem:[%s13164_s4 + $0x138] sm:$0xff]  ;;  %v5687_v48 = vsel %vm652_vm1, %v5614_v29, %v12619_v17 }
0x22b7   : > { %v5697_v59 = vmul.f32 %v12725_v43, %v5686_v51 }
0x22b9   : > { %v5626_v9 = vpop.permute.xlu1 %5625  ;;  %v5646_v47 = vpop.permute.xlu0 %5645 }
0x22ba   : > { %v5681_v50 = vsel %vm652_vm1, %v5533_v1, %v5646_v47  ;;  %v5675_v41 = vsel %vm652_vm1, %v12638_v46, %v5626_v9  ;;  %v12752_v9 = vld [vmem:[%s13164_s4 + $0x130] sm:$0xff] }
0x22bb   : > { %v5683_v25 = vsel %vm655_vm2, %v5681_v50, %v5652_v56  ;;  %v5680_v56 = vsel %vm658_vm3, %v5678_v18, %v5642_v11  ;;  %v12747_v11 = vld [vmem:[%s13164_s4 + $0x148] sm:$0xff] }
0x22bc   : > { %v5696_v47 = vmul.f32 %v12738_v61, %v5680_v56  ;;  %v7362_v56 = vld [vmem:[%s10909_s21 + $0x60] sm:$0xff] }
0x22bd   : > { %v5634_v57 = vpop.permute.xlu1 %5633  ;;  %v5658_v4 = vpop.permute.xlu0 %5657 }
0x22be   : > { %v5677_v38 = vsel %vm655_vm2, %v5675_v41, %v5634_v57  ;;  %v5685_v39 = vsel %vm658_vm3, %v5683_v25, %v5658_v4 }
0x22bf   : > { %v5679_v26 = vsel %vm658_vm3, %v5677_v38, %v5640_v3  ;;  %v5694_v52 = vmul.f32 %v12708_v42, %v5685_v39  ;;  %v5688_v3 = vsel %vm652_vm1, %v9035_v6, %v12617_v7 }
0x22c0   : > { %v5693_v1 = vmul.f32 %v12718_v30, %v5679_v26  ;;  %v7363_v26 = vld [vmem:[%s10909_s21 + $0x68] sm:$0xff] }
0x22c1   : > { %v5666_v60 = vpop.permute.xlu1 %5665  ;;  %5763 = vmatprep.mubr.f32.mxu0 %v5694_v52  ;;  %v5664_v5 = vpop.permute.xlu0 %5663 }
0x22c2   : > { %5764 = vmatmul.mubr.f32.vlgmr.msra.gmra.mrb[62].mxu0 %v5693_v1  ;;  %v5690_v2 = vsel %vm655_vm2, %v5688_v3, %v5666_v60  ;;  %v5689_v50 = vsel %vm655_vm2, %v5687_v48, %v5664_v5 }
0x22c3   : > { %5768 = vmatprep.mubr.f32.mxu0 %v5697_v59 }
0x22c5   : > { %v5672_v6 = vpop.permute.xlu1 %5671  ;;  %v5670_v37 = vpop.permute.xlu0 %5669 }
0x22c6   : > { %v5692_v29 = vsel %vm658_vm3, %v5690_v2, %v5672_v6  ;;  %v5691_v33 = vsel %vm658_vm3, %v5689_v50, %v5670_v37  ;;  %5769 = vmatmul.mubr.f32.gmra.mrb[64].mxu0 %v5696_v47 }
0x22c7   : > { %v5698_v41 = vmul.f32 %v12747_v11, %v5692_v29  ;;  %v5695_v57 = vmul.f32 %v12752_v9, %v5691_v33  ;;  %9082 = vmatprep.mubr.msk.f32.mxu0 %vm429_vm0, %v12605_v55 }
0x22c9   : > { %9068 = vmatprep.mubr.f32.mxu1 %v5695_v57  ;;  %v13388_v57 = vld [vmem:[#allocation6_spill] sm:$0xff] }
0x22ca   : > { %9069 = vmatmul.mubr.f32.vlgmr.msra.gmra.mrb[62].mxu1 %v5698_v41 }
0x22cb   : > { %9075 = vmatprep.mubr.msk.f32.mxu1 %vm429_vm0, %v12600_v16 }
0x2395   : > { %v8218_v25 = vpop.f32.mrb[62].mxu0 }
0x2396   : > { %v8219_v4 = vpop.f32.mrb[63].mxu0 }
0x2397   : > { %v8220_v18 = vadd.f32 %v8219_v4, %v8218_v25  ;;  %v13389_v25 = vld [vmem:[#allocation4_spill] sm:$0xff]  ;;  %v13392_v4 = vld [vmem:[#allocation7_spill] sm:$0xff] }
0x2399   : > { %v8221_v51 = vpop.f32.mrb[64].mxu0 }
0x239a   : > { %v8222_v38 = vpop.f32.mrb[65].mxu0 }
0x239b   : > { %v8223_v39 = vadd.f32 %v8222_v38, %v8221_v51  ;;  %v13394_v51 = vld [vmem:[#allocation14_spill] sm:$0xff]  ;;  %v13395_v38 = vld [vmem:[#allocation9_spill] sm:$0xff] }
0x239d   : > { %v9070_v52 = vpop.f32.mrb[62].mxu1 }
0x239e   : > { %v5846_v1 = vadd.f32 %v9070_v52, %v8223_v39  ;;  %v5840_v59 = vpop.f32.mrb[63].mxu1  ;;  %v13396_v39 = vld [vmem:[#allocation10_spill] sm:$0xff]  ;;  %v13398_v52 = vld [vmem:[#allocation12_spill] sm:$0xff] }
0x239f   : > { %v5841_v60 = vadd.f32 %v8220_v18, %v5840_v59  ;;  %v13393_v18 = vld [vmem:[#allocation8_spill] sm:$0xff]  ;;  %v13401_v59 = vld [vmem:[#allocation15_spill] sm:$0xff] }
0x23a0   : > { %v5850_v5 = vadd.f32 %v7363_v26, %v5846_v1  ;;  %v13397_v26 = vld [vmem:[#allocation17_spill] sm:$0xff] }
0x23a1   : > { %v5849_v3 = vadd.f32 %v7362_v56, %v5841_v60  ;;  %v13399_v1 = vld [vmem:[#allocation13_spill] sm:$0xff]  ;;  %v13400_v56 = vld [vmem:[#allocation20_spill] sm:$0xff] }
0x23a2   : > { %v7369_v55 = vmul.f32 -1.442695, %v5850_v5  ;;  %v13402_v60 = vld [vmem:[#allocation16_spill] sm:$0xff]  ;;  %v13403_v5 = vld [vmem:[#allocation22_spill] sm:$0xff] }
0x23a3   : > { %v7368_v48 = vmul.f32 -1.442695, %v5849_v3  ;;  %v13404_v3 = vld [vmem:[#allocation18_spill] sm:$0xff] }
0x23a4   : > { %10453 = vpow2.f32 %v7369_v55  ;;  %v13405_v55 = vld [vmem:[#allocation19_spill] sm:$0xff] }
0x23a5   : > { %10455 = vpow2.f32 %v7368_v48  ;;  %v13406_v48 = vld [vmem:[#allocation23_spill] sm:$0xff] }
0x23ae   : > { %v10454_v47 = vpop.eup %10453 }
0x23af   : > { %v10456_v16 = vpop.eup %10455  ;;  %v5858_v2 = vadd.f32 1.0, %v10454_v47  ;;  %v13407_v47 = vld [vmem:[#allocation21_spill] sm:$0xff] }
0x23b0   : > { %v5857_v50 = vadd.f32 1.0, %v10456_v16 }
0x23b1   : > { %10457 = vrcp.f32 %v5858_v2 }
0x23b2   : > { %10459 = vrcp.f32 %v5857_v50 }
0x23bb   : > { %v12767_v6 = vpop.eup %10457 }
0x23bc   : > { %v12769_v37 = vpop.eup %10459  ;;  %v12773_v29 = vmul.f32 %v12767_v6, %v12633_v34  ;;  %v13386_v34 = vld [vmem:[#allocation2_spill] sm:$0xff] }
0x23bd   : > { %v12777_v33 = vmul.f32 %v12769_v37, %v12638_v46  ;;  %v13387_v46 = vld [vmem:[#allocation3_spill] sm:$0xff] }
0x23bf   : > { %6036 = vrot.lane.b32.xlu1 %v12777_v33, %s10486_s16  ;;  %6048 = vrot.lane.b32.xlu0 %v12777_v33, %s10485_s11  ;;  %v10154_v41 = vpack.c.bf16 %v12773_v29, %v12777_v33 }
0x23c1   : > { %10155 = vmatprep.subr.bf16.mxu1 %v10154_v41  ;;  %10159 = vmatprep.subr.bf16.mxu0 %v10154_v41 }
0x23c2   : > { %10157 = vmatpush3.bf16.msra.mxu1 %v10154_v41  ;;  %10161 = vmatpush3.bf16.msra.mxu0 %v10154_v41 }
0x23c3   : > { %6060 = vrot.lane.b32.xlu1 %v12777_v33, %s10487_s17  ;;  %6050 = vrot.lane.b32.xlu0 %v12773_v29, %s10485_s11 }
0x23c4   : > { %10163 = vmatprep.subr.bf16.mxu1 %v10952_v8  ;;  %10195 = vmatprep.subr.bf16.mxu0 %v10989_v0 }
0x23c5   : > { %9076 = vmatmul.mubr.msk.f32.vlgmr.msra.gmra.mrb[64].mxu1 %vm429_vm0, %v12648_v20  ;;  %9083 = vmatmul.mubr.msk.f32.vlgmr.msra.gmra.mrb[66].mxu0 %vm429_vm0, %v12653_v12  ;;  %v13390_v20 = vld [vmem:[#allocation5_spill] sm:$0xff]  ;;  %v13391_v12 = vld [vmem:[#allocation11_spill] sm:$0xff] }
0x23c6   : > { %10165 = vmatpush3.bf16.msra.mxu1 %v13386_v34  ;;  %10197 = vmatpush3.bf16.msra.mxu0 %v10989_v0 }
0x23c7   : > { %6062 = vrot.lane.b32.xlu1 %v12773_v29, %s10487_s17  ;;  %6038 = vrot.lane.b32.xlu0 %v12773_v29, %s10486_s16 }
0x23c8   : > { %10167 = vmatprep.subr.bf16.mxu1 %v13387_v46  ;;  %10199 = vmatprep.subr.bf16.mxu0 %v13388_v57 }
0x23ca   : > { %10169 = vmatpush3.bf16.msra.mxu1 %v13389_v25  ;;  %10201 = vmatpush3.bf16.msra.mxu0 %v13388_v57 }
0x23cb   : > { %10171 = vmatprep.subr.bf16.mxu1 %v13390_v20  ;;  %10203 = vmatprep.subr.bf16.mxu0 %v13391_v12 }
0x23ce   : > { %10173 = vmatpush3.bf16.msra.mxu1 %v13392_v4  ;;  %10205 = vmatpush3.bf16.msra.mxu0 %v13391_v12 }
0x23cf   : > { %10175 = vmatprep.subr.bf16.mxu1 %v13393_v18  ;;  %10207 = vmatprep.subr.bf16.mxu0 %v13394_v51 }
0x23d2   : > { %10177 = vmatpush3.bf16.msra.mxu1 %v13395_v38  ;;  %10209 = vmatpush3.bf16.msra.mxu0 %v13394_v51 }
0x23d3   : > { %10179 = vmatprep.subr.bf16.mxu1 %v13396_v39  ;;  %10211 = vmatprep.subr.bf16.mxu0 %v13397_v26 }
0x23d6   : > { %10181 = vmatpush3.bf16.msra.mxu1 %v13398_v52  ;;  %10213 = vmatpush3.bf16.msra.mxu0 %v13397_v26 }
0x23d7   : > { %10183 = vmatprep.subr.bf16.mxu1 %v13399_v1  ;;  %10215 = vmatprep.subr.bf16.mxu0 %v13400_v56 }
0x23da   : > { %10185 = vmatpush3.bf16.msra.mxu1 %v13401_v59  ;;  %10217 = vmatpush3.bf16.msra.mxu0 %v13400_v56 }
0x23db   : > { %10187 = vmatprep.subr.bf16.mxu1 %v13402_v60  ;;  %10219 = vmatprep.subr.bf16.mxu0 %v13403_v5 }
0x23de   : > { %10189 = vmatpush3.bf16.msra.mxu1 %v13404_v3  ;;  %10221 = vmatpush3.bf16.msra.mxu0 %v13403_v5 }
0x23df   : > { %10191 = vmatprep.subr.bf16.mxu1 %v13405_v55  ;;  %10223 = vmatprep.subr.bf16.mxu0 %v13406_v48 }
0x23e2   : > { %10193 = vmatpush3.bf16.msra.mxu1 %v13407_v47  ;;  %10225 = vmatpush3.bf16.msra.mxu0 %v13406_v48 }
0x2431   : > { %v6037_v47 = vpop.permute.xlu1 %6036  ;;  %v6049_v48 = vpop.permute.xlu0 %6048 }
0x2435   : > { %v6061_v55 = vpop.permute.xlu1 %6060  ;;  %v6051_v3 = vpop.permute.xlu0 %6050 }
0x2439   : > { %v6063_v5 = vpop.permute.xlu1 %6062  ;;  %v6039_v60 = vpop.permute.xlu0 %6038 }
0x2498   : > { %v9077_v16 = vpop.f32.mrb[64].mxu1  ;;  %v9084_v2 = vpop.f32.mrb[66].mxu0 }
0x2499   : > { %6044 = vrot.lane.b32.xlu0 %v9084_v2, %s10487_s17  ;;  %v6009_v50 = vpop.f32.mrb[67].mxu0  ;;  %6022 = vrot.lane.b32.xlu1 %v9077_v16, %s10487_s17  ;;  %v5934_v41 = vpop.f32.mrb[65].mxu1 }
0x249d   : > { %6056 = vrot.lane.b32.xlu0 %v9077_v16, %s10486_s16  ;;  %6030 = vrot.lane.b32.xlu1 %v9084_v2, %s10485_s11 }
0x24a1   : > { %6042 = vrot.lane.b32.xlu0 %v6009_v50, %s10487_s17  ;;  %6020 = vrot.lane.b32.xlu1 %v5934_v41, %s10487_s17 }
0x24a5   : > { %6054 = vrot.lane.b32.xlu0 %v5934_v41, %s10486_s16  ;;  %6028 = vrot.lane.b32.xlu1 %v6009_v50, %s10485_s11 }
0x24a9   : > { %6066 = vrot.lane.b32.xlu0 %v5934_v41, %s10485_s11  ;;  %6068 = vrot.lane.b32.xlu1 %v9077_v16, %s10485_s11 }
0x24ad   : > { %6072 = vrot.lane.b32.xlu0 %v6009_v50, %s10486_s16  ;;  %6074 = vrot.lane.b32.xlu1 %v9084_v2, %s10486_s16 }
0x250b   : > { %v6045_v59 = vpop.permute.xlu0 %6044  ;;  %v6023_v56 = vpop.permute.xlu1 %6022 }
0x250c   : > { %v6085_v38 = vsel %vm652_vm1, %v9077_v16, %v6045_v59  ;;  %v6079_v18 = vsel %vm652_vm1, %v12773_v29, %v6023_v56 }
0x250d   : > { %v6087_v4 = vsel %vm655_vm2, %v6085_v38, %v6051_v3 }
0x250f   : > { %v6057_v1 = vpop.permute.xlu0 %6056  ;;  %v6031_v52 = vpop.permute.xlu1 %6030 }
0x2510   : > { %v6089_v46 = vsel %vm658_vm3, %v6087_v4, %v6057_v1  ;;  %v6081_v34 = vsel %vm655_vm2, %v6079_v18, %v6031_v52  ;;  %v6090_v4 = vsel %vm652_vm1, %v6009_v50, %v6061_v55  ;;  %v7371_v55 = vld [vmem:[%s11215_s14 + $0x68] sm:$0xff] }
0x2513   : > { %v6043_v26 = vpop.permute.xlu0 %6042  ;;  %v6021_v39 = vpop.permute.xlu1 %6020 }
0x2514   : > { %v6084_v51 = vsel %vm652_vm1, %v5934_v41, %v6043_v26  ;;  %v6078_v12 = vsel %vm652_vm1, %v12777_v33, %v6021_v39  ;;  %v6100_v33 = vmul.f32 %v12725_v43, %v6089_v46  ;;  %v6083_v39 = vsel %vm658_vm3, %v6081_v34, %v6039_v60 }
0x2515   : > { %v6086_v25 = vsel %vm655_vm2, %v6084_v51, %v6049_v48 }
0x2517   : > { %v6055_v20 = vpop.permute.xlu0 %6054  ;;  %v6029_v57 = vpop.permute.xlu1 %6028 }
0x2518   : > { %v6088_v59 = vsel %vm658_vm3, %v6086_v25, %v6055_v20  ;;  %v6080_v26 = vsel %vm655_vm2, %v6078_v12, %v6029_v57  ;;  %v6091_v25 = vsel %vm652_vm1, %v9084_v2, %v6063_v5  ;;  %v6099_v57 = vmul.f32 %v12738_v61, %v6083_v39  ;;  %v7370_v2 = vld [vmem:[%s11215_s14 + $0x60] sm:$0xff] }
0x2519   : > { %v6097_v16 = vmul.f32 %v12708_v42, %v6088_v59  ;;  %v6082_v29 = vsel %vm658_vm3, %v6080_v26, %v6037_v47  ;;  %v6258_v39 = vsub.f32 1.0, %v12769_v37 }
0x251a   : > { %v6096_v38 = vmul.f32 %v12718_v30, %v6082_v29  ;;  %v12879_v29 = vld [vmem:[%s13163_s3 + $0xf0] sm:$0xff] }
0x251b   : > { %v6067_v51 = vpop.permute.xlu0 %6066  ;;  %v6069_v56 = vpop.permute.xlu1 %6068  ;;  %6166 = vmatprep.mubr.f32.mxu1 %v6097_v16  ;;  %v12874_v16 = vld [vmem:[%s13163_s3 + $0xe0] sm:$0xff] }
0x251c   : > { %6167 = vmatmul.mubr.f32.vlgmr.msra.gmra.mrb[66].mxu1 %v6096_v38  ;;  %v6092_v42 = vsel %vm655_vm2, %v6090_v4, %v6067_v51  ;;  %v6093_v20 = vsel %vm655_vm2, %v6091_v25, %v6069_v56  ;;  %v6259_v38 = vsub.f32 1.0, %v12767_v6  ;;  %v6257_v51 = vmul.f32 %v12767_v6, %v12617_v7 }
0x251d   : > { %6171 = vmatprep.mubr.f32.mxu1 %v6100_v33  ;;  %v6256_v25 = vmul.f32 %v12769_v37, %v12619_v17  ;;  %v12922_v37 = vld [vmem:[%s13163_s3 + $0xe8] sm:$0xff] }
0x251f   : > { %v6073_v30 = vpop.permute.xlu0 %6072  ;;  %v6075_v43 = vpop.permute.xlu1 %6074 }
0x2520   : > { %v6094_v34 = vsel %vm658_vm3, %v6092_v42, %v6073_v30  ;;  %v6095_v46 = vsel %vm658_vm3, %v6093_v20, %v6075_v43  ;;  %6172 = vmatmul.mubr.f32.gmra.mrb[68].mxu1 %v6099_v57  ;;  %v12927_v30 = vld [vmem:[%s13163_s3 + $0xf8] sm:$0xff] }
0x2521   : > { %v6098_v12 = vmul.f32 %v12752_v9, %v6094_v34  ;;  %v6101_v18 = vmul.f32 %v12747_v11, %v6095_v46  ;;  %9131 = vmatprep.mubr.msk.f32.mxu1 %vm429_vm0, %v12879_v29  ;;  %v12999_v34 = vld [vmem:[%s13164_s4 + $0x170] sm:$0xff] }
0x2523   : > { %9117 = vmatprep.mubr.f32.mxu0 %v6098_v12 }
0x2524   : > { %9118 = vmatmul.mubr.f32.vlgmr.msra.gmra.mrb[68].mxu0 %v6101_v18 }
0x2525   : > { %9124 = vmatprep.mubr.msk.f32.mxu0 %vm429_vm0, %v12874_v16 }
0x25ef   : > { %v8282_v61 = vpop.f32.mrb[66].mxu1 }
0x25f0   : > { %v8283_v52 = vpop.f32.mrb[67].mxu1 }
0x25f1   : > { %v8284_v1 = vadd.f32 %v8283_v52, %v8282_v61 }
0x25f3   : > { %v8285_v60 = vpop.f32.mrb[68].mxu1 }
0x25f4   : > { %v8286_v5 = vpop.f32.mrb[69].mxu1 }
0x25f5   : > { %v8287_v3 = vadd.f32 %v8286_v5, %v8285_v60 }
0x25f7   : > { %v9119_v48 = vpop.f32.mrb[68].mxu0 }
0x25f8   : > { %v6249_v47 = vadd.f32 %v9119_v48, %v8287_v3  ;;  %v6243_v50 = vpop.f32.mrb[69].mxu0  ;;  %v13012_v48 = vld [vmem:[%s13164_s4 + $0x168] sm:$0xff] }
0x25f9   : > { %v6244_v41 = vadd.f32 %v8284_v1, %v6243_v50  ;;  %v13021_v50 = vld [vmem:[%s13164_s4 + $0x178] sm:$0xff] }
0x25fa   : > { %v6253_v59 = vadd.f32 %v7371_v55, %v6249_v47 }
0x25fb   : > { %v6252_v26 = vadd.f32 %v7370_v2, %v6244_v41  ;;  %v13026_v41 = vld [vmem:[%s13164_s4 + $0x160] sm:$0xff] }
0x25fc   : > { %10461 = vtanh.f32 %v6253_v59 }
0x25fd   : > { %10463 = vtanh.f32 %v6252_v26 }
0x2606   : > { %v10462_v9 = vpop.eup %10461 }
0x2607   : > { %v10464_v11 = vpop.eup %10463  ;;  %6264 = vrot.lane.b32.xlu1 %v10462_v9, %s10487_s17 }
0x2608   : > { %6262 = vrot.lane.b32.xlu0 %v10464_v11, %s10487_s17 }
0x2679   : > { %v6265_v33 = vpop.permute.xlu1 %6264 }
0x267a   : > { %v6269_v56 = vmul.f32 %v6265_v33, %v6259_v38  ;;  %v6263_v4 = vpop.permute.xlu0 %6262 }
0x267b   : > { %v6268_v57 = vmul.f32 %v6263_v4, %v6258_v39 }
0x267c   : > { %v12891_v42 = vadd.f32 %v6269_v56, %v6257_v51 }
0x267d   : > { %v12893_v20 = vadd.f32 %v6268_v57, %v6256_v25 }
0x267e   : > { %6276 = vrot.lane.b32.xlu1 %v12891_v42, %s10486_s16 }
0x267f   : > { %6274 = vrot.lane.b32.xlu0 %v12893_v20, %s10486_s16 }
0x2682   : > { %6476 = vrot.lane.b32.xlu1 %v12893_v20, %s10485_s11 }
0x2683   : > { %6488 = vrot.lane.b32.xlu0 %v12893_v20, %s10487_s17 }
0x2686   : > { %6478 = vrot.lane.b32.xlu1 %v12891_v42, %s10485_s11 }
0x2687   : > { %6490 = vrot.lane.b32.xlu0 %v12891_v42, %s10487_s17 }
0x26f0   : > { %v12907_v7 = vpop.permute.xlu1 %6276 }
0x26f1   : > { %7377 = vst.msk [vmem:[%s11261_s26 + $0x68] sm:$0xff] %vm652_vm1, %v12907_v7  ;;  %v12912_v17 = vpop.permute.xlu0 %6274 }
0x26f2   : > { %7376 = vst.msk [vmem:[%s11261_s26 + $0x60] sm:$0xff] %vm652_vm1, %v12912_v17  ;;  %v10226_v6 = vpack.c.bf16 %v12907_v7, %v12912_v17 }
0x26f4   : > { %10227 = vmatprep.subr.bf16.mxu0 %v10226_v6  ;;  %10231 = vmatprep.subr.bf16.mxu1 %v10226_v6 }
0x26f5   : > { %10229 = vmatpush3.bf16.msra.mxu0 %v10226_v6  ;;  %10233 = vmatpush3.bf16.msra.mxu1 %v10226_v6 }
0x26f6   : > { %10235 = vmatprep.subr.bf16.mxu0 %v10597_v10  ;;  %10267 = vmatprep.subr.bf16.mxu1 %v10634_v23 }
0x26f8   : > { %9125 = vmatmul.mubr.msk.f32.vlgmr.msra.gmra.mrb[70].mxu0 %vm429_vm0, %v12922_v37  ;;  %9132 = vmatmul.mubr.msk.f32.vlgmr.msra.gmra.mrb[70].mxu1 %vm429_vm0, %v12927_v30 }
0x26f9   : > { %10237 = vmatpush3.bf16.msra.mxu0 %v10608_v14  ;;  %10269 = vmatpush3.bf16.msra.mxu1 %v10634_v23  ;;  %v6477_v23 = vpop.permute.xlu1 %6476 }
0x26fa   : > { %10239 = vmatprep.subr.bf16.mxu0 %v10610_v15  ;;  %10271 = vmatprep.subr.bf16.mxu1 %v10672_v35 }
0x26fd   : > { %10241 = vmatpush3.bf16.msra.mxu0 %v10632_v22  ;;  %10273 = vmatpush3.bf16.msra.mxu1 %v10672_v35 }
0x26fe   : > { %10243 = vmatprep.subr.bf16.mxu0 %v10637_v24  ;;  %10275 = vmatprep.subr.bf16.mxu1 %v10700_v44  ;;  %v6489_v24 = vpop.permute.xlu0 %6488 }
0x2701   : > { %10245 = vmatpush3.bf16.msra.mxu0 %v10648_v27  ;;  %10277 = vmatpush3.bf16.msra.mxu1 %v10700_v44  ;;  %v6479_v27 = vpop.permute.xlu1 %6478 }
0x2702   : > { %10247 = vmatprep.subr.bf16.mxu0 %v10661_v31  ;;  %10279 = vmatprep.subr.bf16.mxu1 %v10728_v53  ;;  %v6491_v31 = vpop.permute.xlu0 %6490 }
0x2705   : > { %10249 = vmatpush3.bf16.msra.mxu0 %v10674_v36  ;;  %10281 = vmatpush3.bf16.msra.mxu1 %v10728_v53 }
0x2706   : > { %10251 = vmatprep.subr.bf16.mxu0 %v10689_v40  ;;  %10283 = vmatprep.subr.bf16.mxu1 %v10756_v62 }
0x2709   : > { %10253 = vmatpush3.bf16.msra.mxu0 %v10702_v45  ;;  %10285 = vmatpush3.bf16.msra.mxu1 %v10756_v62 }
0x270a   : > { %10255 = vmatprep.subr.bf16.mxu0 %v10717_v49  ;;  %10287 = vmatprep.subr.bf16.mxu1 %v10788_v19 }
0x270d   : > { %10257 = vmatpush3.bf16.msra.mxu0 %v10730_v54  ;;  %10289 = vmatpush3.bf16.msra.mxu1 %v10788_v19  ;;  %v12992_v19 = vld [vmem:[%s13164_s4 + $0x150] sm:$0xff] }
0x270e   : > { %10259 = vmatprep.subr.bf16.mxu0 %v10745_v58  ;;  %10291 = vmatprep.subr.bf16.mxu1 %v10807_v28  ;;  %v12982_v58 = vld [vmem:[%s13164_s4 + $0x158] sm:$0xff] }
0x2711   : > { %10261 = vmatpush3.bf16.msra.mxu0 %v10758_v63  ;;  %10293 = vmatpush3.bf16.msra.mxu1 %v10807_v28 }
0x2712   : > { %10263 = vmatprep.subr.bf16.mxu0 %v10776_v13  ;;  %10295 = vmatprep.subr.bf16.mxu1 %v10822_v32 }
0x2715   : > { %10265 = vmatpush3.bf16.msra.mxu0 %v10794_v21  ;;  %10297 = vmatpush3.bf16.msra.mxu1 %v10822_v32 }
0x27cb   : > { %v9126_v10 = vpop.f32.mrb[70].mxu0  ;;  %v9133_v14 = vpop.f32.mrb[70].mxu1 }
0x27cc   : > { %6484 = vrot.lane.b32.xlu0 %v9133_v14, %s10487_s17  ;;  %v6451_v15 = vpop.f32.mrb[71].mxu1  ;;  %6464 = vrot.lane.b32.xlu1 %v9126_v10, %s10487_s17  ;;  %v6370_v22 = vpop.f32.mrb[71].mxu0  ;;  %v6525_v47 = vsel %vm652_vm1, %v9133_v14, %v12891_v42 }
0x27cd   : > { %v6524_v2 = vsel %vm652_vm1, %v6451_v15, %v12893_v20 }
0x27d0   : > { %6496 = vrot.lane.b32.xlu0 %v9126_v10, %s10486_s16  ;;  %6472 = vrot.lane.b32.xlu1 %v9133_v14, %s10485_s11 }
0x27d4   : > { %6482 = vrot.lane.b32.xlu0 %v6451_v15, %s10487_s17  ;;  %6462 = vrot.lane.b32.xlu1 %v6370_v22, %s10487_s17 }
0x27d8   : > { %6494 = vrot.lane.b32.xlu0 %v6370_v22, %s10486_s16  ;;  %6470 = vrot.lane.b32.xlu1 %v6451_v15, %s10485_s11 }
0x27dc   : > { %6500 = vrot.lane.b32.xlu0 %v6370_v22, %s10485_s11  ;;  %6502 = vrot.lane.b32.xlu1 %v9126_v10, %s10485_s11 }
0x27e0   : > { %6506 = vrot.lane.b32.xlu0 %v6451_v15, %s10486_s16  ;;  %6508 = vrot.lane.b32.xlu1 %v9133_v14, %s10486_s16  ;;  %v7389_v15 = vld [vmem:[%s10909_s21 + $0x78] sm:$0xff] }
0x283e   : > { %v6465_v35 = vpop.permute.xlu1 %6464  ;;  %v6485_v36 = vpop.permute.xlu0 %6484 }
0x283f   : > { %v6519_v53 = vsel %vm652_vm1, %v9126_v10, %v6485_v36  ;;  %v6513_v62 = vsel %vm652_vm1, %v12907_v7, %v6465_v35 }
0x2840   : > { %v6521_v63 = vsel %vm655_vm2, %v6519_v53, %v6491_v31 }
0x2842   : > { %v6473_v40 = vpop.permute.xlu1 %6472  ;;  %v6497_v44 = vpop.permute.xlu0 %6496 }
0x2843   : > { %v6515_v43 = vsel %vm655_vm2, %v6513_v62, %v6473_v40  ;;  %v6523_v46 = vsel %vm658_vm3, %v6521_v63, %v6497_v44 }
0x2844   : > { %v6517_v60 = vsel %vm658_vm3, %v6515_v43, %v6479_v27  ;;  %v6534_v5 = vmul.f32 %v12999_v34, %v6523_v46  ;;  %v13417_v43 = vld [vmem:[#allocation9_spill] sm:$0xff]  ;;  %v13418_v46 = vld [vmem:[#allocation10_spill] sm:$0xff] }
0x2845   : > { %v6533_v59 = vmul.f32 %v13012_v48, %v6517_v60  ;;  %v13424_v60 = vld [vmem:[#allocation16_spill] sm:$0xff] }
0x2846   : > { %v6463_v45 = vpop.permute.xlu1 %6462  ;;  %v6483_v49 = vpop.permute.xlu0 %6482 }
0x2847   : > { %v6518_v54 = vsel %vm652_vm1, %v6370_v22, %v6483_v49  ;;  %v6512_v13 = vsel %vm652_vm1, %v12912_v17, %v6463_v45 }
0x2848   : > { %v6520_v28 = vsel %vm655_vm2, %v6518_v54, %v6489_v24  ;;  %v7388_v24 = vld [vmem:[%s10909_s21 + $0x70] sm:$0xff] }
0x284a   : > { %v6471_v21 = vpop.permute.xlu1 %6470  ;;  %v6495_v32 = vpop.permute.xlu0 %6494 }
0x284b   : > { %v6514_v12 = vsel %vm655_vm2, %v6512_v13, %v6471_v21  ;;  %v6522_v18 = vsel %vm658_vm3, %v6520_v28, %v6495_v32  ;;  %v13411_v21 = vld [vmem:[#allocation4_spill] sm:$0xff]  ;;  %v13414_v28 = vld [vmem:[#allocation7_spill] sm:$0xff]  ;;  %v13416_v32 = vld [vmem:[#allocation14_spill] sm:$0xff] }
0x284c   : > { %v6516_v61 = vsel %vm658_vm3, %v6514_v12, %v6477_v23  ;;  %v6531_v52 = vmul.f32 %v12982_v58, %v6522_v18  ;;  %v13419_v12 = vld [vmem:[#allocation17_spill] sm:$0xff]  ;;  %v13420_v18 = vld [vmem:[#allocation12_spill] sm:$0xff] }
0x284d   : > { %v6530_v1 = vmul.f32 %v12992_v19, %v6516_v61  ;;  %v13421_v61 = vld [vmem:[#allocation13_spill] sm:$0xff] }
0x284e   : > { %v6503_v3 = vpop.permute.xlu1 %6502  ;;  %6600 = vmatprep.mubr.f32.mxu0 %v6531_v52  ;;  %v6501_v55 = vpop.permute.xlu0 %6500  ;;  %v13422_v52 = vld [vmem:[#allocation20_spill] sm:$0xff] }
0x284f   : > { %6601 = vmatmul.mubr.f32.vlgmr.msra.gmra.mrb[72].mxu0 %v6530_v1  ;;  %v6527_v26 = vsel %vm655_vm2, %v6525_v47, %v6503_v3  ;;  %v6526_v9 = vsel %vm655_vm2, %v6524_v2, %v6501_v55  ;;  %v13423_v1 = vld [vmem:[#allocation15_spill] sm:$0xff]  ;;  %v13426_v3 = vld [vmem:[#allocation18_spill] sm:$0xff]  ;;  %v13429_v2 = vld [vmem:[#allocation21_spill] sm:$0xff] }
0x2850   : > { %6605 = vmatprep.mubr.f32.mxu0 %v6534_v5  ;;  %v13425_v5 = vld [vmem:[#allocation22_spill] sm:$0xff]  ;;  %v13427_v55 = vld [vmem:[#allocation19_spill] sm:$0xff] }
0x2851   : > { %v13428_v47 = vld [vmem:[#allocation23_spill] sm:$0xff] }
0x2852   : > { %v6509_v11 = vpop.permute.xlu1 %6508  ;;  %v6507_v38 = vpop.permute.xlu0 %6506 }
0x2853   : > { %v6529_v33 = vsel %vm658_vm3, %v6527_v26, %v6509_v11  ;;  %v6528_v39 = vsel %vm658_vm3, %v6526_v9, %v6507_v38  ;;  %6606 = vmatmul.mubr.f32.gmra.mrb[74].mxu0 %v6533_v59 }
0x2854   : > { %v6535_v51 = vmul.f32 %v13021_v50, %v6529_v33  ;;  %v6532_v56 = vmul.f32 %v13026_v41, %v6528_v39  ;;  %9180 = vmatprep.mubr.msk.f32.mxu0 %vm429_vm0, %v12879_v29 }
0x2856   : > { %9166 = vmatprep.mubr.f32.mxu1 %v6532_v56 }
0x2857   : > { %9167 = vmatmul.mubr.f32.vlgmr.msra.gmra.mrb[72].mxu1 %v6535_v51 }
0x2858   : > { %9173 = vmatprep.mubr.msk.f32.mxu1 %vm429_vm0, %v12874_v16 }
0x2922   : > { %v8346_v4 = vpop.f32.mrb[72].mxu0 }
0x2923   : > { %v8347_v25 = vpop.f32.mrb[73].mxu0 }
0x2924   : > { %v8348_v57 = vadd.f32 %v8347_v25, %v8346_v4 }
0x2926   : > { %v8349_v6 = vpop.f32.mrb[74].mxu0 }
0x2927   : > { %v8350_v10 = vpop.f32.mrb[75].mxu0 }
0x2928   : > { %v8351_v14 = vadd.f32 %v8350_v10, %v8349_v6 }
0x292a   : > { %v9168_v22 = vpop.f32.mrb[72].mxu1 }
0x292b   : > { %v6683_v23 = vadd.f32 %v9168_v22, %v8351_v14  ;;  %v6677_v27 = vpop.f32.mrb[73].mxu1 }
0x292c   : > { %v6678_v31 = vadd.f32 %v8348_v57, %v6677_v27 }
0x292d   : > { %v6687_v35 = vadd.f32 %v7389_v15, %v6683_v23 }
0x292e   : > { %v6686_v36 = vadd.f32 %v7388_v24, %v6678_v31 }
0x292f   : > { %v7395_v29 = vmul.f32 -1.442695, %v6687_v35 }
0x2930   : > { %v7394_v40 = vmul.f32 -1.442695, %v6686_v36 }
0x2931   : > { %10465 = vpow2.f32 %v7395_v29 }
0x2932   : > { %10467 = vpow2.f32 %v7394_v40 }
0x293b   : > { %v10466_v44 = vpop.eup %10465 }
0x293c   : > { %v10468_v16 = vpop.eup %10467  ;;  %v6695_v45 = vadd.f32 1.0, %v10466_v44 }
0x293d   : > { %v6694_v49 = vadd.f32 1.0, %v10468_v16 }
0x293e   : > { %10469 = vrcp.f32 %v6695_v45 }
0x293f   : > { %10471 = vrcp.f32 %v6694_v49 }
0x2948   : > { %v13041_v53 = vpop.eup %10469 }
0x2949   : > { %v13043_v54 = vpop.eup %10471  ;;  %v13047_v62 = vmul.f32 %v13041_v53, %v12907_v7  ;;  %v13408_v7 = vld [vmem:[#allocation2_spill] sm:$0xff] }
0x294a   : > { %v13051_v63 = vmul.f32 %v13043_v54, %v12912_v17  ;;  %v13409_v17 = vld [vmem:[#allocation3_spill] sm:$0xff] }
0x294c   : > { %6873 = vrot.lane.b32.xlu1 %v13051_v63, %s10486_s16  ;;  %6885 = vrot.lane.b32.xlu0 %v13051_v63, %s10485_s11  ;;  %v10298_v13 = vpack.c.bf16 %v13047_v62, %v13051_v63 }
0x294e   : > { %10299 = vmatprep.subr.bf16.mxu1 %v10298_v13  ;;  %10303 = vmatprep.subr.bf16.mxu0 %v10298_v13 }
0x294f   : > { %10301 = vmatpush3.bf16.msra.mxu1 %v10298_v13  ;;  %10305 = vmatpush3.bf16.msra.mxu0 %v10298_v13 }
0x2950   : > { %6897 = vrot.lane.b32.xlu1 %v13051_v63, %s10487_s17  ;;  %6887 = vrot.lane.b32.xlu0 %v13047_v62, %s10485_s11 }
0x2951   : > { %10307 = vmatprep.subr.bf16.mxu1 %v10952_v8  ;;  %10339 = vmatprep.subr.bf16.mxu0 %v10989_v0  ;;  %v13410_v8 = vld [vmem:[#allocation6_spill] sm:$0xff] }
0x2952   : > { %9174 = vmatmul.mubr.msk.f32.vlgmr.msra.gmra.mrb[74].mxu1 %vm429_vm0, %v12922_v37  ;;  %9181 = vmatmul.mubr.msk.f32.vlgmr.msra.gmra.mrb[76].mxu0 %vm429_vm0, %v12927_v30  ;;  %v13412_v37 = vld [vmem:[#allocation5_spill] sm:$0xff]  ;;  %v13413_v30 = vld [vmem:[#allocation11_spill] sm:$0xff] }
0x2953   : > { %10309 = vmatpush3.bf16.msra.mxu1 %v13408_v7  ;;  %10341 = vmatpush3.bf16.msra.mxu0 %v10989_v0  ;;  %v13415_v0 = vld [vmem:[#allocation8_spill] sm:$0xff] }
0x2954   : > { %6899 = vrot.lane.b32.xlu1 %v13047_v62, %s10487_s17  ;;  %6875 = vrot.lane.b32.xlu0 %v13047_v62, %s10486_s16 }
0x2955   : > { %10311 = vmatprep.subr.bf16.mxu1 %v13409_v17  ;;  %10343 = vmatprep.subr.bf16.mxu0 %v13410_v8 }
0x2957   : > { %10313 = vmatpush3.bf16.msra.mxu1 %v13411_v21  ;;  %10345 = vmatpush3.bf16.msra.mxu0 %v13410_v8 }
0x2958   : > { %10315 = vmatprep.subr.bf16.mxu1 %v13412_v37  ;;  %10347 = vmatprep.subr.bf16.mxu0 %v13413_v30 }
0x295b   : > { %10317 = vmatpush3.bf16.msra.mxu1 %v13414_v28  ;;  %10349 = vmatpush3.bf16.msra.mxu0 %v13413_v30 }
0x295c   : > { %10319 = vmatprep.subr.bf16.mxu1 %v13415_v0  ;;  %10351 = vmatprep.subr.bf16.mxu0 %v13416_v32 }
0x295f   : > { %10321 = vmatpush3.bf16.msra.mxu1 %v13417_v43  ;;  %10353 = vmatpush3.bf16.msra.mxu0 %v13416_v32 }
0x2960   : > { %10323 = vmatprep.subr.bf16.mxu1 %v13418_v46  ;;  %10355 = vmatprep.subr.bf16.mxu0 %v13419_v12 }
0x2963   : > { %10325 = vmatpush3.bf16.msra.mxu1 %v13420_v18  ;;  %10357 = vmatpush3.bf16.msra.mxu0 %v13419_v12 }
0x2964   : > { %10327 = vmatprep.subr.bf16.mxu1 %v13421_v61  ;;  %10359 = vmatprep.subr.bf16.mxu0 %v13422_v52 }
0x2967   : > { %10329 = vmatpush3.bf16.msra.mxu1 %v13423_v1  ;;  %10361 = vmatpush3.bf16.msra.mxu0 %v13422_v52 }
0x2968   : > { %10331 = vmatprep.subr.bf16.mxu1 %v13424_v60  ;;  %10363 = vmatprep.subr.bf16.mxu0 %v13425_v5  ;;  %v7397_v60 = vld [vmem:[%s11215_s14 + $0x78] sm:$0xff] }
0x296b   : > { %10333 = vmatpush3.bf16.msra.mxu1 %v13426_v3  ;;  %10365 = vmatpush3.bf16.msra.mxu0 %v13425_v5 }
0x296c   : > { %10335 = vmatprep.subr.bf16.mxu1 %v13427_v55  ;;  %10367 = vmatprep.subr.bf16.mxu0 %v13428_v47  ;;  %v7396_v55 = vld [vmem:[%s11215_s14 + $0x70] sm:$0xff] }
0x296f   : > { %10337 = vmatpush3.bf16.msra.mxu1 %v13429_v2  ;;  %10369 = vmatpush3.bf16.msra.mxu0 %v13428_v47 }
0x29be   : > { %v6874_v38 = vpop.permute.xlu1 %6873  ;;  %v6886_v33 = vpop.permute.xlu0 %6885 }
0x29c2   : > { %v6898_v39 = vpop.permute.xlu1 %6897  ;;  %v6888_v51 = vpop.permute.xlu0 %6887 }
0x29c6   : > { %v6900_v56 = vpop.permute.xlu1 %6899  ;;  %v6876_v4 = vpop.permute.xlu0 %6875 }
0x2a25   : > { %v9175_v59 = vpop.f32.mrb[74].mxu1  ;;  %v9182_v26 = vpop.f32.mrb[76].mxu0 }
0x2a26   : > { %6881 = vrot.lane.b32.xlu0 %v9182_v26, %s10487_s17  ;;  %v6846_v9 = vpop.f32.mrb[77].mxu0  ;;  %6859 = vrot.lane.b32.xlu1 %v9175_v59, %s10487_s17  ;;  %v6771_v11 = vpop.f32.mrb[75].mxu1  ;;  %v6928_v37 = vsel %vm652_vm1, %v9182_v26, %v6900_v56  ;;  %v7093_v56 = vmul.f32 %v13043_v54, %v12893_v20 }
0x2a27   : > { %v6927_v21 = vsel %vm652_vm1, %v6846_v9, %v6898_v39 }
0x2a2a   : > { %6893 = vrot.lane.b32.xlu0 %v9175_v59, %s10486_s16  ;;  %6867 = vrot.lane.b32.xlu1 %v9182_v26, %s10485_s11 }
0x2a2e   : > { %6879 = vrot.lane.b32.xlu0 %v6846_v9, %s10487_s17  ;;  %6857 = vrot.lane.b32.xlu1 %v6771_v11, %s10487_s17 }
0x2a32   : > { %6891 = vrot.lane.b32.xlu0 %v6771_v11, %s10486_s16  ;;  %6865 = vrot.lane.b32.xlu1 %v6846_v9, %s10485_s11 }
0x2a36   : > { %6903 = vrot.lane.b32.xlu0 %v6771_v11, %s10485_s11  ;;  %6905 = vrot.lane.b32.xlu1 %v9175_v59, %s10485_s11 }
0x2a3a   : > { %6909 = vrot.lane.b32.xlu0 %v6846_v9, %s10486_s16  ;;  %6911 = vrot.lane.b32.xlu1 %v9182_v26, %s10486_s16  ;;  %v7096_v9 = vsub.f32 1.0, %v13041_v53 }
0x2a98   : > { %v6882_v25 = vpop.permute.xlu0 %6881  ;;  %v6860_v57 = vpop.permute.xlu1 %6859 }
0x2a99   : > { %v6922_v22 = vsel %vm652_vm1, %v9175_v59, %v6882_v25  ;;  %v6916_v24 = vsel %vm652_vm1, %v13047_v62, %v6860_v57 }
0x2a9a   : > { %v6924_v27 = vsel %vm655_vm2, %v6922_v22, %v6888_v51 }
0x2a9c   : > { %v6894_v6 = vpop.permute.xlu0 %6893  ;;  %v6868_v10 = vpop.permute.xlu1 %6867 }
0x2a9d   : > { %v6926_v40 = vsel %vm658_vm3, %v6924_v27, %v6894_v6  ;;  %v6918_v44 = vsel %vm655_vm2, %v6916_v24, %v6868_v10 }
0x2a9e   : > { %v6920_v7 = vsel %vm658_vm3, %v6918_v44, %v6876_v4 }
0x2a9f   : > { %v6936_v30 = vmul.f32 %v13012_v48, %v6920_v7 }
0x2aa0   : > { %v6880_v14 = vpop.permute.xlu0 %6879  ;;  %v6858_v15 = vpop.permute.xlu1 %6857 }
0x2aa1   : > { %v6921_v23 = vsel %vm652_vm1, %v6771_v11, %v6880_v14  ;;  %v6915_v31 = vsel %vm652_vm1, %v13051_v63, %v6858_v15  ;;  %v6937_v63 = vmul.f32 %v12999_v34, %v6926_v40 }
0x2aa2   : > { %v6923_v36 = vsel %vm655_vm2, %v6921_v23, %v6886_v33  ;;  %v7094_v33 = vmul.f32 %v13041_v53, %v12891_v42 }
0x2aa4   : > { %v6892_v35 = vpop.permute.xlu0 %6891  ;;  %v6866_v29 = vpop.permute.xlu1 %6865 }
0x2aa5   : > { %v6925_v16 = vsel %vm658_vm3, %v6923_v36, %v6892_v35  ;;  %v6917_v45 = vsel %vm655_vm2, %v6915_v31, %v6866_v29 }
0x2aa6   : > { %v6934_v49 = vmul.f32 %v12982_v58, %v6925_v16  ;;  %v6919_v62 = vsel %vm658_vm3, %v6917_v45, %v6874_v38  ;;  %v7095_v38 = vsub.f32 1.0, %v13043_v54 }
0x2aa7   : > { %v6933_v13 = vmul.f32 %v12992_v19, %v6919_v62 }
0x2aa8   : > { %v6904_v17 = vpop.permute.xlu0 %6903  ;;  %v6906_v8 = vpop.permute.xlu1 %6905  ;;  %7003 = vmatprep.mubr.f32.mxu1 %v6934_v49 }
0x2aa9   : > { %7004 = vmatmul.mubr.f32.vlgmr.msra.gmra.mrb[76].mxu1 %v6933_v13  ;;  %v6929_v58 = vsel %vm655_vm2, %v6927_v21, %v6904_v17  ;;  %v6930_v28 = vsel %vm655_vm2, %v6928_v37, %v6906_v8 }
0x2aaa   : > { %7008 = vmatprep.mubr.f32.mxu1 %v6937_v63 }
0x2aac   : > { %v6910_v19 = vpop.permute.xlu0 %6909  ;;  %v6912_v34 = vpop.permute.xlu1 %6911 }
0x2aad   : > { %v6931_v0 = vsel %vm658_vm3, %v6929_v58, %v6910_v19  ;;  %v6932_v32 = vsel %vm658_vm3, %v6930_v28, %v6912_v34  ;;  %7009 = vmatmul.mubr.f32.gmra.mrb[78].mxu1 %v6936_v30 }
0x2aae   : > { %v6935_v43 = vmul.f32 %v13026_v41, %v6931_v0  ;;  %v6938_v46 = vmul.f32 %v13021_v50, %v6932_v32 }
0x2ab0   : > { %9215 = vmatprep.mubr.f32.mxu0 %v6935_v43 }
0x2ab1   : > { %9216 = vmatmul.mubr.f32.vlgmr.msra.gmra.mrb[78].mxu0 %v6938_v46 }
0x2b7c   : > { %v8410_v48 = vpop.f32.mrb[76].mxu1 }
0x2b7d   : > { %v8411_v12 = vpop.f32.mrb[77].mxu1 }
0x2b7e   : > { %v8412_v18 = vadd.f32 %v8411_v12, %v8410_v48 }
0x2b80   : > { %v8413_v61 = vpop.f32.mrb[78].mxu1 }
0x2b81   : > { %v8414_v52 = vpop.f32.mrb[79].mxu1 }
0x2b82   : > { %v8415_v1 = vadd.f32 %v8414_v52, %v8413_v61 }
0x2b84   : > { %v9217_v5 = vpop.f32.mrb[78].mxu0 }
0x2b85   : > { %v7086_v3 = vadd.f32 %v9217_v5, %v8415_v1  ;;  %v7080_v47 = vpop.f32.mrb[79].mxu0 }
0x2b86   : > { %v7081_v2 = vadd.f32 %v8412_v18, %v7080_v47 }
0x2b87   : > { %v7090_v59 = vadd.f32 %v7397_v60, %v7086_v3 }
0x2b88   : > { %v7089_v26 = vadd.f32 %v7396_v55, %v7081_v2 }
0x2b89   : > { %10473 = vtanh.f32 %v7090_v59 }
0x2b8a   : > { %10475 = vtanh.f32 %v7089_v26 }
0x2b93   : > { %v10474_v41 = vpop.eup %10473 }
0x2b94   : > { %v10476_v50 = vpop.eup %10475  ;;  %7101 = vrot.lane.b32.xlu1 %v10474_v41, %s10487_s17 }
0x2b95   : > { %7099 = vrot.lane.b32.xlu0 %v10476_v50, %s10487_s17 }
0x2c06   : > { %v7102_v11 = vpop.permute.xlu1 %7101 }
0x2c07   : > { %v7106_v39 = vmul.f32 %v7102_v11, %v7096_v9  ;;  %v7100_v51 = vpop.permute.xlu0 %7099 }
0x2c08   : > { %v7105_v4 = vmul.f32 %v7100_v51, %v7095_v38 }
0x2c09   : > { %v7108_v25 = vadd.f32 %v7106_v39, %v7094_v33 }
0x2c0a   : > { %v7107_v57 = vadd.f32 %v7105_v4, %v7093_v56 }
0x2c0b   : > { %7113 = vrot.lane.b32.xlu1 %v7108_v25, %s10486_s16 }
0x2c0c   : > { %7111 = vrot.lane.b32.xlu0 %v7107_v57, %s10486_s16 }
0x2c7d   : > { %v7114_v6 = vpop.permute.xlu1 %7113 }
0x2c7e   : > { %7403 = vst.msk [vmem:[%s11261_s26 + $0x78] sm:$0xff] %vm652_vm1, %v7114_v6  ;;  %v7112_v10 = vpop.permute.xlu0 %7111 }
0x2c7f   : > { %7402 = vst.msk [vmem:[%s11261_s26 + $0x70] sm:$0xff] %vm652_vm1, %v7112_v10 }
0x2c80 PF: > { %s17_s24 = sadd.s32 1, %s10483_s24  }
0x2c81   : > { %p14_p4 = scmp.ge.s32.totalorder %s17_s24, 4  }
0x2c83   :  { %16 = sbr.rel (!%p14_p4) target bundleno = 1 (0x1), region = 119 }

</bundles_post_ra>
